<compile_context>
chip_gen: v7x
topology: tpu7x:2x2x1
jax: 0.10.0
libtpu: 0.0.40
codegen_flags: <defaults>
</compile_context>

<pallas_src>
import functools

import jax
import jax.numpy as jnp
from jax.experimental import pallas as pl
from jax.experimental.pallas import tpu as pltpu


def _fused_kernel(x1_ref, x2_ref, w_ref, gamma_ref, beta_ref, out_ref, *, inv_m):
    # x1, x2: (C_in, M); w: (TCO, C_in); gamma/beta: (TCO, 1); out: (TCO, M)
    # add + relu in f32 on the VPU (handles bf16 or f32 inputs).
    x = jnp.maximum(
        x1_ref[...].astype(jnp.float32) + x2_ref[...].astype(jnp.float32), 0.0)
    # 1x1 conv == matmul over the channel dim: bf16 operands -> MXU native
    # rate, f32 accumulation keeps the single-pass variance well conditioned.
    y = jnp.dot(w_ref[...].astype(jnp.bfloat16),
                x.astype(jnp.bfloat16),
                preferred_element_type=jnp.float32)              # (TCO, M) f32
    # Single-pass BN batch statistics over the spatial axis (per out-channel).
    s = jnp.sum(y, axis=-1, keepdims=True)
    ss = jnp.sum(y * y, axis=-1, keepdims=True)
    mean = s * inv_m
    var = ss * inv_m - mean * mean                               # biased variance
    # Fold the affine into per-channel scale/shift.
    scale = gamma_ref[...].astype(jnp.float32) * jax.lax.rsqrt(var + 1e-5)
    shift = beta_ref[...].astype(jnp.float32) - mean * scale
    out_ref[...] = (y * scale + shift).astype(out_ref.dtype)


def _num_tensorcores() -> int:
    """Best-effort count of TensorCores a single pallas_call can address."""
    try:
        info = pltpu.get_tpu_info()
        for attr in ("num_cores", "core_count", "num_tensorcores", "cores_per_chip"):
            n = getattr(info, attr, None)
            if isinstance(n, int) and n > 0:
                return n
    except Exception:
        pass
    try:
        kind = jax.devices()[0].device_kind.lower()
        if "7" in kind:          # v7x: 2 TensorCores per chip
            return 2
    except Exception:
        pass
    return 1                     # v5e / v6e: single TensorCore


def fused_add_relu_conv1x1_bn(x49, x57, weight, gamma, beta):
    """x49, x57: NCHW (N, C_in, H, W). weight: (C_out, C_in, 1, 1)."""
    N, C_in, H, W = x49.shape
    C_out = weight.shape[0]
    M = N * H * W
    out_dtype = x49.dtype

    # NCHW -> (C, M): a zero-copy view when N == 1 (no transpose traffic),
    # and no dtype cast in the wrapper (native dtype goes straight to VMEM).
    def to_cm(x):
        if N == 1:
            return x.reshape(x.shape[1], M)
        return jnp.moveaxis(x, 1, 0).reshape(x.shape[1], M)

    x1 = to_cm(x49)
    x2 = to_cm(x57)
    w_mat = weight[:, :, 0, 0]                       # (C_out, C_in), free view
    gamma2 = gamma.reshape(C_out, 1)
    beta2 = beta.reshape(C_out, 1)

    kernel = functools.partial(_fused_kernel, inv_m=float(1.0 / M))

    def run(n_tiles, semantics):
        tco = C_out // n_tiles
        cost = pl.CostEstimate(
            flops=2 * M * C_in * C_out,
            transcendentals=C_out,                    # one rsqrt per out-channel
            bytes_accessed=(x1.dtype.itemsize * 2 * C_in * M
                            + w_mat.dtype.itemsize * C_in * C_out
                            + jnp.dtype(out_dtype).itemsize * C_out * M
                            + gamma2.dtype.itemsize * 2 * C_out),
        )
        out = pl.pallas_call(
            kernel,
            out_shape=jax.ShapeDtypeStruct((C_out, M), out_dtype),
            grid=(n_tiles,),
            in_specs=[
                pl.BlockSpec((C_in, M), lambda i: (0, 0)),    # x1: full, reused
                pl.BlockSpec((C_in, M), lambda i: (0, 0)),    # x2: full, reused
                pl.BlockSpec((tco, C_in), lambda i: (i, 0)),  # W slice per tile
                pl.BlockSpec((tco, 1), lambda i: (i, 0)),     # gamma slice
                pl.BlockSpec((tco, 1), lambda i: (i, 0)),     # beta slice
            ],
            out_specs=pl.BlockSpec((tco, M), lambda i: (i, 0)),
            compiler_params=pltpu.CompilerParams(dimension_semantics=semantics),
            cost_estimate=cost,
        )(x1, x2, w_mat, gamma2, beta2)
        return jax.block_until_ready(out)

    n_cores = _num_tensorcores()
    out_cm = None
    if n_cores >= 2 and C_out % (8 * n_cores) == 0:
        # v7x path: split C_out across both TensorCores. CORE_PARALLEL is the
        # semantics that actually changes codegen; fall back if rejected.
        try:
            out_cm = run(n_cores, (pltpu.CORE_PARALLEL,))
        except Exception:
            out_cm = None
    if out_cm is None:
        # Single-TC chips (v5e/v6e): one grid step, no redundant add+relu pass.
        out_cm = run(1, ("arbitrary",))

    # (C_out, M) -> NCHW (free view when N == 1).
    if N == 1:
        return out_cm.reshape(1, C_out, H, W)
    return jnp.moveaxis(out_cm.reshape(C_out, N, H, W), 0, 1)
    # TODO(synk): BatchNorm2d running_mean/running_var momentum update is a
    # training-time buffer side effect not represented in the forward output;
    # dropped here.


def reference(x49, x57, weight, gamma, beta):
    """Pure-JAX f32 reference matching the PyTorch module (training-mode BN)."""
    x = jnp.maximum(x49 + x57, 0.0)
    y = jnp.einsum('nchw,oc->nohw', x, weight[:, :, 0, 0])
    mean = jnp.mean(y, axis=(0, 2, 3), keepdims=True)
    var = jnp.mean((y - mean) ** 2, axis=(0, 2, 3), keepdims=True)
    yn = (y - mean) * jax.lax.rsqrt(var + 1e-5)
    return yn * gamma.reshape(1, -1, 1, 1) + beta.reshape(1, -1, 1, 1)


if __name__ == "__main__":
    key = jax.random.PRNGKey(0)
    k1, k2, k3, k4, k5 = jax.random.split(key, 5)

    N, C, H, W = 1, 288, 14, 14
    x49 = jax.random.normal(k1, (N, C, H, W), dtype=jnp.float32)
    x57 = jax.random.normal(k2, (N, C, H, W), dtype=jnp.float32)

    # Conv2d(288, 288, 1x1, bias=False) weight; BN affine params.
    weight = jax.random.normal(k3, (C, C, 1, 1), dtype=jnp.float32) * 0.05
    gamma = jnp.ones((C,), dtype=jnp.float32) + 0.1 * jax.random.normal(k4, (C,))
    beta = 0.1 * jax.random.normal(k5, (C,), dtype=jnp.float32)

    out = fused_add_relu_conv1x1_bn(x49, x57, weight, gamma, beta)
    out = jax.block_until_ready(out)

    ref = reference(x49, x57, weight, gamma, beta)
    assert out.shape == (N, C, H, W)
    # Tolerance accounts for bf16 MXU operands (f32 accumulate); BN
    # re-normalization keeps the error at the ~1e-2 level worst-case.
    err = float(jnp.max(jnp.abs(out - ref)))
    assert jnp.allclose(out, ref, atol=3e-2, rtol=3e-2), err
    print("KERNEL_OK")
</pallas_src>

<mosaic_0001>
module attributes {stable_mosaic.version = 11 : i64} {
  func.func @_fused_kernel(%arg0: i32, %arg1: memref<288x196xf32, #tpu.memory_space<vmem>>, %arg2: memref<288x196xf32, #tpu.memory_space<vmem>>, %arg3: memref<288x288xf32, #tpu.memory_space<vmem>>, %arg4: memref<288x1xf32, #tpu.memory_space<vmem>>, %arg5: memref<288x1xf32, #tpu.memory_space<vmem>>, %arg6: memref<288x196xf32, #tpu.memory_space<vmem>>) attributes {dimension_semantics = [#tpu.dimension_semantics<arbitrary>], iteration_bounds = array<i64: 1>, scalar_prefetch = 0 : i64, scratch_operands = 0 : i64, tpu.core_type = #tpu.core_type<tc>, window_params = [{pipeline_mode = #tpu.pipeline_mode<synchronous>, transform_indices = @transform_0, window_bounds = array<i64: 288, 196>}, {pipeline_mode = #tpu.pipeline_mode<synchronous>, transform_indices = @transform_1, window_bounds = array<i64: 288, 196>}, {transform_indices = @transform_2, window_bounds = array<i64: 288, 288>}, {transform_indices = @transform_3, window_bounds = array<i64: 288, 1>}, {transform_indices = @transform_4, window_bounds = array<i64: 288, 1>}, {transform_indices = @transform_5, window_bounds = array<i64: 288, 196>}]} {
    %c0 = arith.constant 0 : index
    %c0_0 = arith.constant 0 : index
    %0 = vector.load %arg1[%c0, %c0_0] : memref<288x196xf32, #tpu.memory_space<vmem>>, vector<288x196xf32>
    %c0_1 = arith.constant 0 : index
    %c0_2 = arith.constant 0 : index
    %1 = vector.load %arg2[%c0_1, %c0_2] : memref<288x196xf32, #tpu.memory_space<vmem>>, vector<288x196xf32>
    %2 = arith.addf %0, %1 : vector<288x196xf32>
    %cst = arith.constant 0.000000e+00 : f32
    %3 = vector.broadcast %cst : f32 to vector<288x196xf32>
    %4 = arith.maximumf %2, %3 : vector<288x196xf32>
    %c0_3 = arith.constant 0 : index
    %c0_4 = arith.constant 0 : index
    %5 = vector.load %arg3[%c0_3, %c0_4] : memref<288x288xf32, #tpu.memory_space<vmem>>, vector<288x288xf32>
    %6 = arith.truncf %5 : vector<288x288xf32> to vector<288x288xbf16>
    %7 = arith.truncf %4 : vector<288x196xf32> to vector<288x196xbf16>
    %cst_5 = arith.constant dense<0.000000e+00> : vector<288x196xf32>
    %8 = tpu.matmul %6, %7, %cst_5 {dimension_numbers = #tpu.dot_dimension_numbers<[1], [0], [0], [1], [0, 0, 1, 1], [], []>} : vector<288x288xbf16>, vector<288x196xbf16>, vector<288x196xf32> -> vector<288x196xf32>
    %cst_6 = arith.constant dense<0.000000e+00> : vector<288xf32>
    %9 = vector.multi_reduction <add>, %8, %cst_6 [1] : vector<288x196xf32> to vector<288xf32>
    %10 = vector.shape_cast %9 : vector<288xf32> to vector<288x1xf32>
    %11 = arith.mulf %8, %8 : vector<288x196xf32>
    %cst_7 = arith.constant dense<0.000000e+00> : vector<288xf32>
    %12 = vector.multi_reduction <add>, %11, %cst_7 [1] : vector<288x196xf32> to vector<288xf32>
    %13 = vector.shape_cast %12 : vector<288xf32> to vector<288x1xf32>
    %cst_8 = arith.constant 0.00510204071 : f32
    %14 = vector.broadcast %cst_8 : f32 to vector<288x1xf32>
    %15 = arith.mulf %10, %14 : vector<288x1xf32>
    %cst_9 = arith.constant 0.00510204071 : f32
    %16 = vector.broadcast %cst_9 : f32 to vector<288x1xf32>
    %17 = arith.mulf %13, %16 : vector<288x1xf32>
    %18 = arith.mulf %15, %15 : vector<288x1xf32>
    %19 = arith.subf %17, %18 : vector<288x1xf32>
    %c0_10 = arith.constant 0 : index
    %c0_11 = arith.constant 0 : index
    %20 = vector.load %arg4[%c0_10, %c0_11] : memref<288x1xf32, #tpu.memory_space<vmem>>, vector<288x1xf32>
    %cst_12 = arith.constant 9.99999974E-6 : f32
    %21 = vector.broadcast %cst_12 : f32 to vector<288x1xf32>
    %22 = arith.addf %19, %21 : vector<288x1xf32>
    %23 = math.rsqrt %22 : vector<288x1xf32>
    %24 = arith.mulf %20, %23 : vector<288x1xf32>
    %c0_13 = arith.constant 0 : index
    %c0_14 = arith.constant 0 : index
    %25 = vector.load %arg5[%c0_13, %c0_14] : memref<288x1xf32, #tpu.memory_space<vmem>>, vector<288x1xf32>
    %26 = arith.mulf %15, %24 : vector<288x1xf32>
    %27 = arith.subf %25, %26 : vector<288x1xf32>
    %28 = vector.broadcast %24 : vector<288x1xf32> to vector<288x196xf32>
    %29 = arith.mulf %8, %28 : vector<288x196xf32>
    %30 = vector.broadcast %27 : vector<288x1xf32> to vector<288x196xf32>
    %31 = arith.addf %29, %30 : vector<288x196xf32>
    %c0_15 = arith.constant 0 : index
    %c0_16 = arith.constant 0 : index
    %32 = vector.load %arg6[%c0_15, %c0_16] : memref<288x196xf32, #tpu.memory_space<vmem>>, vector<288x196xf32>
    tpu.vector_store %arg6[%c0_15, %c0_16], %31 {strides = array<i32>} : memref<288x196xf32, #tpu.memory_space<vmem>>, vector<288x196xf32>,
    return
  }
  func.func @transform_0(%arg0: i32) -> (i32, i32) {
    %c0_i32 = arith.constant 0 : i32
    %c0_i32_0 = arith.constant 0 : i32
    %c0_i32_1 = arith.constant 0 : i32
    return %c0_i32, %c0_i32_0 : i32, i32
  }
  func.func @transform_1(%arg0: i32) -> (i32, i32) {
    %c0_i32 = arith.constant 0 : i32
    %c0_i32_0 = arith.constant 0 : i32
    %c0_i32_1 = arith.constant 0 : i32
    return %c0_i32, %c0_i32_0 : i32, i32
  }
  func.func @transform_2(%arg0: i32) -> (i32, i32) {
    %c0_i32 = arith.constant 0 : i32
    %c0_i32_0 = arith.constant 0 : i32
    return %arg0, %c0_i32 : i32, i32
  }
  func.func @transform_3(%arg0: i32) -> (i32, i32) {
    %c0_i32 = arith.constant 0 : i32
    %c0_i32_0 = arith.constant 0 : i32
    return %arg0, %c0_i32 : i32, i32
  }
  func.func @transform_4(%arg0: i32) -> (i32, i32) {
    %c0_i32 = arith.constant 0 : i32
    %c0_i32_0 = arith.constant 0 : i32
    return %arg0, %c0_i32 : i32, i32
  }
  func.func @transform_5(%arg0: i32) -> (i32, i32) {
    %c0_i32 = arith.constant 0 : i32
    %c0_i32_0 = arith.constant 0 : i32
    return %arg0, %c0_i32 : i32, i32
  }
}

</mosaic_0001>

<bundles_post_ra>
// kernel: tpu_custom_call.1
= control target key start
LH: loop header
LB: loop body
LE: loop exit
PB: predicated region body
PF: predicated region fallthrough
CT: control target
= control target key end

     0   :  { %10 = vsyncpa [#allocation3], 0  ;;  %s3944_s0 = inlined_call_operand.vmem [shape: f32[288,196], index: 0, kind: input, shape index: {}]   ;;  %s3945_s1 = inlined_call_operand.hbm [shape: f32[288,196], index: 1, kind: input, shape index: {}]   ;;  %s3946_s2 = inlined_call_operand.hbm [shape: f32[288,288], index: 2, kind: input, shape index: {}]   ;;  %s3947_s3 = inlined_call_operand.vmem [shape: f32[288,1], index: 3, kind: input, shape index: {}]   ;;  %s3948_s4 = inlined_call_operand.vmem [shape: f32[288,1], index: 4, kind: input, shape index: {}]   ;;  %s3949_s5 = inlined_call_operand.hbm [shape: f32[288,196], index: 5, kind: output, shape index: {}]  }
   0x1   :  { %11 = vsyncpa [#allocation6], 0 }
   0x2   :  { %12 = vsyncpa [#allocation4], 0  ;;  %s2612_s18 = smov [#allocation2]   ;;  %s2540_s22 = scalar_lea.hbm %s3945_s1, 9216 }
   0x3   :  { %s20_s19 = sshll.u32 %s2612_s18, 4  ;;  %p2541_p0 = scmp.ne.s32.totalorder %s3945_s1, %s2540_s22  ;;  %s21_s19 = int_to_ptr.vmem [resolvable:$true] %s20_s19 }
   0x4   :  { %p2544_p1 = scmp.lt.u32.totalorder %s2540_s22, %s3945_s1 }
   0x6   :  { %p2546_p2 = pnand %p2544_p1, %p2541_p0 }
   0x8   :  { %2549 = shalt.err (!%p2546_p2)
}
   0x9   :  { %s2550_s27 = scalar_lea.vmem %s21_s19, 9216  ;;  %p2555_p4 = scmp.lt.s32.totalorder %s21_s19, %s21_s19 }
   0xa   :  { %p2551_p3 = scmp.ne.s32.totalorder %s21_s19, %s2550_s27  ;;  %p2556_p5 = scmp.lt.s32.totalorder %s2550_s27, %s2550_s27 }
   0xc   :  { %p2557_p6 = por %p2556_p5, %p2555_p4 }
   0xe   :  { %p2558_p7 = pnand %p2557_p6, %p2551_p3 }
  0x10   :  { %2561 = shalt.err (!%p2558_p7)
}
  0x11   :  { %s2613_s28 = smov 256   ;;  %s2614_s29 = smov 16  }
  0x12   :  { %26 = dma.hbm_to_vmem [thread:$0]  %s3945_s1, 9216, %s21_s19, [#allocation3], %s2613_s28, %s2613_s28, %s2614_s29  }
  0x13   :  { %s2615_s7 = smov [#allocation5]   ;;  %s2562_s11 = scalar_lea.hbm %s3946_s2, 13824 }
  0x14   :  { %s32_s8 = sshll.u32 %s2615_s7, 4  ;;  %p2563_p8 = scmp.ne.s32.totalorder %s3946_s2, %s2562_s11  ;;  %s33_s8 = int_to_ptr.vmem [resolvable:$true] %s32_s8 }
  0x15   :  { %p2566_p9 = scmp.lt.u32.totalorder %s2562_s11, %s3946_s2 }
  0x17   :  { %p2568_p10 = pnand %p2566_p9, %p2563_p8 }
  0x19   :  { %2571 = shalt.err (!%p2568_p10)
}
  0x1a   :  { %s2572_s16 = scalar_lea.vmem %s33_s8, 13824  ;;  %p2577_p12 = scmp.lt.s32.totalorder %s33_s8, %s33_s8 }
  0x1b   :  { %p2573_p11 = scmp.ne.s32.totalorder %s33_s8, %s2572_s16  ;;  %p2578_p13 = scmp.lt.s32.totalorder %s2572_s16, %s2572_s16 }
  0x1d   :  { %p2579_p0 = por %p2578_p13, %p2577_p12 }
  0x1f   :  { %p2580_p1 = pnand %p2579_p0, %p2573_p11 }
  0x21   :  { %2583 = shalt.err (!%p2580_p1)
}
  0x22   :  { %s2616_s1 = smov 384   ;;  %s2617_s17 = smov 24  }
  0x23   :  { %38 = dma.hbm_to_vmem [thread:$0]  %s3946_s2, 13824, %s33_s8, [#allocation6], %s2616_s1, %s2616_s1, %s2617_s17  }
  0x24   :  { %2606 = dma.done.wait [#allocation3], 9216  }
  0x25   :  { %2607 = vsyncadd [#allocation3], 4294958080 }
  0x26   :  { %2608 = dma.done.wait [#allocation6], 13824  }
  0x27   :  { %2609 = vsyncadd [#allocation6], 4294953472  ;;  %v2618_v0 = vmov 0   ;;  %v51_v1 = vld [vmem:[%s3944_s0 + $0x8] sm:$0xff]  ;;  %v53_v2 = vld [vmem:[%s3944_s0 + $0x18] sm:$0xff]  ;;  %vm536_vm0 = vcmask 261120  }
  0x28   :  { %836 = vmatprep.mubr.bf16.mxu0 %v2618_v0  ;;  %2467 = vset.pattern.permute.xlu1 %v2618_v0  ;;  %v123_v3 = vld [vmem:[#allocation2 + $0x8] sm:$0xff]  ;;  %v125_v4 = vld [vmem:[#allocation2 + $0x18] sm:$0xff]  ;;  %v50_v6 = vld [vmem:[%s3944_s0] sm:$0xff]  ;;  %vm1017_vm1 = vcmask 556032  }
  0x29   :  { %2466 = vset.pattern.permute.xlu0 %v2618_v0  ;;  %v195_v5 = vadd.f32 %v123_v3, %v51_v1  ;;  %v52_v7 = vld [vmem:[%s3944_s0 + $0x10] sm:$0xff]  ;;  %v197_v8 = vadd.f32 %v125_v4, %v53_v2  ;;  %v122_v9 = vld [vmem:[#allocation2] sm:$0xff]  ;;  %v55_v11 = vld [vmem:[%s3944_s0 + $0x28] sm:$0xff] }
  0x2a   :  { %v124_v10 = vld [vmem:[#allocation2 + $0x10] sm:$0xff]  ;;  %v194_v13 = vadd.f32 %v122_v9, %v50_v6  ;;  %v57_v15 = vld [vmem:[%s3944_s0 + $0x38] sm:$0xff]  ;;  %v127_v16 = vld [vmem:[#allocation2 + $0x28] sm:$0xff] }
  0x2b   :  { %v267_v12 = vmax.f32 %v195_v5, 0.0  ;;  %v196_v14 = vadd.f32 %v124_v10, %v52_v7  ;;  %v129_v17 = vld [vmem:[#allocation2 + $0x38] sm:$0xff]  ;;  %v269_v18 = vmax.f32 %v197_v8, 0.0  ;;  %v199_v19 = vadd.f32 %v127_v16, %v55_v11  ;;  %v54_v21 = vld [vmem:[%s3944_s0 + $0x20] sm:$0xff]  ;;  %v56_v22 = vld [vmem:[%s3944_s0 + $0x30] sm:$0xff] }
  0x2c   :  { %v201_v20 = vadd.f32 %v129_v17, %v57_v15  ;;  %v126_v23 = vld [vmem:[#allocation2 + $0x20] sm:$0xff]  ;;  %v266_v24 = vmax.f32 %v194_v13, 0.0  ;;  %v128_v26 = vld [vmem:[#allocation2 + $0x30] sm:$0xff]  ;;  %v59_v28 = vld [vmem:[%s3944_s0 + $0x48] sm:$0xff] }
  0x2d   :  { %v268_v25 = vmax.f32 %v196_v14, 0.0  ;;  %v198_v27 = vadd.f32 %v126_v23, %v54_v21  ;;  %v61_v29 = vld [vmem:[%s3944_s0 + $0x58] sm:$0xff]  ;;  %v501_v30 = vpack.c.bf16 %v269_v18, %v267_v12  ;;  %v271_v31 = vmax.f32 %v199_v19, 0.0  ;;  %v131_v34 = vld [vmem:[#allocation2 + $0x48] sm:$0xff]  ;;  %v58_v36 = vld [vmem:[%s3944_s0 + $0x40] sm:$0xff] }
  0x2e   :  { %v273_v32 = vmax.f32 %v201_v20, 0.0  ;;  %v200_v33 = vadd.f32 %v128_v26, %v56_v22  ;;  %v133_v35 = vld [vmem:[#allocation2 + $0x58] sm:$0xff]  ;;  %v203_v39 = vadd.f32 %v131_v34, %v59_v28  ;;  %v60_v41 = vld [vmem:[%s3944_s0 + $0x50] sm:$0xff]  ;;  %v130_v42 = vld [vmem:[#allocation2 + $0x40] sm:$0xff] }
  0x2f   :  { %v500_v37 = vpack.c.bf16 %v268_v25, %v266_v24  ;;  %v270_v38 = vmax.f32 %v198_v27, 0.0  ;;  %v205_v40 = vadd.f32 %v133_v35, %v61_v29  ;;  %v132_v43 = vld [vmem:[#allocation2 + $0x50] sm:$0xff]  ;;  %591 = vmatprep.subr.bf16.mxu1 %v501_v30  ;;  %v202_v46 = vadd.f32 %v130_v42, %v58_v36  ;;  %v63_v48 = vld [vmem:[%s3944_s0 + $0x68] sm:$0xff]  ;;  %v65_v49 = vld [vmem:[%s3944_s0 + $0x78] sm:$0xff] }
  0x30   :  { %v503_v44 = vpack.c.bf16 %v273_v32, %v271_v31  ;;  %v272_v45 = vmax.f32 %v200_v33, 0.0  ;;  %v204_v47 = vadd.f32 %v132_v43, %v60_v41  ;;  %v135_v50 = vld [vmem:[#allocation2 + $0x68] sm:$0xff]  ;;  %v275_v51 = vmax.f32 %v203_v39, 0.0  ;;  %v137_v53 = vld [vmem:[#allocation2 + $0x78] sm:$0xff]  ;;  %v62_v55 = vld [vmem:[%s3944_s0 + $0x60] sm:$0xff] }
  0x31   :  { %592 = vmatpush1.bf16.msra.mxu1 %v500_v37  ;;  %v277_v52 = vmax.f32 %v205_v40, 0.0  ;;  %v207_v54 = vadd.f32 %v135_v50, %v63_v48  ;;  %v64_v56 = vld [vmem:[%s3944_s0 + $0x70] sm:$0xff]  ;;  %v274_v58 = vmax.f32 %v202_v46, 0.0  ;;  %v209_v60 = vadd.f32 %v137_v53, %v65_v49  ;;  %v134_v61 = vld [vmem:[#allocation2 + $0x60] sm:$0xff]  ;;  %v67_v63 = vld [vmem:[%s3944_s0 + $0x88] sm:$0xff] }
  0x32   :  { %593 = vmatprep.subr.bf16.mxu1 %v503_v44  ;;  %v502_v57 = vpack.c.bf16 %v272_v45, %v270_v38  ;;  %v276_v59 = vmax.f32 %v204_v47, 0.0  ;;  %v136_v62 = vld [vmem:[#allocation2 + $0x70] sm:$0xff]  ;;  %v206_v3 = vadd.f32 %v134_v61, %v62_v55  ;;  %v69_v5 = vld [vmem:[%s3944_s0 + $0x98] sm:$0xff]  ;;  %v139_v6 = vld [vmem:[#allocation2 + $0x88] sm:$0xff] }
  0x33   :  { %v505_v1 = vpack.c.bf16 %v277_v52, %v275_v51  ;;  %v279_v2 = vmax.f32 %v207_v54, 0.0  ;;  %v208_v4 = vadd.f32 %v136_v62, %v64_v56  ;;  %v141_v7 = vld [vmem:[#allocation2 + $0x98] sm:$0xff]  ;;  %v281_v8 = vmax.f32 %v209_v60, 0.0  ;;  %v66_v11 = vld [vmem:[%s3944_s0 + $0x80] sm:$0xff]  ;;  %v68_v12 = vld [vmem:[%s3944_s0 + $0x90] sm:$0xff] }
  0x34   :  { %v211_v9 = vadd.f32 %v139_v6, %v67_v63  ;;  %v213_v10 = vadd.f32 %v141_v7, %v69_v5  ;;  %v138_v13 = vld [vmem:[#allocation2 + $0x80] sm:$0xff]  ;;  %v504_v14 = vpack.c.bf16 %v276_v59, %v274_v58  ;;  %v278_v15 = vmax.f32 %v206_v3, 0.0  ;;  %v140_v17 = vld [vmem:[#allocation2 + $0x90] sm:$0xff]  ;;  %v71_v19 = vld [vmem:[%s3944_s0 + $0xa8] sm:$0xff] }
  0x35   :  { %594 = vmatpush1.bf16.msra.mxu1 %v502_v57  ;;  %v280_v16 = vmax.f32 %v208_v4, 0.0  ;;  %v210_v18 = vadd.f32 %v138_v13, %v66_v11  ;;  %v73_v20 = vld [vmem:[%s3944_s0 + $0xb8] sm:$0xff]  ;;  %v507_v21 = vpack.c.bf16 %v281_v8, %v279_v2  ;;  %v212_v24 = vadd.f32 %v140_v17, %v68_v12  ;;  %v143_v25 = vld [vmem:[#allocation2 + $0xa8] sm:$0xff]  ;;  %v70_v27 = vld [vmem:[%s3944_s0 + $0xa0] sm:$0xff] }
  0x36   :  { %595 = vmatprep.subr.bf16.mxu1 %v505_v1  ;;  %v283_v22 = vmax.f32 %v211_v9, 0.0  ;;  %v285_v23 = vmax.f32 %v213_v10, 0.0  ;;  %v145_v26 = vld [vmem:[#allocation2 + $0xb8] sm:$0xff]  ;;  %v215_v28 = vadd.f32 %v143_v25, %v71_v19  ;;  %v72_v30 = vld [vmem:[%s3944_s0 + $0xb0] sm:$0xff]  ;;  %v142_v31 = vld [vmem:[#allocation2 + $0xa0] sm:$0xff] }
  0x37   :  { %v217_v29 = vadd.f32 %v145_v26, %v73_v20  ;;  %v144_v32 = vld [vmem:[#allocation2 + $0xb0] sm:$0xff]  ;;  %v506_v33 = vpack.c.bf16 %v280_v16, %v278_v15  ;;  %v282_v34 = vmax.f32 %v210_v18, 0.0  ;;  %v284_v35 = vmax.f32 %v212_v24, 0.0  ;;  %v75_v36 = vld [vmem:[%s3944_s0 + $0xc8] sm:$0xff]  ;;  %v77_v37 = vld [vmem:[%s3944_s0 + $0xd8] sm:$0xff] }
  0x38   :  { %v147_v38 = vld [vmem:[#allocation2 + $0xc8] sm:$0xff]  ;;  %v287_v39 = vmax.f32 %v215_v28, 0.0  ;;  %v214_v41 = vadd.f32 %v142_v31, %v70_v27  ;;  %v216_v42 = vadd.f32 %v144_v32, %v72_v30  ;;  %v149_v43 = vld [vmem:[#allocation2 + $0xd8] sm:$0xff]  ;;  %v74_v44 = vld [vmem:[%s3944_s0 + $0xc0] sm:$0xff]  ;;  %v509_v46 = vpack.c.bf16 %v285_v23, %v283_v22 }
  0x39   :  { %596 = vmatpush1.bf16.msra.mxu1 %v504_v14  ;;  %v289_v40 = vmax.f32 %v217_v29, 0.0  ;;  %v76_v45 = vld [vmem:[%s3944_s0 + $0xd0] sm:$0xff]  ;;  %v219_v47 = vadd.f32 %v147_v38, %v75_v36  ;;  %v221_v48 = vadd.f32 %v149_v43, %v77_v37  ;;  %v146_v49 = vld [vmem:[#allocation2 + $0xc0] sm:$0xff]  ;;  %v79_v51 = vld [vmem:[%s3944_s0 + $0xe8] sm:$0xff]  ;;  %v508_v59 = vpack.c.bf16 %v284_v35, %v282_v34 }
  0x3a   :  { %597 = vmatprep.subr.bf16.mxu1 %v507_v21  ;;  %v148_v50 = vld [vmem:[#allocation2 + $0xd0] sm:$0xff]  ;;  %v218_v52 = vadd.f32 %v146_v49, %v74_v44  ;;  %v81_v54 = vld [vmem:[%s3944_s0 + $0xf8] sm:$0xff]  ;;  %v151_v55 = vld [vmem:[#allocation2 + $0xe8] sm:$0xff]  ;;  %v286_v61 = vmax.f32 %v214_v41, 0.0  ;;  %v288_v62 = vmax.f32 %v216_v42, 0.0 }
  0x3b   :  { %v220_v53 = vadd.f32 %v148_v50, %v76_v45  ;;  %v153_v56 = vld [vmem:[#allocation2 + $0xf8] sm:$0xff]  ;;  %v78_v57 = vld [vmem:[%s3944_s0 + $0xe0] sm:$0xff]  ;;  %v80_v58 = vld [vmem:[%s3944_s0 + $0xf0] sm:$0xff]  ;;  %v511_v60 = vpack.c.bf16 %v289_v40, %v287_v39  ;;  %v291_v3 = vmax.f32 %v219_v47, 0.0  ;;  %v293_v4 = vmax.f32 %v221_v48, 0.0 }
  0x3c   :  { %v150_v63 = vld [vmem:[#allocation2 + $0xe0] sm:$0xff]  ;;  %v152_v1 = vld [vmem:[#allocation2 + $0xf0] sm:$0xff]  ;;  %v83_v2 = vld [vmem:[%s3944_s0 + $0x108] sm:$0xff]  ;;  %v223_v5 = vadd.f32 %v151_v55, %v79_v51  ;;  %v225_v6 = vadd.f32 %v153_v56, %v81_v54  ;;  %v290_v10 = vmax.f32 %v218_v52, 0.0  ;;  %v510_v18 = vpack.c.bf16 %v288_v62, %v286_v61 }
  0x3d   :  { %598 = vmatpush1.bf16.msra.mxu1 %v506_v33  ;;  %v85_v7 = vld [vmem:[%s3944_s0 + $0x118] sm:$0xff]  ;;  %v155_v8 = vld [vmem:[#allocation2 + $0x108] sm:$0xff]  ;;  %v292_v11 = vmax.f32 %v220_v53, 0.0  ;;  %v82_v12 = vld [vmem:[%s3944_s0 + $0x100] sm:$0xff]  ;;  %v222_v13 = vadd.f32 %v150_v63, %v78_v57  ;;  %v224_v14 = vadd.f32 %v152_v1, %v80_v58  ;;  %v513_v24 = vpack.c.bf16 %v293_v4, %v291_v3 }
  0x3e   :  { %599 = vmatprep.subr.bf16.mxu1 %v509_v46  ;;  %v157_v9 = vld [vmem:[#allocation2 + $0x118] sm:$0xff]  ;;  %v84_v15 = vld [vmem:[%s3944_s0 + $0x110] sm:$0xff]  ;;  %v154_v16 = vld [vmem:[#allocation2 + $0x100] sm:$0xff]  ;;  %v227_v19 = vadd.f32 %v155_v8, %v83_v2  ;;  %v295_v25 = vmax.f32 %v223_v5, 0.0  ;;  %v297_v26 = vmax.f32 %v225_v6, 0.0 }
  0x3f   :  { %v156_v17 = vld [vmem:[#allocation2 + $0x110] sm:$0xff]  ;;  %v229_v20 = vadd.f32 %v157_v9, %v85_v7  ;;  %v87_v21 = vld [vmem:[%s3944_s0 + $0x128] sm:$0xff]  ;;  %v89_v22 = vld [vmem:[%s3944_s0 + $0x138] sm:$0xff]  ;;  %v512_v30 = vpack.c.bf16 %v292_v11, %v290_v10  ;;  %v294_v34 = vmax.f32 %v222_v13, 0.0  ;;  %v296_v35 = vmax.f32 %v224_v14, 0.0 }
  0x40   :  { %v159_v23 = vld [vmem:[#allocation2 + $0x128] sm:$0xff]  ;;  %v161_v27 = vld [vmem:[#allocation2 + $0x138] sm:$0xff]  ;;  %v86_v28 = vld [vmem:[%s3944_s0 + $0x120] sm:$0xff]  ;;  %v226_v36 = vadd.f32 %v154_v16, %v82_v12  ;;  %v228_v37 = vadd.f32 %v156_v17, %v84_v15  ;;  %v299_v41 = vmax.f32 %v227_v19, 0.0  ;;  %v515_v45 = vpack.c.bf16 %v297_v26, %v295_v25 }
  0x41   :  { %600 = vmatpush1.bf16.msra.mxu1 %v508_v59  ;;  %v88_v29 = vld [vmem:[%s3944_s0 + $0x130] sm:$0xff]  ;;  %v158_v31 = vld [vmem:[#allocation2 + $0x120] sm:$0xff]  ;;  %v91_v33 = vld [vmem:[%s3944_s0 + $0x148] sm:$0xff]  ;;  %v301_v42 = vmax.f32 %v229_v20, 0.0  ;;  %v231_v43 = vadd.f32 %v159_v23, %v87_v21  ;;  %v233_v44 = vadd.f32 %v161_v27, %v89_v22  ;;  %v514_v54 = vpack.c.bf16 %v296_v35, %v294_v34 }
  0x42   :  { %601 = vmatprep.subr.bf16.mxu1 %v511_v60  ;;  %v160_v32 = vld [vmem:[#allocation2 + $0x130] sm:$0xff]  ;;  %v93_v38 = vld [vmem:[%s3944_s0 + $0x158] sm:$0xff]  ;;  %v163_v39 = vld [vmem:[#allocation2 + $0x148] sm:$0xff]  ;;  %v230_v46 = vadd.f32 %v158_v31, %v86_v28  ;;  %v298_v55 = vmax.f32 %v226_v36, 0.0  ;;  %v300_v57 = vmax.f32 %v228_v37, 0.0 }
  0x43   :  { %v165_v40 = vld [vmem:[#allocation2 + $0x158] sm:$0xff]  ;;  %v232_v47 = vadd.f32 %v160_v32, %v88_v29  ;;  %v90_v48 = vld [vmem:[%s3944_s0 + $0x140] sm:$0xff]  ;;  %v235_v49 = vadd.f32 %v163_v39, %v91_v33  ;;  %v92_v51 = vld [vmem:[%s3944_s0 + $0x150] sm:$0xff]  ;;  %v517_v56 = vpack.c.bf16 %v301_v42, %v299_v41  ;;  %v303_v58 = vmax.f32 %v231_v43, 0.0 }
  0x44   :  { %v237_v50 = vadd.f32 %v165_v40, %v93_v38  ;;  %v162_v52 = vld [vmem:[#allocation2 + $0x140] sm:$0xff]  ;;  %v164_v53 = vld [vmem:[#allocation2 + $0x150] sm:$0xff]  ;;  %v305_v59 = vmax.f32 %v233_v44, 0.0  ;;  %v95_v60 = vld [vmem:[%s3944_s0 + $0x168] sm:$0xff]  ;;  %v302_v62 = vmax.f32 %v230_v46, 0.0  ;;  %v516_v15 = vpack.c.bf16 %v300_v57, %v298_v55 }
  0x45   :  { %602 = vmatpush1.bf16.msra.mxu1 %v510_v18  ;;  %v167_v61 = vld [vmem:[#allocation2 + $0x168] sm:$0xff]  ;;  %v304_v63 = vmax.f32 %v232_v47, 0.0  ;;  %v234_v1 = vadd.f32 %v162_v52, %v90_v48  ;;  %v236_v2 = vadd.f32 %v164_v53, %v92_v51  ;;  %v97_v3 = vld [vmem:[%s3944_s0 + $0x178] sm:$0xff]  ;;  %v94_v5 = vld [vmem:[%s3944_s0 + $0x160] sm:$0xff]  ;;  %v307_v6 = vmax.f32 %v235_v49, 0.0 }
  0x46   :  { %603 = vmatprep.subr.bf16.mxu1 %v513_v24  ;;  %v169_v4 = vld [vmem:[#allocation2 + $0x178] sm:$0xff]  ;;  %v309_v7 = vmax.f32 %v237_v50, 0.0  ;;  %v96_v8 = vld [vmem:[%s3944_s0 + $0x170] sm:$0xff]  ;;  %v166_v9 = vld [vmem:[#allocation2 + $0x160] sm:$0xff]  ;;  %v2824_v11 = vadd.f32 %v167_v61, %v95_v60  ;;  %v519_v16 = vpack.c.bf16 %v305_v59, %v303_v58 }
  0x47   :  { %v168_v10 = vld [vmem:[#allocation2 + $0x170] sm:$0xff]  ;;  %v99_v12 = vld [vmem:[%s3944_s0 + $0x188] sm:$0xff]  ;;  %v101_v13 = vld [vmem:[%s3944_s0 + $0x198] sm:$0xff]  ;;  %v2832_v17 = vadd.f32 %v169_v4, %v97_v3  ;;  %v518_v21 = vpack.c.bf16 %v304_v63, %v302_v62  ;;  %v306_v22 = vmax.f32 %v234_v1, 0.0  ;;  %v308_v23 = vmax.f32 %v236_v2, 0.0 }
  0x48   :  { %v171_v14 = vld [vmem:[#allocation2 + $0x188] sm:$0xff]  ;;  %v173_v18 = vld [vmem:[#allocation2 + $0x198] sm:$0xff]  ;;  %v2840_v24 = vadd.f32 %v166_v9, %v94_v5  ;;  %v98_v25 = vld [vmem:[%s3944_s0 + $0x180] sm:$0xff]  ;;  %v521_v29 = vpack.c.bf16 %v309_v7, %v307_v6  ;;  %v311_v36 = vmax.f32 %v2824_v11, 0.0 }
  0x49   :  { %604 = vmatpush1.bf16.msra.mxu1 %v512_v30  ;;  %v115_v19 = vld [vmem:[%s3944_s0 + $0x208] sm:$0xff]  ;;  %v117_v20 = vld [vmem:[%s3944_s0 + $0x218] sm:$0xff]  ;;  %v114_v28 = vld [vmem:[%s3944_s0 + $0x200] sm:$0xff]  ;;  %v240_v30 = vadd.f32 %v168_v10, %v96_v8  ;;  %v2852_v37 = vadd.f32 %v171_v14, %v99_v12  ;;  %v313_v43 = vmax.f32 %v2832_v17, 0.0  ;;  %v245_v44 = vadd.f32 %v173_v18, %v101_v13 }
  0x4a   :  { %605 = vmatprep.subr.bf16.mxu1 %v515_v45  ;;  %v187_v26 = vld [vmem:[#allocation2 + $0x208] sm:$0xff]  ;;  %v189_v27 = vld [vmem:[#allocation2 + $0x218] sm:$0xff]  ;;  %v116_v33 = vld [vmem:[%s3944_s0 + $0x210] sm:$0xff]  ;;  %v520_v49 = vpack.c.bf16 %v308_v23, %v306_v22  ;;  %v310_v50 = vmax.f32 %v2840_v24, 0.0 }
  0x4b   :  { %v259_v31 = vadd.f32 %v187_v26, %v115_v19  ;;  %v261_v32 = vadd.f32 %v189_v27, %v117_v20  ;;  %v186_v34 = vld [vmem:[#allocation2 + $0x200] sm:$0xff]  ;;  %v188_v35 = vld [vmem:[#allocation2 + $0x210] sm:$0xff]  ;;  %v103_v45 = vld [vmem:[%s3944_s0 + $0x1a8] sm:$0xff]  ;;  %v315_v2 = vmax.f32 %v2852_v37, 0.0  ;;  %v317_v9 = vmax.f32 %v245_v44, 0.0 }
  0x4c   :  { %v100_v38 = vld [vmem:[%s3944_s0 + $0x190] sm:$0xff]  ;;  %v170_v39 = vld [vmem:[#allocation2 + $0x180] sm:$0xff]  ;;  %v258_v41 = vadd.f32 %v186_v34, %v114_v28  ;;  %v260_v42 = vadd.f32 %v188_v35, %v116_v33  ;;  %v105_v46 = vld [vmem:[%s3944_s0 + $0x1b8] sm:$0xff] }
  0x4d   :  { %606 = vmatpush1.bf16.msra.mxu1 %v514_v54  ;;  %v172_v40 = vld [vmem:[#allocation2 + $0x190] sm:$0xff]  ;;  %v331_v47 = vmax.f32 %v259_v31, 0.0  ;;  %v333_v48 = vmax.f32 %v261_v32, 0.0  ;;  %v175_v51 = vld [vmem:[#allocation2 + $0x1a8] sm:$0xff]  ;;  %v177_v52 = vld [vmem:[#allocation2 + $0x1b8] sm:$0xff]  ;;  %v2868_v57 = vadd.f32 %v170_v39, %v98_v25  ;;  %v525_v35 = vpack.c.bf16 %v317_v9, %v315_v2 }
  0x4e   :  { %607 = vmatprep.subr.bf16.mxu1 %v517_v56  ;;  %v330_v53 = vmax.f32 %v258_v41, 0.0  ;;  %v332_v54 = vmax.f32 %v260_v42, 0.0  ;;  %v119_v55 = vld [vmem:[%s3944_s0 + $0x228] sm:$0xff]  ;;  %v312_v56 = vmax.f32 %v240_v30, 0.0  ;;  %v2870_v58 = vadd.f32 %v172_v40, %v100_v38  ;;  %v102_v59 = vld [vmem:[%s3944_s0 + $0x1a0] sm:$0xff]  ;;  %v104_v60 = vld [vmem:[%s3944_s0 + $0x1b0] sm:$0xff] }
  0x4f   :  { %v533_v61 = vpack.c.bf16 %v333_v48, %v331_v47  ;;  %v121_v62 = vld [vmem:[%s3944_s0 + $0x238] sm:$0xff]  ;;  %v191_v63 = vld [vmem:[#allocation2 + $0x228] sm:$0xff]  ;;  %v118_v6 = vld [vmem:[%s3944_s0 + $0x220] sm:$0xff]  ;;  %v247_v10 = vadd.f32 %v175_v51, %v103_v45  ;;  %v249_v11 = vadd.f32 %v177_v52, %v105_v46  ;;  %v314_v23 = vmax.f32 %v2868_v57, 0.0 }
  0x50   :  { %v193_v1 = vld [vmem:[#allocation2 + $0x238] sm:$0xff]  ;;  %v532_v3 = vpack.c.bf16 %v332_v54, %v330_v53  ;;  %v263_v4 = vadd.f32 %v191_v63, %v119_v55  ;;  %v120_v7 = vld [vmem:[%s3944_s0 + $0x230] sm:$0xff]  ;;  %v190_v8 = vld [vmem:[#allocation2 + $0x220] sm:$0xff]  ;;  %v316_v24 = vmax.f32 %v2870_v58, 0.0 }
  0x51   :  { %608 = vmatpush1.bf16.msra.mxu1 %v516_v15  ;;  %v265_v5 = vadd.f32 %v193_v1, %v121_v62  ;;  %v174_v12 = vld [vmem:[#allocation2 + $0x1a0] sm:$0xff]  ;;  %v176_v13 = vld [vmem:[#allocation2 + $0x1b0] sm:$0xff]  ;;  %804 = vmatprep.subr.bf16.mxu0 %v533_v61  ;;  %v262_v15 = vadd.f32 %v190_v8, %v118_v6  ;;  %v107_v17 = vld [vmem:[%s3944_s0 + $0x1c8] sm:$0xff]  ;;  %v321_v37 = vmax.f32 %v249_v11, 0.0 }
  0x52   :  { %609 = vmatprep.subr.bf16.mxu1 %v519_v16  ;;  %v192_v14 = vld [vmem:[#allocation2 + $0x230] sm:$0xff]  ;;  %v523_v16 = vpack.c.bf16 %v313_v43, %v311_v36  ;;  %805 = vmatpush1.bf16.msra.mxu0 %v532_v3  ;;  %v179_v18 = vld [vmem:[#allocation2 + $0x1c8] sm:$0xff]  ;;  %v335_v19 = vmax.f32 %v263_v4, 0.0  ;;  %v109_v25 = vld [vmem:[%s3944_s0 + $0x1d8] sm:$0xff]  ;;  %v246_v28 = vadd.f32 %v174_v12, %v102_v59  ;;  %v319_v36 = vmax.f32 %v247_v10, 0.0 }
  0x53   :  { %v337_v20 = vmax.f32 %v265_v5, 0.0  ;;  %v264_v22 = vadd.f32 %v192_v14, %v120_v7  ;;  %v181_v26 = vld [vmem:[#allocation2 + $0x1d8] sm:$0xff]  ;;  %v334_v27 = vmax.f32 %v262_v15, 0.0  ;;  %v340_v32 = vld [vmem:[#allocation5 + $0x10] sm:$0xff]  ;;  %v343_v33 = vld [vmem:[#allocation5 + $0x28] sm:$0xff]  ;;  %v251_v38 = vadd.f32 %v179_v18, %v107_v17 }
  0x54   :  { %v339_v34 = vld [vmem:[#allocation5 + $0x8] sm:$0xff]  ;;  %v106_v39 = vld [vmem:[%s3944_s0 + $0x1c0] sm:$0xff]  ;;  %v108_v40 = vld [vmem:[%s3944_s0 + $0x1d0] sm:$0xff]  ;;  %v253_v42 = vadd.f32 %v181_v26, %v109_v25  ;;  %v448_v51 = vpack.c.bf16 %v343_v33, %v340_v32  ;;  %v318_v52 = vmax.f32 %v246_v28, 0.0  ;;  %v524_v54 = vpack.c.bf16 %v316_v24, %v314_v23 }
  0x55   :  { %610 = vmatpush1.bf16.msra.mxu1 %v518_v21  ;;  %v522_v21 = vpack.c.bf16 %v312_v56, %v310_v50  ;;  %v535_v30 = vpack.c.bf16 %v337_v20, %v335_v19  ;;  %v336_v31 = vmax.f32 %v264_v22, 0.0  ;;  %v342_v41 = vld [vmem:[#allocation5 + $0x20] sm:$0xff]  ;;  %v180_v44 = vld [vmem:[#allocation2 + $0x1d0] sm:$0xff]  ;;  %v111_v46 = vld [vmem:[%s3944_s0 + $0x1e8] sm:$0xff]  ;;  %v527_v55 = vpack.c.bf16 %v321_v37, %v319_v36 }
  0x56   :  { %611 = vmatprep.subr.bf16.mxu1 %v521_v29  ;;  %v248_v29 = vadd.f32 %v176_v13, %v104_v60  ;;  %v178_v43 = vld [vmem:[#allocation2 + $0x1c0] sm:$0xff]  ;;  %v447_v47 = vpack.c.bf16 %v342_v41, %v339_v34  ;;  %v113_v48 = vld [vmem:[%s3944_s0 + $0x1f8] sm:$0xff]  ;;  %v252_v57 = vadd.f32 %v180_v44, %v108_v40  ;;  %v323_v59 = vmax.f32 %v251_v38, 0.0  ;;  %v112_v63 = vld [vmem:[%s3944_s0 + $0x1f0] sm:$0xff] }
  0x57   :  { %806 = vmatprep.subr.bf16.mxu0 %v535_v30  ;;  %v534_v45 = vpack.c.bf16 %v336_v31, %v334_v27  ;;  %v185_v50 = vld [vmem:[#allocation2 + $0x1f8] sm:$0xff]  ;;  %v250_v56 = vadd.f32 %v178_v43, %v106_v39  ;;  %v110_v58 = vld [vmem:[%s3944_s0 + $0x1e0] sm:$0xff]  ;;  %v325_v60 = vmax.f32 %v253_v42, 0.0  ;;  %v184_v2 = vld [vmem:[#allocation2 + $0x1f0] sm:$0xff] }
  0x58   :  { %v320_v53 = vmax.f32 %v248_v29, 0.0  ;;  %623 = vmatprep.mubr.bf16.mxu1 %v447_v47  ;;  %v257_v62 = vadd.f32 %v185_v50, %v113_v48  ;;  %v182_v1 = vld [vmem:[#allocation2 + $0x1e0] sm:$0xff]  ;;  %v349_v5 = vld [vmem:[#allocation5 + $0x58] sm:$0xff]  ;;  %v324_v7 = vmax.f32 %v252_v57, 0.0  ;;  %v256_v9 = vadd.f32 %v184_v2, %v112_v63  ;;  %v352_v18 = vld [vmem:[#allocation5 + $0x70] sm:$0xff] }
  0x59   :  { %612 = vmatpush1.bf16.msra.mxu1 %v520_v49  ;;  %v183_v49 = vld [vmem:[#allocation2 + $0x1e8] sm:$0xff]  ;;  %807 = vmatpush1.bf16.msra.mxu0 %v534_v45  ;;  %v346_v4 = vld [vmem:[#allocation5 + $0x40] sm:$0xff]  ;;  %v322_v6 = vmax.f32 %v250_v56, 0.0  ;;  %v254_v8 = vadd.f32 %v182_v1, %v110_v58  ;;  %v529_v10 = vpack.c.bf16 %v325_v60, %v323_v59  ;;  %v345_v23 = vld [vmem:[#allocation5 + $0x38] sm:$0xff] }
  0x5a   :  { %613 = vmatprep.subr.bf16.mxu1 %v523_v16  ;;  %v255_v61 = vadd.f32 %v183_v49, %v111_v46  ;;  %v526_v3 = vpack.c.bf16 %v320_v53, %v318_v52  ;;  %v329_v12 = vmax.f32 %v257_v62, 0.0  ;;  %v451_v13 = vpack.c.bf16 %v349_v5, %v346_v4  ;;  %v355_v19 = vld [vmem:[#allocation5 + $0x88] sm:$0xff]  ;;  %v338_v22 = vld [vmem:[#allocation5] sm:$0xff]  ;;  %v348_v24 = vld [vmem:[#allocation5 + $0x50] sm:$0xff] }
  0x5b   :  { %v528_v14 = vpack.c.bf16 %v324_v7, %v322_v6  ;;  %v326_v15 = vmax.f32 %v254_v8, 0.0  ;;  %v328_v16 = vmax.f32 %v256_v9, 0.0  ;;  %v454_v25 = vpack.c.bf16 %v355_v19, %v352_v18  ;;  %v358_v28 = vld [vmem:[#allocation5 + $0xa0] sm:$0xff]  ;;  %v361_v29 = vld [vmem:[#allocation5 + $0xb8] sm:$0xff]  ;;  %v344_v30 = vld [vmem:[#allocation5 + $0x30] sm:$0xff] }
  0x5c   :  { %2368 = vmatmul.mubr.msk.bf16.vlgmr.msra.gmra.mrb[0].mxu0 %vm536_vm0, %v448_v51  ;;  %v327_v11 = vmax.f32 %v255_v61, 0.0  ;;  %v450_v27 = vpack.c.bf16 %v348_v24, %v345_v23  ;;  %v347_v31 = vld [vmem:[#allocation5 + $0x48] sm:$0xff]  ;;  %v354_v33 = vld [vmem:[#allocation5 + $0x80] sm:$0xff]  ;;  %v457_v34 = vpack.c.bf16 %v361_v29, %v358_v28  ;;  %v364_v37 = vld [vmem:[#allocation5 + $0xd0] sm:$0xff] }
  0x5d   :  { %614 = vmatpush1.bf16.msra.mxu1 %v522_v21  ;;  %846 = vmatprep.mubr.bf16.mxu0 %v2618_v0  ;;  %v530_v20 = vpack.c.bf16 %v328_v16, %v326_v15  ;;  %v341_v21 = vld [vmem:[#allocation5 + $0x18] sm:$0xff]  ;;  %v351_v32 = vld [vmem:[#allocation5 + $0x68] sm:$0xff]  ;;  %v350_v39 = vld [vmem:[#allocation5 + $0x60] sm:$0xff] }
  0x5e   :  { %615 = vmatprep.subr.bf16.mxu1 %v525_v35  ;;  %v531_v17 = vpack.c.bf16 %v329_v12, %v327_v11  ;;  %v446_v26 = vpack.c.bf16 %v341_v21, %v338_v22  ;;  %v449_v35 = vpack.c.bf16 %v347_v31, %v344_v30  ;;  %v453_v36 = vpack.c.bf16 %v354_v33, %v351_v32  ;;  %v367_v38 = vld [vmem:[#allocation5 + $0xe8] sm:$0xff]  ;;  %v353_v40 = vld [vmem:[#allocation5 + $0x78] sm:$0xff]  ;;  %v360_v42 = vld [vmem:[#allocation5 + $0xb0] sm:$0xff] }
  0x5f   :  { %v357_v41 = vld [vmem:[#allocation5 + $0x98] sm:$0xff]  ;;  %v460_v43 = vpack.c.bf16 %v367_v38, %v364_v37  ;;  %v452_v44 = vpack.c.bf16 %v353_v40, %v350_v39  ;;  %v370_v46 = vld [vmem:[#allocation5 + $0x100] sm:$0xff]  ;;  %v356_v48 = vld [vmem:[#allocation5 + $0x90] sm:$0xff] }
  0x60   :  { %v456_v45 = vpack.c.bf16 %v360_v42, %v357_v41  ;;  %v373_v47 = vld [vmem:[#allocation5 + $0x118] sm:$0xff]  ;;  %v359_v49 = vld [vmem:[#allocation5 + $0xa8] sm:$0xff]  ;;  %v366_v51 = vld [vmem:[#allocation5 + $0xe0] sm:$0xff] }
  0x61   :  { %616 = vmatpush1.bf16.msra.mxu1 %v524_v54  ;;  %v363_v50 = vld [vmem:[#allocation5 + $0xc8] sm:$0xff]  ;;  %v463_v52 = vpack.c.bf16 %v373_v47, %v370_v46  ;;  %v455_v53 = vpack.c.bf16 %v359_v49, %v356_v48  ;;  %v362_v57 = vld [vmem:[#allocation5 + $0xc0] sm:$0xff]  ;;  %v365_v58 = vld [vmem:[#allocation5 + $0xd8] sm:$0xff] }
  0x62   :  { %617 = vmatprep.subr.bf16.mxu1 %v527_v55  ;;  %v459_v54 = vpack.c.bf16 %v366_v51, %v363_v50  ;;  %v376_v55 = vld [vmem:[#allocation5 + $0x130] sm:$0xff]  ;;  %v379_v56 = vld [vmem:[#allocation5 + $0x148] sm:$0xff]  ;;  %v369_v59 = vld [vmem:[#allocation5 + $0xf8] sm:$0xff]  ;;  %v458_v62 = vpack.c.bf16 %v365_v58, %v362_v57 }
  0x63   :  { %v372_v60 = vld [vmem:[#allocation5 + $0x110] sm:$0xff]  ;;  %v466_v61 = vpack.c.bf16 %v379_v56, %v376_v55  ;;  %v382_v1 = vld [vmem:[#allocation5 + $0x160] sm:$0xff]  ;;  %v385_v2 = vld [vmem:[#allocation5 + $0x178] sm:$0xff] }
  0x64   :  { %2369 = vmatmul.mubr.msk.bf16.gmra.mrb[4].mxu0 %vm536_vm0, %v451_v13  ;;  %v462_v63 = vpack.c.bf16 %v372_v60, %v369_v59  ;;  %v371_v4 = vld [vmem:[#allocation5 + $0x108] sm:$0xff]  ;;  %v378_v6 = vld [vmem:[#allocation5 + $0x140] sm:$0xff]  ;;  %v469_v7 = vpack.c.bf16 %v385_v2, %v382_v1  ;;  %v377_v13 = vld [vmem:[#allocation5 + $0x138] sm:$0xff] }
  0x65   :  { %618 = vmatpush1.bf16.msra.mxu1 %v526_v3  ;;  %856 = vmatprep.mubr.bf16.mxu0 %v2618_v0  ;;  %v368_v3 = vld [vmem:[#allocation5 + $0xf0] sm:$0xff]  ;;  %v375_v5 = vld [vmem:[#allocation5 + $0x128] sm:$0xff]  ;;  %v374_v12 = vld [vmem:[#allocation5 + $0x120] sm:$0xff] }
  0x66   :  { %619 = vmatprep.subr.bf16.mxu1 %v529_v10  ;;  %v461_v8 = vpack.c.bf16 %v371_v4, %v368_v3  ;;  %v465_v9 = vpack.c.bf16 %v378_v6, %v375_v5  ;;  %v388_v10 = vld [vmem:[#allocation5 + $0x190] sm:$0xff]  ;;  %v391_v11 = vld [vmem:[#allocation5 + $0x1a8] sm:$0xff]  ;;  %v394_v19 = vld [vmem:[#allocation5 + $0x1c0] sm:$0xff] }
  0x67   :  { %v384_v15 = vld [vmem:[#allocation5 + $0x170] sm:$0xff]  ;;  %v472_v16 = vpack.c.bf16 %v391_v11, %v388_v10  ;;  %v383_v21 = vld [vmem:[#allocation5 + $0x168] sm:$0xff]  ;;  %v390_v24 = vld [vmem:[#allocation5 + $0x1a0] sm:$0xff] }
  0x68   :  { %v380_v22 = vld [vmem:[#allocation5 + $0x150] sm:$0xff]  ;;  %v387_v23 = vld [vmem:[#allocation5 + $0x188] sm:$0xff]  ;;  %v386_v30 = vld [vmem:[#allocation5 + $0x180] sm:$0xff] }
  0x69   :  { %620 = vmatpush1.bf16.msra.mxu1 %v528_v14  ;;  %v381_v14 = vld [vmem:[#allocation5 + $0x158] sm:$0xff]  ;;  %v400_v28 = vld [vmem:[#allocation5 + $0x1f0] sm:$0xff]  ;;  %v403_v29 = vld [vmem:[#allocation5 + $0x208] sm:$0xff] }
  0x6a   :  { %621 = vmatprep.subr.bf16.mxu1 %v531_v17  ;;  %v464_v17 = vpack.c.bf16 %v377_v13, %v374_v12  ;;  %v468_v18 = vpack.c.bf16 %v384_v15, %v381_v14  ;;  %v389_v31 = vld [vmem:[#allocation5 + $0x198] sm:$0xff]  ;;  %v396_v33 = vld [vmem:[#allocation5 + $0x1d0] sm:$0xff]  ;;  %v406_v37 = vld [vmem:[#allocation5 + $0x220] sm:$0xff] }
  0x6b   :  { %v393_v32 = vld [vmem:[#allocation5 + $0x1b8] sm:$0xff]  ;;  %v392_v39 = vld [vmem:[#allocation5 + $0x1b0] sm:$0xff]  ;;  %v395_v40 = vld [vmem:[#allocation5 + $0x1c8] sm:$0xff] }
  0x6c   :  { %2370 = vmatmul.mubr.msk.bf16.gmra.mrb[8].mxu0 %vm536_vm0, %v454_v25  ;;  %v409_v38 = vld [vmem:[#allocation5 + $0x238] sm:$0xff]  ;;  %v399_v41 = vld [vmem:[#allocation5 + $0x1e8] sm:$0xff]  ;;  %v402_v42 = vld [vmem:[#allocation5 + $0x200] sm:$0xff] }
  0x6d   :  { %622 = vmatpush1.bf16.msra.mxu1 %v530_v20  ;;  %866 = vmatprep.mubr.bf16.mxu0 %v2618_v0  ;;  %v397_v20 = vld [vmem:[#allocation5 + $0x1d8] sm:$0xff]  ;;  %v412_v46 = vld [vmem:[#allocation5 + $0x250] sm:$0xff]  ;;  %v415_v47 = vld [vmem:[#allocation5 + $0x268] sm:$0xff] }
  0x6e   :  { %v475_v25 = vpack.c.bf16 %v397_v20, %v394_v19  ;;  %v398_v48 = vld [vmem:[#allocation5 + $0x1e0] sm:$0xff]  ;;  %v401_v49 = vld [vmem:[#allocation5 + $0x1f8] sm:$0xff]  ;;  %v408_v51 = vld [vmem:[#allocation5 + $0x230] sm:$0xff] }
  0x6f   :  { %v405_v50 = vld [vmem:[#allocation5 + $0x218] sm:$0xff]  ;;  %v418_v55 = vld [vmem:[#allocation5 + $0x280] sm:$0xff]  ;;  %v404_v57 = vld [vmem:[#allocation5 + $0x210] sm:$0xff] }
  0x70   :  { %624 = vmatmul.mubr.bf16.vlgmr.msra.gmra.mrb[0].mxu1 %v446_v26  ;;  %v467_v26 = vpack.c.bf16 %v383_v21, %v380_v22  ;;  %v421_v56 = vld [vmem:[#allocation5 + $0x298] sm:$0xff]  ;;  %v407_v58 = vld [vmem:[#allocation5 + $0x228] sm:$0xff]  ;;  %v414_v60 = vld [vmem:[#allocation5 + $0x260] sm:$0xff] }
  0x71   :  { %633 = vmatprep.mubr.bf16.mxu1 %v450_v27  ;;  %v471_v27 = vpack.c.bf16 %v390_v24, %v387_v23  ;;  %v411_v59 = vld [vmem:[#allocation5 + $0x248] sm:$0xff]  ;;  %v424_v1 = vld [vmem:[#allocation5 + $0x2b0] sm:$0xff]  ;;  %v410_v3 = vld [vmem:[#allocation5 + $0x240] sm:$0xff] }
  0x72   :  { %v427_v2 = vld [vmem:[#allocation5 + $0x2c8] sm:$0xff]  ;;  %v413_v4 = vld [vmem:[#allocation5 + $0x258] sm:$0xff]  ;;  %v420_v6 = vld [vmem:[#allocation5 + $0x290] sm:$0xff] }
  0x73   :  { %v417_v5 = vld [vmem:[#allocation5 + $0x278] sm:$0xff]  ;;  %v430_v10 = vld [vmem:[#allocation5 + $0x2e0] sm:$0xff]  ;;  %v416_v12 = vld [vmem:[#allocation5 + $0x270] sm:$0xff] }
  0x74   :  { %2371 = vmatmul.mubr.msk.bf16.gmra.mrb[12].mxu0 %vm536_vm0, %v457_v34  ;;  %v478_v34 = vpack.c.bf16 %v403_v29, %v400_v28  ;;  %v433_v11 = vld [vmem:[#allocation5 + $0x2f8] sm:$0xff]  ;;  %v419_v13 = vld [vmem:[#allocation5 + $0x288] sm:$0xff]  ;;  %v426_v15 = vld [vmem:[#allocation5 + $0x2c0] sm:$0xff] }
  0x75   :  { %876 = vmatprep.mubr.bf16.mxu0 %v2618_v0  ;;  %v423_v14 = vld [vmem:[#allocation5 + $0x2a8] sm:$0xff]  ;;  %v436_v19 = vld [vmem:[#allocation5 + $0x310] sm:$0xff]  ;;  %v422_v22 = vld [vmem:[#allocation5 + $0x2a0] sm:$0xff] }
  0x76   :  { %v439_v20 = vld [vmem:[#allocation5 + $0x328] sm:$0xff]  ;;  %v425_v21 = vld [vmem:[#allocation5 + $0x2b8] sm:$0xff]  ;;  %v432_v24 = vld [vmem:[#allocation5 + $0x2f0] sm:$0xff] }
  0x77   :  { %v429_v23 = vld [vmem:[#allocation5 + $0x2d8] sm:$0xff]  ;;  %v442_v28 = vld [vmem:[#allocation5 + $0x340] sm:$0xff] }
  0x78   :  { %634 = vmatmul.mubr.bf16.gmra.mrb[4].mxu1 %v449_v35  ;;  %v470_v35 = vpack.c.bf16 %v389_v31, %v386_v30  ;;  %v445_v29 = vld [vmem:[#allocation5 + $0x358] sm:$0xff]  ;;  %v428_v30 = vld [vmem:[#allocation5 + $0x2d0] sm:$0xff]  ;;  %v431_v31 = vld [vmem:[#allocation5 + $0x2e8] sm:$0xff] }
  0x79   :  { %643 = vmatprep.mubr.bf16.mxu1 %v453_v36  ;;  %v474_v36 = vpack.c.bf16 %v396_v33, %v393_v32  ;;  %v435_v32 = vld [vmem:[#allocation5 + $0x308] sm:$0xff]  ;;  %v438_v33 = vld [vmem:[#allocation5 + $0x320] sm:$0xff] }
  0x7c   :  { %2372 = vmatmul.mubr.msk.bf16.gmra.mrb[16].mxu0 %vm536_vm0, %v460_v43  ;;  %v481_v43 = vpack.c.bf16 %v409_v38, %v406_v37  ;;  %v434_v37 = vld [vmem:[#allocation5 + $0x300] sm:$0xff]  ;;  %v437_v38 = vld [vmem:[#allocation5 + $0x318] sm:$0xff] }
  0x7d   :  { %886 = vmatprep.mubr.bf16.mxu0 %v2618_v0 }
  0x80   :  { %644 = vmatmul.mubr.bf16.gmra.mrb[8].mxu1 %v452_v44  ;;  %v473_v44 = vpack.c.bf16 %v395_v40, %v392_v39  ;;  %v441_v39 = vld [vmem:[#allocation5 + $0x338] sm:$0xff]  ;;  %v444_v40 = vld [vmem:[#allocation5 + $0x350] sm:$0xff] }
  0x81   :  { %653 = vmatprep.mubr.bf16.mxu1 %v456_v45  ;;  %v477_v45 = vpack.c.bf16 %v402_v42, %v399_v41  ;;  %v494_v41 = vpack.c.bf16 %v437_v38, %v434_v37  ;;  %v440_v42 = vld [vmem:[#allocation5 + $0x330] sm:$0xff] }
  0x84   :  { %2373 = vmatmul.mubr.msk.bf16.gmra.mrb[20].mxu0 %vm536_vm0, %v463_v52  ;;  %v484_v52 = vpack.c.bf16 %v415_v47, %v412_v46 }
  0x85   :  { %896 = vmatprep.mubr.bf16.mxu0 %v2618_v0 }
  0x88   :  { %654 = vmatmul.mubr.bf16.gmra.mrb[12].mxu1 %v455_v53  ;;  %v476_v53 = vpack.c.bf16 %v401_v49, %v398_v48 }
  0x89   :  { %663 = vmatprep.mubr.bf16.mxu1 %v459_v54  ;;  %v480_v54 = vpack.c.bf16 %v408_v51, %v405_v50 }
  0x8c   :  { %2374 = vmatmul.mubr.msk.bf16.gmra.mrb[24].mxu0 %vm536_vm0, %v466_v61  ;;  %v487_v61 = vpack.c.bf16 %v421_v56, %v418_v55 }
  0x8d   :  { %906 = vmatprep.mubr.bf16.mxu0 %v2618_v0 }
  0x90   :  { %664 = vmatmul.mubr.bf16.gmra.mrb[16].mxu1 %v458_v62  ;;  %v479_v62 = vpack.c.bf16 %v407_v58, %v404_v57 }
  0x91   :  { %673 = vmatprep.mubr.bf16.mxu1 %v462_v63  ;;  %v483_v63 = vpack.c.bf16 %v414_v60, %v411_v59 }
  0x94   :  { %2375 = vmatmul.mubr.msk.bf16.gmra.mrb[28].mxu0 %vm536_vm0, %v469_v7  ;;  %v490_v7 = vpack.c.bf16 %v427_v2, %v424_v1 }
  0x95   :  { %916 = vmatprep.mubr.bf16.mxu0 %v2618_v0 }
  0x98   :  { %674 = vmatmul.mubr.bf16.gmra.mrb[20].mxu1 %v461_v8  ;;  %v482_v8 = vpack.c.bf16 %v413_v4, %v410_v3 }
  0x99   :  { %683 = vmatprep.mubr.bf16.mxu1 %v465_v9  ;;  %v486_v9 = vpack.c.bf16 %v420_v6, %v417_v5 }
  0x9c   :  { %2376 = vmatmul.mubr.msk.bf16.gmra.mrb[32].mxu0 %vm536_vm0, %v472_v16  ;;  %v493_v16 = vpack.c.bf16 %v433_v11, %v430_v10 }
  0x9d   :  { %926 = vmatprep.mubr.bf16.mxu0 %v2618_v0 }
  0xa0   :  { %684 = vmatmul.mubr.bf16.gmra.mrb[24].mxu1 %v464_v17  ;;  %v485_v17 = vpack.c.bf16 %v419_v13, %v416_v12 }
  0xa1   :  { %693 = vmatprep.mubr.bf16.mxu1 %v468_v18  ;;  %v489_v18 = vpack.c.bf16 %v426_v15, %v423_v14 }
  0xa4   :  { %2377 = vmatmul.mubr.msk.bf16.gmra.mrb[36].mxu0 %vm536_vm0, %v475_v25  ;;  %v496_v25 = vpack.c.bf16 %v439_v20, %v436_v19 }
  0xa5   :  { %936 = vmatprep.mubr.bf16.mxu0 %v2618_v0 }
  0xa8   :  { %694 = vmatmul.mubr.bf16.gmra.mrb[28].mxu1 %v467_v26  ;;  %v488_v26 = vpack.c.bf16 %v425_v21, %v422_v22 }
  0xa9   :  { %703 = vmatprep.mubr.bf16.mxu1 %v471_v27  ;;  %v492_v27 = vpack.c.bf16 %v432_v24, %v429_v23 }
  0xac   :  { %2378 = vmatmul.mubr.msk.bf16.gmra.mrb[40].mxu0 %vm536_vm0, %v478_v34  ;;  %v499_v34 = vpack.c.bf16 %v445_v29, %v442_v28 }
  0xad   :  { %946 = vmatprep.mubr.bf16.mxu0 %v2618_v0 }
  0xb0   :  { %704 = vmatmul.mubr.bf16.gmra.mrb[32].mxu1 %v470_v35  ;;  %v491_v35 = vpack.c.bf16 %v431_v31, %v428_v30 }
  0xb1   :  { %713 = vmatprep.mubr.bf16.mxu1 %v474_v36  ;;  %v495_v36 = vpack.c.bf16 %v438_v33, %v435_v32 }
  0xb4   :  { %2379 = vmatmul.mubr.msk.bf16.gmra.mrb[44].mxu0 %vm536_vm0, %v481_v43  ;;  %v443_v43 = vld [vmem:[#allocation5 + $0x348] sm:$0xff] }
  0xb5   :  { %956 = vmatprep.mubr.bf16.mxu0 %v2618_v0 }
  0xb8   :  { %714 = vmatmul.mubr.bf16.gmra.mrb[36].mxu1 %v473_v44  ;;  %v497_v44 = vpack.c.bf16 %v443_v43, %v440_v42 }
  0xb9   :  { %723 = vmatprep.mubr.bf16.mxu1 %v477_v45 }
  0xbc   :  { %2380 = vmatmul.mubr.msk.bf16.gmra.mrb[48].mxu0 %vm536_vm0, %v484_v52 }
  0xbd   :  { %966 = vmatprep.mubr.bf16.mxu0 %v2618_v0 }
  0xc0   :  { %724 = vmatmul.mubr.bf16.gmra.mrb[40].mxu1 %v476_v53 }
  0xc1   :  { %733 = vmatprep.mubr.bf16.mxu1 %v480_v54 }
  0xc4   :  { %2381 = vmatmul.mubr.msk.bf16.gmra.mrb[52].mxu0 %vm536_vm0, %v487_v61 }
  0xc5   :  { %976 = vmatprep.mubr.bf16.mxu0 %v2618_v0 }
  0xc8   :  { %734 = vmatmul.mubr.bf16.gmra.mrb[44].mxu1 %v479_v62 }
  0xc9   :  { %743 = vmatprep.mubr.bf16.mxu1 %v483_v63 }
  0xcc   :  { %2382 = vmatmul.mubr.msk.bf16.gmra.mrb[56].mxu0 %vm536_vm0, %v490_v7 }
  0xcd   :  { %986 = vmatprep.mubr.bf16.mxu0 %v2618_v0 }
  0xd0   :  { %744 = vmatmul.mubr.bf16.gmra.mrb[48].mxu1 %v482_v8 }
  0xd1   :  { %753 = vmatprep.mubr.bf16.mxu1 %v486_v9 }
  0xd4   :  { %2383 = vmatmul.mubr.msk.bf16.gmra.mrb[60].mxu0 %vm536_vm0, %v493_v16 }
  0xd5   :  { %996 = vmatprep.mubr.bf16.mxu0 %v2618_v0 }
  0xd8   :  { %754 = vmatmul.mubr.bf16.gmra.mrb[52].mxu1 %v485_v17 }
  0xd9   :  { %763 = vmatprep.mubr.bf16.mxu1 %v489_v18 }
  0xdc   :  { %2384 = vmatmul.mubr.msk.bf16.gmra.mrb[64].mxu0 %vm536_vm0, %v496_v25 }
  0xdd   :  { %1006 = vmatprep.mubr.bf16.mxu0 %v2618_v0  ;;  %v498_v0 = vpack.c.bf16 %v444_v40, %v441_v39 }
  0xe0   :  { %764 = vmatmul.mubr.bf16.gmra.mrb[56].mxu1 %v488_v26 }
  0xe1   :  { %773 = vmatprep.mubr.bf16.mxu1 %v492_v27 }
  0xe4   :  { %2385 = vmatmul.mubr.msk.bf16.gmra.mrb[68].mxu0 %vm536_vm0, %v499_v34 }
  0xe8   :  { %774 = vmatmul.mubr.bf16.gmra.mrb[60].mxu1 %v491_v35 }
  0xe9   :  { %783 = vmatprep.mubr.bf16.mxu1 %v495_v36 }
  0xf0   :  { %784 = vmatmul.mubr.bf16.gmra.mrb[64].mxu1 %v494_v41 }
  0xf1   :  { %793 = vmatprep.mubr.bf16.mxu1 %v498_v0 }
  0xf8   :  { %794 = vmatmul.mubr.bf16.gmra.mrb[68].mxu1 %v497_v44 }
 0x12f   :  { %v838_v45 = vpop.f32.mrb[0].mxu0 }
 0x130   :  { %v840_v46 = vpop.f32.mrb[1].mxu0 }
 0x131   :  { %v842_v47 = vpop.f32.mrb[2].mxu0 }
 0x132   :  { %v844_v48 = vpop.f32.mrb[3].mxu0 }
 0x137   :  { %v848_v49 = vpop.f32.mrb[4].mxu0 }
 0x138   :  { %v850_v50 = vpop.f32.mrb[5].mxu0 }
 0x139   :  { %v852_v51 = vpop.f32.mrb[6].mxu0 }
 0x13a   :  { %v854_v52 = vpop.f32.mrb[7].mxu0 }
 0x13f   :  { %v858_v53 = vpop.f32.mrb[8].mxu0 }
 0x140   :  { %v860_v55 = vpop.f32.mrb[9].mxu0 }
 0x141   :  { %v862_v58 = vpop.f32.mrb[10].mxu0 }
 0x142   :  { %v864_v61 = vpop.f32.mrb[11].mxu0 }
 0x143   :  { %v625_v54 = vpop.f32.mrb[0].mxu1 }
 0x144   :  { %v2949_v56 = vadd.f32 %v838_v45, %v625_v54  ;;  %v627_v57 = vpop.f32.mrb[1].mxu1 }
 0x145   :  { %v2951_v59 = vadd.f32 %v840_v46, %v627_v57  ;;  %v629_v60 = vpop.f32.mrb[2].mxu1 }
 0x146   :  { %v2953_v62 = vadd.f32 %v842_v47, %v629_v60  ;;  %v631_v63 = vpop.f32.mrb[3].mxu1  ;;  %v1162_v23 = vmul.f32 %v2949_v56, %v2949_v56 }
 0x147   :  { %v2955_v1 = vadd.f32 %v844_v48, %v631_v63  ;;  %v1018_v2 = vsel %vm1017_vm1, %v2951_v59, 0.0  ;;  %v1163_v6 = vmul.f32 %v2951_v59, %v2951_v59  ;;  %v2968_v8 = vpop.f32.mrb[12].mxu0 }
 0x148   :  { %v1019_v3 = vadd.f32 %v1018_v2, %v2949_v56  ;;  %v1164_v7 = vmul.f32 %v2953_v62, %v2953_v62  ;;  %v2971_v11 = vpop.f32.mrb[13].mxu0 }
 0x149   :  { %v1165_v4 = vmul.f32 %v2955_v1, %v2955_v1  ;;  %v1022_v5 = vsel %vm1017_vm1, %v2955_v1, 0.0  ;;  %v2976_v16 = vpop.f32.mrb[14].mxu0  ;;  %v1234_v19 = vsel %vm1017_vm1, %v1163_v6, 0.0 }
 0x14a   :  { %1020 = vadd.xlane.f32.xlu0 %v1019_v3  ;;  %v1023_v15 = vadd.f32 %v1022_v5, %v2953_v62  ;;  %v2981_v20 = vpop.f32.mrb[15].mxu0  ;;  %v1235_v28 = vadd.f32 %v1234_v19, %v1162_v23 }
 0x14b   :  { %v635_v9 = vpop.f32.mrb[4].mxu1  ;;  %v1238_v10 = vsel %vm1017_vm1, %v1165_v4, 0.0 }
 0x14c   :  { %v2973_v12 = vadd.f32 %v848_v49, %v635_v9  ;;  %v637_v13 = vpop.f32.mrb[5].mxu1  ;;  %v1239_v14 = vadd.f32 %v1238_v10, %v1164_v7 }
 0x14d   :  { %v2978_v17 = vadd.f32 %v850_v50, %v637_v13  ;;  %v639_v18 = vpop.f32.mrb[6].mxu1 }
 0x14e   :  { %v2983_v22 = vadd.f32 %v852_v51, %v639_v18  ;;  %1240 = vadd.xlane.f32.xlu1 %v1239_v14  ;;  %1024 = vadd.xlane.f32.xlu0 %v1023_v15  ;;  %v641_v21 = vpop.f32.mrb[7].mxu1  ;;  %v1166_v24 = vmul.f32 %v2973_v12, %v2973_v12 }
 0x14f   :  { %v2989_v25 = vadd.f32 %v854_v52, %v641_v21  ;;  %v1026_v26 = vsel %vm1017_vm1, %v2978_v17, 0.0  ;;  %v1167_v27 = vmul.f32 %v2978_v17, %v2978_v17  ;;  %v878_v34 = vpop.f32.mrb[16].mxu0 }
 0x150   :  { %v1027_v29 = vadd.f32 %v1026_v26, %v2973_v12  ;;  %v3001_v36 = vpop.f32.mrb[17].mxu0  ;;  %v1168_v40 = vmul.f32 %v2983_v22, %v2983_v22 }
 0x151   :  { %v1242_v30 = vsel %vm1017_vm1, %v1167_v27, 0.0  ;;  %v1030_v31 = vsel %vm1017_vm1, %v2989_v25, 0.0  ;;  %v1169_v32 = vmul.f32 %v2989_v25, %v2989_v25  ;;  %v3008_v41 = vpop.f32.mrb[18].mxu0 }
 0x152   :  { %1236 = vadd.xlane.f32.xlu0 %v1235_v28  ;;  %1028 = vadd.xlane.f32.xlu1 %v1027_v29  ;;  %v1243_v33 = vadd.f32 %v1242_v30, %v1166_v24  ;;  %v1031_v39 = vadd.f32 %v1030_v31, %v2983_v22  ;;  %v3013_v44 = vpop.f32.mrb[19].mxu0 }
 0x153   :  { %v645_v35 = vpop.f32.mrb[8].mxu1  ;;  %v1246_v43 = vsel %vm1017_vm1, %v1169_v32, 0.0 }
 0x154   :  { %v3003_v37 = vadd.f32 %v858_v53, %v645_v35  ;;  %v647_v38 = vpop.f32.mrb[9].mxu1  ;;  %v1247_v51 = vadd.f32 %v1246_v43, %v1168_v40 }
 0x155   :  { %v3010_v0 = vadd.f32 %v860_v55, %v647_v38  ;;  %v649_v42 = vpop.f32.mrb[10].mxu1 }
 0x156   :  { %1244 = vadd.xlane.f32.xlu0 %v1243_v33  ;;  %1032 = vadd.xlane.f32.xlu1 %v1031_v39  ;;  %v3015_v45 = vadd.f32 %v862_v58, %v649_v42  ;;  %v651_v46 = vpop.f32.mrb[11].mxu1  ;;  %v1170_v47 = vmul.f32 %v3003_v37, %v3003_v37 }
 0x157   :  { %v3019_v48 = vadd.f32 %v864_v61, %v651_v46  ;;  %v1034_v49 = vsel %vm1017_vm1, %v3010_v0, 0.0  ;;  %v1171_v50 = vmul.f32 %v3010_v0, %v3010_v0  ;;  %v888_v61 = vpop.f32.mrb[20].mxu0 }
 0x158   :  { %v1035_v52 = vadd.f32 %v1034_v49, %v3003_v37  ;;  %v1172_v60 = vmul.f32 %v3015_v45, %v3015_v45  ;;  %v890_v3 = vpop.f32.mrb[21].mxu0 }
 0x159   :  { %v1250_v53 = vsel %vm1017_vm1, %v1171_v50, 0.0  ;;  %v1038_v54 = vsel %vm1017_vm1, %v3019_v48, 0.0  ;;  %v1173_v55 = vmul.f32 %v3019_v48, %v3019_v48  ;;  %v892_v6 = vpop.f32.mrb[22].mxu0 }
 0x15a   :  { %1248 = vadd.xlane.f32.xlu1 %v1247_v51  ;;  %1036 = vadd.xlane.f32.xlu0 %v1035_v52  ;;  %v1251_v57 = vadd.f32 %v1250_v53, %v1170_v47  ;;  %v1039_v58 = vadd.f32 %v1038_v54, %v3015_v45  ;;  %v3041_v10 = vpop.f32.mrb[23].mxu0 }
 0x15b   :  { %v655_v63 = vpop.f32.mrb[12].mxu1  ;;  %v1254_v2 = vsel %vm1017_vm1, %v1173_v55, 0.0 }
 0x15c   :  { %v3036_v4 = vadd.f32 %v2968_v8, %v655_v63  ;;  %v657_v5 = vpop.f32.mrb[13].mxu1  ;;  %v1255_v15 = vadd.f32 %v1254_v2, %v1172_v60 }
 0x15d   :  { %v3039_v7 = vadd.f32 %v2971_v11, %v657_v5  ;;  %v659_v9 = vpop.f32.mrb[14].mxu1 }
 0x15e   :  { %1252 = vadd.xlane.f32.xlu0 %v1251_v57  ;;  %1040 = vadd.xlane.f32.xlu1 %v1039_v58  ;;  %v3044_v13 = vadd.f32 %v2976_v16, %v659_v9  ;;  %v661_v14 = vpop.f32.mrb[15].mxu1  ;;  %v1174_v18 = vmul.f32 %v3036_v4, %v3036_v4 }
 0x15f   :  { %v3049_v8 = vadd.f32 %v2981_v20, %v661_v14  ;;  %v1042_v11 = vsel %vm1017_vm1, %v3039_v7, 0.0  ;;  %v1175_v19 = vmul.f32 %v3039_v7, %v3039_v7  ;;  %v898_v28 = vpop.f32.mrb[24].mxu0 }
 0x160   :  { %v1043_v21 = vadd.f32 %v1042_v11, %v3036_v4  ;;  %v1176_v27 = vmul.f32 %v3044_v13, %v3044_v13  ;;  %v900_v31 = vpop.f32.mrb[25].mxu0 }
 0x161   :  { %v1258_v23 = vsel %vm1017_vm1, %v1175_v19, 0.0  ;;  %v1046_v16 = vsel %vm1017_vm1, %v3049_v8, 0.0  ;;  %v1177_v24 = vmul.f32 %v3049_v8, %v3049_v8  ;;  %v902_v35 = vpop.f32.mrb[26].mxu0 }
 0x162   :  { %1256 = vadd.xlane.f32.xlu1 %v1255_v15  ;;  %1044 = vadd.xlane.f32.xlu0 %v1043_v21  ;;  %v1259_v20 = vadd.f32 %v1258_v23, %v1174_v18  ;;  %v1047_v26 = vadd.f32 %v1046_v16, %v3044_v13  ;;  %v3070_v40 = vpop.f32.mrb[27].mxu0 }
 0x163   :  { %v665_v29 = vpop.f32.mrb[16].mxu1  ;;  %v1262_v30 = vsel %vm1017_vm1, %v1177_v24, 0.0 }
 0x164   :  { %v3065_v32 = vadd.f32 %v878_v34, %v665_v29  ;;  %v667_v33 = vpop.f32.mrb[17].mxu1  ;;  %v1263_v46 = vadd.f32 %v1262_v30, %v1176_v27 }
 0x165   :  { %v3068_v38 = vadd.f32 %v3001_v36, %v667_v33  ;;  %v669_v39 = vpop.f32.mrb[18].mxu1 }
 0x166   :  { %1260 = vadd.xlane.f32.xlu0 %v1259_v20  ;;  %1048 = vadd.xlane.f32.xlu1 %v1047_v26  ;;  %v3073_v42 = vadd.f32 %v3008_v41, %v669_v39  ;;  %v671_v43 = vpop.f32.mrb[19].mxu1  ;;  %v1178_v47 = vmul.f32 %v3065_v32, %v3065_v32 }
 0x167   :  { %v3078_v34 = vadd.f32 %v3013_v44, %v671_v43  ;;  %v1050_v36 = vsel %vm1017_vm1, %v3068_v38, 0.0  ;;  %v1179_v49 = vmul.f32 %v3068_v38, %v3068_v38  ;;  %v908_v55 = vpop.f32.mrb[28].mxu0 }
 0x168   :  { %v1051_v50 = vadd.f32 %v1050_v36, %v3065_v32  ;;  %v1180_v54 = vmul.f32 %v3073_v42, %v3073_v42  ;;  %v910_v60 = vpop.f32.mrb[29].mxu0 }
 0x169   :  { %v1266_v51 = vsel %vm1017_vm1, %v1179_v49, 0.0  ;;  %v1054_v41 = vsel %vm1017_vm1, %v3078_v34, 0.0  ;;  %v1181_v52 = vmul.f32 %v3078_v34, %v3078_v34  ;;  %v912_v5 = vpop.f32.mrb[30].mxu0 }
 0x16a   :  { %1264 = vadd.xlane.f32.xlu1 %v1263_v46  ;;  %1052 = vadd.xlane.f32.xlu0 %v1051_v50  ;;  %v1267_v44 = vadd.f32 %v1266_v51, %v1178_v47  ;;  %v1055_v53 = vadd.f32 %v1054_v41, %v3073_v42  ;;  %v3098_v15 = vpop.f32.mrb[31].mxu0 }
 0x16b   :  { %v675_v57 = vpop.f32.mrb[20].mxu1  ;;  %v1270_v58 = vsel %vm1017_vm1, %v1181_v52, 0.0 }
 0x16c   :  { %v3094_v63 = vadd.f32 %v888_v61, %v675_v57  ;;  %v677_v2 = vpop.f32.mrb[21].mxu1  ;;  %v1271_v19 = vadd.f32 %v1270_v58, %v1180_v54 }
 0x16d   :  { %v3096_v9 = vadd.f32 %v890_v3, %v677_v2  ;;  %v679_v14 = vpop.f32.mrb[22].mxu1 }
 0x16e   :  { %1268 = vadd.xlane.f32.xlu0 %v1267_v44  ;;  %1056 = vadd.xlane.f32.xlu1 %v1055_v53  ;;  %v3100_v18 = vadd.f32 %v892_v6, %v679_v14  ;;  %v681_v11 = vpop.f32.mrb[23].mxu1  ;;  %v1182_v21 = vmul.f32 %v3094_v63, %v3094_v63 }
 0x16f   :  { %v3105_v23 = vadd.f32 %v3041_v10, %v681_v11  ;;  %v1058_v61 = vsel %vm1017_vm1, %v3096_v9, 0.0  ;;  %v1183_v3 = vmul.f32 %v3096_v9, %v3096_v9  ;;  %v918_v29 = vpop.f32.mrb[32].mxu0 }
 0x170   :  { %v1059_v16 = vadd.f32 %v1058_v61, %v3094_v63  ;;  %v1184_v27 = vmul.f32 %v3100_v18, %v3100_v18  ;;  %v920_v39 = vpop.f32.mrb[33].mxu0 }
 0x171   :  { %v1274_v24 = vsel %vm1017_vm1, %v1183_v3, 0.0  ;;  %v1062_v6 = vsel %vm1017_vm1, %v3105_v23, 0.0  ;;  %v1185_v20 = vmul.f32 %v3105_v23, %v3105_v23  ;;  %v922_v47 = vpop.f32.mrb[34].mxu0 }
 0x172   :  { %1272 = vadd.xlane.f32.xlu1 %v1271_v19  ;;  %1060 = vadd.xlane.f32.xlu0 %v1059_v16  ;;  %v1275_v10 = vadd.f32 %v1274_v24, %v1182_v21  ;;  %v1063_v26 = vadd.f32 %v1062_v6, %v3100_v18  ;;  %v3125_v50 = vpop.f32.mrb[35].mxu0 }
 0x173   :  { %v685_v30 = vpop.f32.mrb[24].mxu1  ;;  %v1278_v33 = vsel %vm1017_vm1, %v1185_v20, 0.0 }
 0x174   :  { %v3121_v43 = vadd.f32 %v898_v28, %v685_v30  ;;  %v687_v46 = vpop.f32.mrb[25].mxu1  ;;  %v1279_v52 = vadd.f32 %v1278_v33, %v1184_v27 }
 0x175   :  { %v3123_v36 = vadd.f32 %v900_v31, %v687_v46  ;;  %v689_v49 = vpop.f32.mrb[26].mxu1 }
 0x176   :  { %1276 = vadd.xlane.f32.xlu0 %v1275_v10  ;;  %1064 = vadd.xlane.f32.xlu1 %v1063_v26  ;;  %v3127_v51 = vadd.f32 %v902_v35, %v689_v49  ;;  %v691_v41 = vpop.f32.mrb[27].mxu1  ;;  %v1186_v44 = vmul.f32 %v3121_v43, %v3121_v43 }
 0x177   :  { %v3132_v53 = vadd.f32 %v3070_v40, %v691_v41  ;;  %v1066_v28 = vsel %vm1017_vm1, %v3123_v36, 0.0  ;;  %v1187_v31 = vmul.f32 %v3123_v36, %v3123_v36  ;;  %v928_v11 = vpop.f32.mrb[36].mxu0 }
 0x178   :  { %v1067_v54 = vadd.f32 %v1066_v28, %v3121_v43  ;;  %v1188_v14 = vmul.f32 %v3127_v51, %v3127_v51  ;;  %v930_v61 = vpop.f32.mrb[37].mxu0 }
 0x179   :  { %v1282_v57 = vsel %vm1017_vm1, %v1187_v31, 0.0  ;;  %v1070_v35 = vsel %vm1017_vm1, %v3132_v53, 0.0  ;;  %v1189_v58 = vmul.f32 %v3132_v53, %v3132_v53  ;;  %v932_v24 = vpop.f32.mrb[38].mxu0 }
 0x17a   :  { %1280 = vadd.xlane.f32.xlu1 %v1279_v52  ;;  %1068 = vadd.xlane.f32.xlu0 %v1067_v54  ;;  %v1283_v40 = vadd.f32 %v1282_v57, %v1186_v44  ;;  %v1071_v2 = vadd.f32 %v1070_v35, %v3127_v51  ;;  %v3152_v10 = vpop.f32.mrb[39].mxu0 }
 0x17b   :  { %v695_v19 = vpop.f32.mrb[28].mxu1  ;;  %v1286_v21 = vsel %vm1017_vm1, %v1189_v58, 0.0 }
 0x17c   :  { %v3148_v3 = vadd.f32 %v908_v55, %v695_v19  ;;  %v697_v16 = vpop.f32.mrb[29].mxu1  ;;  %v1287_v30 = vadd.f32 %v1286_v21, %v1188_v14 }
 0x17d   :  { %v3150_v6 = vadd.f32 %v910_v60, %v697_v16  ;;  %v699_v20 = vpop.f32.mrb[30].mxu1 }
 0x17e   :  { %3990 = vst [vmem:[#allocation11_spill] sm:$0xff] %v3148_v3  ;;  %1284 = vadd.xlane.f32.xlu0 %v1283_v40  ;;  %1072 = vadd.xlane.f32.xlu1 %v1071_v2  ;;  %v3154_v26 = vadd.f32 %v912_v5, %v699_v20  ;;  %v701_v27 = vpop.f32.mrb[31].mxu1  ;;  %v1190_v33 = vmul.f32 %v3148_v3, %v3148_v3 }
 0x17f   :  { %3991 = vst [vmem:[#allocation12_spill] sm:$0xff] %v3150_v6  ;;  %v3159_v46 = vadd.f32 %v3098_v15, %v701_v27  ;;  %v1074_v55 = vsel %vm1017_vm1, %v3150_v6, 0.0  ;;  %v1191_v60 = vmul.f32 %v3150_v6, %v3150_v6  ;;  %v938_v31 = vpop.f32.mrb[40].mxu0 }
 0x180   :  { %v1075_v49 = vadd.f32 %v1074_v55, %v3148_v3  ;;  %v1192_v28 = vmul.f32 %v3154_v26, %v3154_v26  ;;  %v940_v35 = vpop.f32.mrb[41].mxu0 }
 0x181   :  { %v1290_v41 = vsel %vm1017_vm1, %v1191_v60, 0.0  ;;  %v1078_v5 = vsel %vm1017_vm1, %v3159_v46, 0.0  ;;  %v1193_v52 = vmul.f32 %v3159_v46, %v3159_v46  ;;  %v942_v2 = vpop.f32.mrb[42].mxu0 }
 0x182   :  { %1288 = vadd.xlane.f32.xlu1 %v1287_v30  ;;  %1076 = vadd.xlane.f32.xlu0 %v1075_v49  ;;  %v1291_v15 = vadd.f32 %v1290_v41, %v1190_v33  ;;  %v1079_v44 = vadd.f32 %v1078_v5, %v3154_v26  ;;  %v3179_v21 = vpop.f32.mrb[43].mxu0 }
 0x183   :  { %v705_v54 = vpop.f32.mrb[32].mxu1  ;;  %v1294_v57 = vsel %vm1017_vm1, %v1193_v52, 0.0 }
 0x184   :  { %v3175_v58 = vadd.f32 %v918_v29, %v705_v54  ;;  %v707_v40 = vpop.f32.mrb[33].mxu1  ;;  %v1295_v27 = vadd.f32 %v1294_v57, %v1192_v28 }
 0x185   :  { %v3177_v14 = vadd.f32 %v920_v39, %v707_v40  ;;  %v709_v19 = vpop.f32.mrb[34].mxu1 }
 0x186   :  { %3992 = vst [vmem:[#allocation13_spill] sm:$0xff] %v3175_v58  ;;  %1292 = vadd.xlane.f32.xlu0 %v1291_v15  ;;  %1080 = vadd.xlane.f32.xlu1 %v1079_v44  ;;  %v3181_v16 = vadd.f32 %v922_v47, %v709_v19  ;;  %v711_v20 = vpop.f32.mrb[35].mxu1  ;;  %v1194_v30 = vmul.f32 %v3175_v58, %v3175_v58 }
 0x187   :  { %3993 = vst [vmem:[#allocation14_spill] sm:$0xff] %v3177_v14  ;;  %v3186_v33 = vadd.f32 %v3125_v50, %v711_v20  ;;  %v1082_v29 = vsel %vm1017_vm1, %v3177_v14, 0.0  ;;  %v1195_v39 = vmul.f32 %v3177_v14, %v3177_v14  ;;  %v948_v52 = vpop.f32.mrb[44].mxu0 }
 0x188   :  { %v1083_v55 = vadd.f32 %v1082_v29, %v3175_v58  ;;  %v1196_v5 = vmul.f32 %v3181_v16, %v3181_v16  ;;  %v950_v28 = vpop.f32.mrb[45].mxu0 }
 0x189   :  { %v1298_v60 = vsel %vm1017_vm1, %v1195_v39, 0.0  ;;  %v1086_v47 = vsel %vm1017_vm1, %v3186_v33, 0.0  ;;  %v1197_v49 = vmul.f32 %v3186_v33, %v3186_v33  ;;  %v952_v40 = vpop.f32.mrb[46].mxu0 }
 0x18a   :  { %1296 = vadd.xlane.f32.xlu1 %v1295_v27  ;;  %1084 = vadd.xlane.f32.xlu0 %v1083_v55  ;;  %v1299_v50 = vadd.f32 %v1298_v60, %v1194_v30  ;;  %v1087_v41 = vadd.f32 %v1086_v47, %v3181_v16  ;;  %v3206_v27 = vpop.f32.mrb[47].mxu0 }
 0x18b   :  { %v715_v15 = vpop.f32.mrb[36].mxu1  ;;  %v1302_v44 = vsel %vm1017_vm1, %v1197_v49, 0.0 }
 0x18c   :  { %v3202_v54 = vadd.f32 %v928_v11, %v715_v15  ;;  %v717_v57 = vpop.f32.mrb[37].mxu1  ;;  %v1303_v39 = vadd.f32 %v1302_v44, %v1196_v5 }
 0x18d   :  { %v3204_v19 = vadd.f32 %v930_v61, %v717_v57  ;;  %v719_v20 = vpop.f32.mrb[38].mxu1 }
 0x18e   :  { %3994 = vst [vmem:[#allocation15_spill] sm:$0xff] %v3202_v54  ;;  %1300 = vadd.xlane.f32.xlu0 %v1299_v50  ;;  %1088 = vadd.xlane.f32.xlu1 %v1087_v41  ;;  %v3208_v30 = vadd.f32 %v932_v24, %v719_v20  ;;  %v721_v29 = vpop.f32.mrb[39].mxu1  ;;  %v1198_v55 = vmul.f32 %v3202_v54, %v3202_v54 }
 0x18f   :  { %3995 = vst [vmem:[#allocation16_spill] sm:$0xff] %v3204_v19  ;;  %v3213_v60 = vadd.f32 %v3152_v10, %v721_v29  ;;  %v1090_v11 = vsel %vm1017_vm1, %v3204_v19, 0.0  ;;  %v1199_v61 = vmul.f32 %v3204_v19, %v3204_v19  ;;  %v958_v15 = vpop.f32.mrb[48].mxu0 }
 0x190   :  { %3996 = vst [vmem:[#allocation17_spill] sm:$0xff] %v3208_v30  ;;  %v1091_v47 = vadd.f32 %v1090_v11, %v3202_v54  ;;  %v1200_v5 = vmul.f32 %v3208_v30, %v3208_v30  ;;  %v960_v20 = vpop.f32.mrb[49].mxu0 }
 0x191   :  { %3997 = vst [vmem:[#allocation18_spill] sm:$0xff] %v3213_v60  ;;  %v1306_v49 = vsel %vm1017_vm1, %v1199_v61, 0.0  ;;  %v1094_v24 = vsel %vm1017_vm1, %v3213_v60, 0.0  ;;  %v1201_v50 = vmul.f32 %v3213_v60, %v3213_v60  ;;  %v962_v61 = vpop.f32.mrb[50].mxu0 }
 0x192   :  { %1304 = vadd.xlane.f32.xlu1 %v1303_v39  ;;  %1092 = vadd.xlane.f32.xlu0 %v1091_v47  ;;  %v1307_v10 = vadd.f32 %v1306_v49, %v1198_v55  ;;  %v1095_v41 = vadd.f32 %v1094_v24, %v3208_v30  ;;  %v3233_v39 = vpop.f32.mrb[51].mxu0 }
 0x193   :  { %v725_v44 = vpop.f32.mrb[40].mxu1  ;;  %v1310_v57 = vsel %vm1017_vm1, %v1201_v50, 0.0 }
 0x194   :  { %v3229_v29 = vadd.f32 %v938_v31, %v725_v44  ;;  %v727_v11 = vpop.f32.mrb[41].mxu1  ;;  %v1311_v49 = vadd.f32 %v1310_v57, %v1200_v5 }
 0x195   :  { %v3231_v19 = vadd.f32 %v940_v35, %v727_v11  ;;  %v729_v54 = vpop.f32.mrb[42].mxu1 }
 0x196   :  { %3998 = vst [vmem:[#allocation19_spill] sm:$0xff] %v3229_v29  ;;  %1308 = vadd.xlane.f32.xlu0 %v1307_v10  ;;  %1096 = vadd.xlane.f32.xlu1 %v1095_v41  ;;  %v3235_v55 = vadd.f32 %v942_v2, %v729_v54  ;;  %v731_v47 = vpop.f32.mrb[43].mxu1  ;;  %v1202_v24 = vmul.f32 %v3229_v29, %v3229_v29 }
 0x197   :  { %3999 = vst [vmem:[#allocation20_spill] sm:$0xff] %v3231_v19  ;;  %v3240_v50 = vadd.f32 %v3179_v21, %v731_v47  ;;  %v1098_v31 = vsel %vm1017_vm1, %v3231_v19, 0.0  ;;  %v1203_v35 = vmul.f32 %v3231_v19, %v3231_v19  ;;  %v968_v57 = vpop.f32.mrb[52].mxu0 }
 0x198   :  { %4000 = vst [vmem:[#allocation21_spill] sm:$0xff] %v3235_v55  ;;  %v1099_v44 = vadd.f32 %v1098_v31, %v3229_v29  ;;  %v1204_v5 = vmul.f32 %v3235_v55, %v3235_v55  ;;  %v970_v31 = vpop.f32.mrb[53].mxu0 }
 0x199   :  { %4001 = vst [vmem:[#allocation22_spill] sm:$0xff] %v3240_v50  ;;  %v1314_v10 = vsel %vm1017_vm1, %v1203_v35, 0.0  ;;  %v1102_v2 = vsel %vm1017_vm1, %v3240_v50, 0.0  ;;  %v1205_v54 = vmul.f32 %v3240_v50, %v3240_v50  ;;  %v972_v29 = vpop.f32.mrb[54].mxu0 }
 0x19a   :  { %1312 = vadd.xlane.f32.xlu1 %v1311_v49  ;;  %1100 = vadd.xlane.f32.xlu0 %v1099_v44  ;;  %v1315_v21 = vadd.f32 %v1314_v10, %v1202_v24  ;;  %v1103_v41 = vadd.f32 %v1102_v2, %v3235_v55  ;;  %v3260_v49 = vpop.f32.mrb[55].mxu0 }
 0x19b   :  { %v735_v11 = vpop.f32.mrb[44].mxu1  ;;  %v1318_v47 = vsel %vm1017_vm1, %v1205_v54, 0.0 }
 0x19c   :  { %v3256_v35 = vadd.f32 %v948_v52, %v735_v11  ;;  %v737_v19 = vpop.f32.mrb[45].mxu1  ;;  %v1319_v10 = vadd.f32 %v1318_v47, %v1204_v5 }
 0x19d   :  { %v3258_v14 = vadd.f32 %v950_v28, %v737_v19  ;;  %v739_v50 = vpop.f32.mrb[46].mxu1 }
 0x19e   :  { %4002 = vst [vmem:[#allocation23_spill] sm:$0xff] %v3256_v35  ;;  %1316 = vadd.xlane.f32.xlu0 %v1315_v21  ;;  %1104 = vadd.xlane.f32.xlu1 %v1103_v41  ;;  %v3262_v24 = vadd.f32 %v952_v40, %v739_v50  ;;  %v741_v44 = vpop.f32.mrb[47].mxu1  ;;  %v1206_v2 = vmul.f32 %v3256_v35, %v3256_v35 }
 0x19f   :  { %4003 = vst [vmem:[#allocation24_spill] sm:$0xff] %v3258_v14  ;;  %v3267_v54 = vadd.f32 %v3206_v27, %v741_v44  ;;  %v1106_v52 = vsel %vm1017_vm1, %v3258_v14, 0.0  ;;  %v1207_v28 = vmul.f32 %v3258_v14, %v3258_v14  ;;  %v978_v11 = vpop.f32.mrb[56].mxu0 }
 0x1a0   :  { %4004 = vst [vmem:[#allocation25_spill] sm:$0xff] %v3262_v24  ;;  %v1107_v19 = vadd.f32 %v1106_v52, %v3256_v35  ;;  %v1208_v5 = vmul.f32 %v3262_v24, %v3262_v24  ;;  %v980_v52 = vpop.f32.mrb[57].mxu0 }
 0x1a1   :  { %4005 = vst [vmem:[#allocation26_spill] sm:$0xff] %v3267_v54  ;;  %v1322_v21 = vsel %vm1017_vm1, %v1207_v28, 0.0  ;;  %v1110_v40 = vsel %vm1017_vm1, %v3267_v54, 0.0  ;;  %v1209_v50 = vmul.f32 %v3267_v54, %v3267_v54  ;;  %v982_v35 = vpop.f32.mrb[58].mxu0 }
 0x1a2   :  { %1320 = vadd.xlane.f32.xlu1 %v1319_v10  ;;  %1108 = vadd.xlane.f32.xlu0 %v1107_v19  ;;  %v1323_v27 = vadd.f32 %v1322_v21, %v1206_v2  ;;  %v1111_v41 = vadd.f32 %v1110_v40, %v3262_v24  ;;  %v3287_v10 = vpop.f32.mrb[59].mxu0 }
 0x1a3   :  { %v745_v47 = vpop.f32.mrb[48].mxu1  ;;  %v1326_v44 = vsel %vm1017_vm1, %v1209_v50, 0.0 }
 0x1a4   :  { %v3283_v28 = vadd.f32 %v958_v15, %v745_v47  ;;  %v747_v14 = vpop.f32.mrb[49].mxu1  ;;  %v1327_v21 = vadd.f32 %v1326_v44, %v1208_v5 }
 0x1a5   :  { %v3285_v55 = vadd.f32 %v960_v20, %v747_v14  ;;  %v749_v54 = vpop.f32.mrb[50].mxu1 }
 0x1a6   :  { %4006 = vst [vmem:[#allocation27_spill] sm:$0xff] %v3283_v28  ;;  %1324 = vadd.xlane.f32.xlu0 %v1323_v27  ;;  %1112 = vadd.xlane.f32.xlu1 %v1111_v41  ;;  %v3289_v2 = vadd.f32 %v962_v61, %v749_v54  ;;  %v751_v19 = vpop.f32.mrb[51].mxu1  ;;  %v1210_v40 = vmul.f32 %v3283_v28, %v3283_v28 }
 0x1a7   :  { %4007 = vst [vmem:[#allocation28_spill] sm:$0xff] %v3285_v55  ;;  %v3294_v50 = vadd.f32 %v3233_v39, %v751_v19  ;;  %v1114_v15 = vsel %vm1017_vm1, %v3285_v55, 0.0  ;;  %v1211_v14 = vmul.f32 %v3285_v55, %v3285_v55  ;;  %v988_v47 = vpop.f32.mrb[60].mxu0 }
 0x1a8   :  { %4008 = vst [vmem:[#allocation29_spill] sm:$0xff] %v3289_v2  ;;  %v1115_v20 = vadd.f32 %v1114_v15, %v3283_v28  ;;  %v1212_v5 = vmul.f32 %v3289_v2, %v3289_v2  ;;  %v990_v15 = vpop.f32.mrb[61].mxu0 }
 0x1a9   :  { %4009 = vst [vmem:[#allocation30_spill] sm:$0xff] %v3294_v50  ;;  %v1330_v27 = vsel %vm1017_vm1, %v1211_v14, 0.0  ;;  %v1118_v61 = vsel %vm1017_vm1, %v3294_v50, 0.0  ;;  %v1213_v54 = vmul.f32 %v3294_v50, %v3294_v50  ;;  %v992_v28 = vpop.f32.mrb[62].mxu0 }
 0x1aa   :  { %1328 = vadd.xlane.f32.xlu1 %v1327_v21  ;;  %1116 = vadd.xlane.f32.xlu0 %v1115_v20  ;;  %v1331_v39 = vadd.f32 %v1330_v27, %v1210_v40  ;;  %v1119_v41 = vadd.f32 %v1118_v61, %v3289_v2  ;;  %v3314_v21 = vpop.f32.mrb[63].mxu0 }
 0x1ab   :  { %v755_v44 = vpop.f32.mrb[52].mxu1  ;;  %v1334_v19 = vsel %vm1017_vm1, %v1213_v54, 0.0 }
 0x1ac   :  { %v3310_v14 = vadd.f32 %v968_v57, %v755_v44  ;;  %v757_v55 = vpop.f32.mrb[53].mxu1  ;;  %v1335_v27 = vadd.f32 %v1334_v19, %v1212_v5 }
 0x1ad   :  { %v3312_v24 = vadd.f32 %v970_v31, %v757_v55  ;;  %v759_v50 = vpop.f32.mrb[54].mxu1 }
 0x1ae   :  { %4010 = vst [vmem:[#allocation31_spill] sm:$0xff] %v3310_v14  ;;  %1332 = vadd.xlane.f32.xlu0 %v1331_v39  ;;  %1120 = vadd.xlane.f32.xlu1 %v1119_v41  ;;  %v3316_v40 = vadd.f32 %v972_v29, %v759_v50  ;;  %v761_v20 = vpop.f32.mrb[55].mxu1  ;;  %v1214_v61 = vmul.f32 %v3310_v14, %v3310_v14 }
 0x1af   :  { %4011 = vst [vmem:[#allocation32_spill] sm:$0xff] %v3312_v24  ;;  %v3321_v54 = vadd.f32 %v3260_v49, %v761_v20  ;;  %v1122_v57 = vsel %vm1017_vm1, %v3312_v24, 0.0  ;;  %v1215_v55 = vmul.f32 %v3312_v24, %v3312_v24  ;;  %v998_v44 = vpop.f32.mrb[64].mxu0 }
 0x1b0   :  { %4012 = vst [vmem:[#allocation33_spill] sm:$0xff] %v3316_v40  ;;  %v1123_v31 = vadd.f32 %v1122_v57, %v3310_v14  ;;  %v1216_v5 = vmul.f32 %v3316_v40, %v3316_v40  ;;  %v1000_v57 = vpop.f32.mrb[65].mxu0 }
 0x1b1   :  { %4013 = vst [vmem:[#allocation34_spill] sm:$0xff] %v3321_v54  ;;  %v1338_v39 = vsel %vm1017_vm1, %v1215_v55, 0.0  ;;  %v1126_v29 = vsel %vm1017_vm1, %v3321_v54, 0.0  ;;  %v1217_v50 = vmul.f32 %v3321_v54, %v3321_v54  ;;  %v1002_v14 = vpop.f32.mrb[66].mxu0 }
 0x1b2   :  { %1336 = vadd.xlane.f32.xlu1 %v1335_v27  ;;  %1124 = vadd.xlane.f32.xlu0 %v1123_v31  ;;  %v1339_v49 = vadd.f32 %v1338_v39, %v1214_v61  ;;  %v1127_v41 = vadd.f32 %v1126_v29, %v3316_v40  ;;  %v1004_v27 = vpop.f32.mrb[67].mxu0 }
 0x1b3   :  { %v765_v19 = vpop.f32.mrb[56].mxu1  ;;  %v1342_v20 = vsel %vm1017_vm1, %v1217_v50, 0.0 }
 0x1b4   :  { %v3337_v55 = vadd.f32 %v978_v11, %v765_v19  ;;  %v767_v24 = vpop.f32.mrb[57].mxu1  ;;  %v1343_v39 = vadd.f32 %v1342_v20, %v1216_v5 }
 0x1b5   :  { %v3339_v2 = vadd.f32 %v980_v52, %v767_v24  ;;  %v769_v54 = vpop.f32.mrb[58].mxu1 }
 0x1b6   :  { %4014 = vst [vmem:[#allocation35_spill] sm:$0xff] %v3337_v55  ;;  %1340 = vadd.xlane.f32.xlu0 %v1339_v49  ;;  %1128 = vadd.xlane.f32.xlu1 %v1127_v41  ;;  %v3341_v61 = vadd.f32 %v982_v35, %v769_v54  ;;  %v771_v31 = vpop.f32.mrb[59].mxu1  ;;  %v1218_v29 = vmul.f32 %v3337_v55, %v3337_v55 }
 0x1b7   :  { %4015 = vst [vmem:[#allocation36_spill] sm:$0xff] %v3339_v2  ;;  %v3346_v50 = vadd.f32 %v3287_v10, %v771_v31  ;;  %v1130_v11 = vsel %vm1017_vm1, %v3339_v2, 0.0  ;;  %v1219_v24 = vmul.f32 %v3339_v2, %v3339_v2  ;;  %v1008_v19 = vpop.f32.mrb[68].mxu0 }
 0x1b8   :  { %4016 = vst [vmem:[#allocation37_spill] sm:$0xff] %v3341_v61  ;;  %v1131_v52 = vadd.f32 %v1130_v11, %v3337_v55  ;;  %v1220_v5 = vmul.f32 %v3341_v61, %v3341_v61  ;;  %v1010_v11 = vpop.f32.mrb[69].mxu0 }
 0x1b9   :  { %4017 = vst [vmem:[#allocation38_spill] sm:$0xff] %v3346_v50  ;;  %v1346_v49 = vsel %vm1017_vm1, %v1219_v24, 0.0  ;;  %v1134_v35 = vsel %vm1017_vm1, %v3346_v50, 0.0  ;;  %v1221_v54 = vmul.f32 %v3346_v50, %v3346_v50  ;;  %v1012_v55 = vpop.f32.mrb[70].mxu0 }
 0x1ba   :  { %1344 = vadd.xlane.f32.xlu1 %v1343_v39  ;;  %1132 = vadd.xlane.f32.xlu0 %v1131_v52  ;;  %v1347_v10 = vadd.f32 %v1346_v49, %v1218_v29  ;;  %v1135_v41 = vadd.f32 %v1134_v35, %v3341_v61  ;;  %v1014_v39 = vpop.f32.mrb[71].mxu0 }
 0x1bb   :  { %v775_v20 = vpop.f32.mrb[60].mxu1  ;;  %v1350_v31 = vsel %vm1017_vm1, %v1221_v54, 0.0 }
 0x1bc   :  { %v3362_v24 = vadd.f32 %v988_v47, %v775_v20  ;;  %v777_v2 = vpop.f32.mrb[61].mxu1  ;;  %v1351_v49 = vadd.f32 %v1350_v31, %v1220_v5 }
 0x1bd   :  { %v3364_v40 = vadd.f32 %v990_v15, %v777_v2  ;;  %v779_v50 = vpop.f32.mrb[62].mxu1 }
 0x1be   :  { %4018 = vst [vmem:[#allocation39_spill] sm:$0xff] %v3362_v24  ;;  %1348 = vadd.xlane.f32.xlu0 %v1347_v10  ;;  %1136 = vadd.xlane.f32.xlu1 %v1135_v41  ;;  %v3366_v29 = vadd.f32 %v992_v28, %v779_v50  ;;  %v781_v52 = vpop.f32.mrb[63].mxu1  ;;  %v1222_v35 = vmul.f32 %v3362_v24, %v3362_v24 }
 0x1bf   :  { %4019 = vst [vmem:[#allocation40_spill] sm:$0xff] %v3364_v40  ;;  %v3371_v54 = vadd.f32 %v3314_v21, %v781_v52  ;;  %v1138_v47 = vsel %vm1017_vm1, %v3364_v40, 0.0  ;;  %v1223_v2 = vmul.f32 %v3364_v40, %v3364_v40 }
 0x1c0   :  { %4020 = vst [vmem:[#allocation41_spill] sm:$0xff] %v3366_v29  ;;  %v1139_v15 = vadd.f32 %v1138_v47, %v3362_v24  ;;  %v1224_v5 = vmul.f32 %v3366_v29, %v3366_v29 }
 0x1c1   :  { %4021 = vst [vmem:[#allocation42_spill] sm:$0xff] %v3371_v54  ;;  %v1354_v10 = vsel %vm1017_vm1, %v1223_v2, 0.0  ;;  %v1142_v28 = vsel %vm1017_vm1, %v3371_v54, 0.0  ;;  %v1225_v50 = vmul.f32 %v3371_v54, %v3371_v54 }
 0x1c2   :  { %1352 = vadd.xlane.f32.xlu1 %v1351_v49  ;;  %1140 = vadd.xlane.f32.xlu0 %v1139_v15  ;;  %v1355_v21 = vadd.f32 %v1354_v10, %v1222_v35  ;;  %v1143_v41 = vadd.f32 %v1142_v28, %v3366_v29 }
 0x1c3   :  { %v785_v20 = vpop.f32.mrb[64].mxu1  ;;  %v1358_v31 = vsel %vm1017_vm1, %v1225_v50, 0.0 }
 0x1c4   :  { %v3387_v52 = vadd.f32 %v998_v44, %v785_v20  ;;  %v787_v47 = vpop.f32.mrb[65].mxu1  ;;  %v1359_v35 = vadd.f32 %v1358_v31, %v1224_v5 }
 0x1c5   :  { %v3389_v2 = vadd.f32 %v1000_v57, %v787_v47  ;;  %v789_v40 = vpop.f32.mrb[66].mxu1 }
 0x1c6   :  { %4022 = vst [vmem:[#allocation43_spill] sm:$0xff] %v3387_v52  ;;  %1356 = vadd.xlane.f32.xlu0 %v1355_v21  ;;  %1144 = vadd.xlane.f32.xlu1 %v1143_v41  ;;  %v3391_v24 = vadd.f32 %v1002_v14, %v789_v40  ;;  %v791_v49 = vpop.f32.mrb[67].mxu1  ;;  %v1226_v15 = vmul.f32 %v3387_v52, %v3387_v52 }
 0x1c7   :  { %4023 = vst [vmem:[#allocation44_spill] sm:$0xff] %v3389_v2  ;;  %v3395_v10 = vadd.f32 %v1004_v27, %v791_v49  ;;  %v1146_v28 = vsel %vm1017_vm1, %v3389_v2, 0.0  ;;  %v1227_v44 = vmul.f32 %v3389_v2, %v3389_v2 }
 0x1c8   :  { %4024 = vst [vmem:[#allocation45_spill] sm:$0xff] %v3391_v24  ;;  %v1147_v57 = vadd.f32 %v1146_v28, %v3387_v52  ;;  %v1228_v41 = vmul.f32 %v3391_v24, %v3391_v24 }
 0x1c9   :  { %4025 = vst [vmem:[#allocation46_spill] sm:$0xff] %v3395_v10  ;;  %v1362_v50 = vsel %vm1017_vm1, %v1227_v44, 0.0  ;;  %v1150_v14 = vsel %vm1017_vm1, %v3395_v10, 0.0  ;;  %v1229_v40 = vmul.f32 %v3395_v10, %v3395_v10  ;;  %v1666_v10 = vld [vmem:[%s3948_s4] sm:$0xff] }
 0x1ca   :  { %1360 = vadd.xlane.f32.xlu1 %v1359_v35  ;;  %1148 = vadd.xlane.f32.xlu0 %v1147_v57  ;;  %v1363_v27 = vadd.f32 %v1362_v50, %v1226_v15  ;;  %v1151_v21 = vadd.f32 %v1150_v14, %v3391_v24 }
 0x1cb   :  { %v795_v5 = vpop.f32.mrb[68].mxu1  ;;  %v1366_v20 = vsel %vm1017_vm1, %v1229_v40, 0.0 }
 0x1cc   :  { %v3411_v31 = vadd.f32 %v1008_v19, %v795_v5  ;;  %v797_v47 = vpop.f32.mrb[69].mxu1  ;;  %v1367_v15 = vadd.f32 %v1366_v20, %v1228_v41 }
 0x1cd   :  { %v3413_v49 = vadd.f32 %v1010_v11, %v797_v47  ;;  %v799_v28 = vpop.f32.mrb[70].mxu1 }
 0x1ce   :  { %4026 = vst [vmem:[#allocation47_spill] sm:$0xff] %v3411_v31  ;;  %1364 = vadd.xlane.f32.xlu0 %v1363_v27  ;;  %1152 = vadd.xlane.f32.xlu1 %v1151_v21  ;;  %v3415_v44 = vadd.f32 %v1012_v55, %v799_v28  ;;  %v801_v35 = vpop.f32.mrb[71].mxu1  ;;  %v1230_v57 = vmul.f32 %v3411_v31, %v3411_v31 }
 0x1cf   :  { %4027 = vst [vmem:[#allocation48_spill] sm:$0xff] %v3413_v49  ;;  %v3419_v50 = vadd.f32 %v1014_v39, %v801_v35  ;;  %v1154_v14 = vsel %vm1017_vm1, %v3413_v49, 0.0  ;;  %v1231_v19 = vmul.f32 %v3413_v49, %v3413_v49 }
 0x1d0   :  { %4028 = vst [vmem:[#allocation49_spill] sm:$0xff] %v3415_v44  ;;  %v1155_v11 = vadd.f32 %v1154_v14, %v3411_v31  ;;  %v1232_v41 = vmul.f32 %v3415_v44, %v3415_v44 }
 0x1d1   :  { %4029 = vst [vmem:[#allocation50_spill] sm:$0xff] %v3419_v50  ;;  %v1370_v40 = vsel %vm1017_vm1, %v1231_v19, 0.0  ;;  %v1158_v55 = vsel %vm1017_vm1, %v3419_v50, 0.0  ;;  %v1233_v27 = vmul.f32 %v3419_v50, %v3419_v50 }
 0x1d2   :  { %1368 = vadd.xlane.f32.xlu1 %v1367_v15  ;;  %1156 = vadd.xlane.f32.xlu0 %v1155_v11  ;;  %v1371_v39 = vadd.f32 %v1370_v40, %v1230_v57  ;;  %v1159_v21 = vadd.f32 %v1158_v55, %v3415_v44 }
 0x1d3   :  { %v1374_v5 = vsel %vm1017_vm1, %v1233_v27, 0.0 }
 0x1d4   :  { %v1375_v20 = vadd.f32 %v1374_v5, %v1232_v41 }
 0x1d6   :  { %1372 = vadd.xlane.f32.xlu0 %v1371_v39  ;;  %1160 = vadd.xlane.f32.xlu1 %v1159_v21 }
 0x1d7   :  { %v1021_v47 = vpop.xlane.xlu0 %1020 }
 0x1d8   :  { %v1378_v14 = vmul.f32 0.0051020407, %v1021_v47 }
 0x1da   :  { %1376 = vadd.xlane.f32.xlu1 %v1375_v20  ;;  %v1450_v40 = vmul.f32 %v1378_v14, %v1378_v14 }
 0x1db   :  { %v1241_v28 = vpop.xlane.xlu1 %1240  ;;  %v1025_v35 = vpop.xlane.xlu0 %1024 }
 0x1dc   :  { %v1379_v19 = vmul.f32 0.0051020407, %v1025_v35  ;;  %v1415_v49 = vmul.f32 0.0051020407, %v1241_v28 }
 0x1de   :  { %v1451_v15 = vmul.f32 %v1379_v19, %v1379_v19 }
 0x1df   :  { %v1237_v11 = vpop.xlane.xlu0 %1236  ;;  %v1029_v57 = vpop.xlane.xlu1 %1028 }
 0x1e0   :  { %v1487_v55 = vsub.f32 %v1415_v49, %v1451_v15  ;;  %v1414_v31 = vmul.f32 0.0051020407, %v1237_v11  ;;  %v3435_v2 = vmul.f32 0.0051020407, %v1029_v57 }
 0x1e2   :  { %v1559_v52 = vadd.f32 1e-05, %v1487_v55  ;;  %v1486_v27 = vsub.f32 %v1414_v31, %v1450_v40  ;;  %v1452_v39 = vmul.f32 %v3435_v2, %v3435_v2 }
 0x1e3   :  { %v1245_v21 = vpop.xlane.xlu0 %1244  ;;  %v1033_v41 = vpop.xlane.xlu1 %1032 }
 0x1e4   :  { %2468 = vrsqrt.f32 %v1559_v52  ;;  %v1558_v5 = vadd.f32 1e-05, %v1486_v27  ;;  %v1416_v20 = vmul.f32 0.0051020407, %v1245_v21  ;;  %v3439_v47 = vmul.f32 0.0051020407, %v1033_v41 }
 0x1e5   :  { %v1523_v52 = vld [vmem:[%s3947_s3 + $0x8] sm:$0xff] }
 0x1e6   :  { %2470 = vrsqrt.f32 %v1558_v5  ;;  %v1488_v28 = vsub.f32 %v1416_v20, %v1452_v39  ;;  %v1453_v15 = vmul.f32 %v3439_v47, %v3439_v47  ;;  %v1522_v20 = vld [vmem:[%s3947_s3] sm:$0xff] }
 0x1e7   :  { %v1249_v35 = vpop.xlane.xlu1 %1248  ;;  %v1037_v50 = vpop.xlane.xlu0 %1036 }
 0x1e8   :  { %v1560_v49 = vadd.f32 1e-05, %v1488_v28  ;;  %v1417_v11 = vmul.f32 0.0051020407, %v1249_v35  ;;  %v3443_v31 = vmul.f32 0.0051020407, %v1037_v50 }
 0x1ea   :  { %v1489_v57 = vsub.f32 %v1417_v11, %v1453_v15  ;;  %2472 = vrsqrt.f32 %v1560_v49  ;;  %v1454_v39 = vmul.f32 %v3443_v31, %v3443_v31 }
 0x1eb   :  { %v1253_v40 = vpop.xlane.xlu0 %1252  ;;  %v1041_v55 = vpop.xlane.xlu1 %1040 }
 0x1ec   :  { %v1561_v27 = vadd.f32 1e-05, %v1489_v57  ;;  %v1418_v21 = vmul.f32 0.0051020407, %v1253_v40  ;;  %v3450_v41 = vmul.f32 0.0051020407, %v1041_v55 }
 0x1ee   :  { %v2469_v5 = vpop.eup %2468  ;;  %2474 = vrsqrt.f32 %v1561_v27  ;;  %v1455_v50 = vmul.f32 %v3450_v41, %v3450_v41  ;;  %v1490_v11 = vsub.f32 %v1418_v21, %v1454_v39  ;;  %v1667_v27 = vld [vmem:[%s3948_s4 + $0x8] sm:$0xff] }
 0x1ef   :  { %v1631_v28 = vmul.f32 %v2469_v5, %v1523_v52  ;;  %v1257_v35 = vpop.xlane.xlu1 %1256  ;;  %v1045_v49 = vpop.xlane.xlu0 %1044 }
 0x1f0   :  { %v2471_v15 = vpop.eup %2470  ;;  %v1419_v57 = vmul.f32 0.0051020407, %v1257_v35  ;;  %v3463_v24 = vmul.f32 0.0051020407, %v1045_v49  ;;  %v1562_v39 = vadd.f32 1e-05, %v1490_v11 }
 0x1f1   :  { %v1703_v44 = vmul.f32 %v1631_v28, %v1379_v19  ;;  %1781 = vperm.xlu1 %2467, %v1631_v28   ;;  %v1630_v40 = vmul.f32 %v2471_v15, %v1522_v20  ;;  %v1524_v49 = vld [vmem:[%s3947_s3 + $0x10] sm:$0xff]  ;;  %v1525_v15 = vld [vmem:[%s3947_s3 + $0x18] sm:$0xff] }
 0x1f2   :  { %v1491_v55 = vsub.f32 %v1419_v57, %v1455_v50 }
 0x1f3   :  { %v1261_v52 = vpop.xlane.xlu0 %1260  ;;  %v1049_v5 = vpop.xlane.xlu1 %1048  ;;  %1776 = vperm.xlu0 %2466, %v1630_v40   ;;  %v1702_v54 = vmul.f32 %v1630_v40, %v1378_v14  ;;  %v1739_v50 = vsub.f32 %v1667_v27, %v1703_v44  ;;  %v1456_v14 = vmul.f32 %v3463_v24, %v3463_v24 }
 0x1f4   :  { %v1563_v21 = vadd.f32 1e-05, %v1491_v55  ;;  %v3465_v19 = vmul.f32 0.0051020407, %v1049_v5  ;;  %v2473_v20 = vpop.eup %2472  ;;  %v1420_v11 = vmul.f32 0.0051020407, %v1261_v52 }
 0x1f5   :  { %v1738_v28 = vsub.f32 %v1666_v10, %v1702_v54  ;;  %v1632_v44 = vmul.f32 %v2473_v20, %v1524_v49  ;;  %v1669_v5 = vld [vmem:[%s3948_s4 + $0x18] sm:$0xff] }
 0x1f6   :  { %2476 = vrsqrt.f32 %v1563_v21  ;;  %v1457_v35 = vmul.f32 %v3465_v19, %v3465_v19  ;;  %v1492_v21 = vsub.f32 %v1420_v11, %v1456_v14 }
 0x1f7   :  { %v1265_v57 = vpop.xlane.xlu1 %1264  ;;  %v1053_v40 = vpop.xlane.xlu0 %1052  ;;  %2033 = vperm.xlu0 %2466, %v1739_v50   ;;  %2028 = vperm.xlu1 %2467, %v1738_v28   ;;  %2478 = vrsqrt.f32 %v1562_v39  ;;  %v1704_v20 = vmul.f32 %v1632_v44, %v3435_v2 }
 0x1f8   :  { %v2475_v54 = vpop.eup %2474  ;;  %v1421_v10 = vmul.f32 0.0051020407, %v1265_v57  ;;  %v3481_v60 = vmul.f32 0.0051020407, %v1053_v40  ;;  %v1564_v49 = vadd.f32 1e-05, %v1492_v21 }
 0x1f9   :  { %v1633_v55 = vmul.f32 %v2475_v54, %v1525_v15 }
 0x1fa   :  { %v1493_v27 = vsub.f32 %v1421_v10, %v1457_v35  ;;  %v1668_v35 = vld [vmem:[%s3948_s4 + $0x10] sm:$0xff] }
 0x1fb   :  { %v1269_v29 = vpop.xlane.xlu0 %1268  ;;  %v1057_v61 = vpop.xlane.xlu1 %1056  ;;  %1786 = vperm.xlu1 %2467, %v1632_v44   ;;  %v1705_v52 = vmul.f32 %v1633_v55, %v3439_v47  ;;  %v1527_v47 = vld [vmem:[%s3947_s3 + $0x28] sm:$0xff]  ;;  %v1740_v57 = vsub.f32 %v1668_v35, %v1704_v20 }
 0x1fc   :  { %v1565_v58 = vadd.f32 1e-05, %v1493_v27  ;;  %v3483_v50 = vmul.f32 0.0051020407, %v1057_v61  ;;  %v1422_v2 = vmul.f32 0.0051020407, %v1269_v29 }
 0x1fd   :  { %v1741_v39 = vsub.f32 %v1669_v5, %v1705_v52  ;;  %v1671_v44 = vld [vmem:[%s3948_s4 + $0x28] sm:$0xff]  ;;  %v1526_v27 = vld [vmem:[%s3947_s3 + $0x20] sm:$0xff] }
 0x1fe   :  { %2480 = vrsqrt.f32 %v1565_v58  ;;  %v1459_v28 = vmul.f32 %v3483_v50, %v3483_v50  ;;  %v1458_v58 = vmul.f32 %v3481_v60, %v3481_v60 }
 0x1ff   :  { %v1273_v15 = vpop.xlane.xlu1 %1272  ;;  %v1061_v14 = vpop.xlane.xlu0 %1060  ;;  %2043 = vperm.xlu0 %2466, %v1741_v39   ;;  %1791 = vperm.xlu1 %2467, %v1633_v55   ;;  %2482 = vrsqrt.f32 %v1564_v49  ;;  %v1529_v49 = vld [vmem:[%s3947_s3 + $0x38] sm:$0xff] }
 0x200   :  { %v2477_v61 = vpop.eup %2476  ;;  %v1423_v11 = vmul.f32 0.0051020407, %v1273_v15  ;;  %v1494_v29 = vsub.f32 %v1422_v2, %v1458_v58  ;;  %v3503_v39 = vmul.f32 0.0051020407, %v1061_v14 }
 0x201   :  { %v1635_v40 = vmul.f32 %v2477_v61, %v1527_v47  ;;  %v2479_v54 = vpop.eup %2478 }
 0x202   :  { %v1495_v10 = vsub.f32 %v1423_v11, %v1459_v28  ;;  %v1634_v35 = vmul.f32 %v2479_v54, %v1526_v27  ;;  %v1566_v58 = vadd.f32 1e-05, %v1494_v29  ;;  %v1460_v14 = vmul.f32 %v3503_v39, %v3503_v39  ;;  %v1670_v27 = vld [vmem:[%s3948_s4 + $0x20] sm:$0xff] }
 0x203   :  { %v1277_v55 = vpop.xlane.xlu0 %1276  ;;  %v1065_v5 = vpop.xlane.xlu1 %1064  ;;  %2038 = vperm.xlu1 %2467, %v1740_v57   ;;  %v1707_v21 = vmul.f32 %v1635_v40, %v3450_v41 }
 0x204   :  { %v1567_v52 = vadd.f32 1e-05, %v1495_v10  ;;  %v3505_v20 = vmul.f32 0.0051020407, %v1065_v5  ;;  %v1424_v2 = vmul.f32 0.0051020407, %v1277_v55  ;;  %v1706_v54 = vmul.f32 %v1634_v35, %v3443_v31 }
 0x205   :  { %v1743_v28 = vsub.f32 %v1671_v44, %v1707_v21  ;;  %v1673_v44 = vld [vmem:[%s3948_s4 + $0x38] sm:$0xff] }
 0x206   :  { %2484 = vrsqrt.f32 %v1567_v52  ;;  %v1461_v47 = vmul.f32 %v3505_v20, %v3505_v20  ;;  %v1496_v52 = vsub.f32 %v1424_v2, %v1460_v14 }
 0x207   :  { %v1281_v15 = vpop.xlane.xlu1 %1280  ;;  %v1069_v61 = vpop.xlane.xlu0 %1068  ;;  %2053 = vperm.xlu0 %2466, %v1743_v28   ;;  %1796 = vperm.xlu1 %2467, %v1634_v35   ;;  %2486 = vrsqrt.f32 %v1566_v58 }
 0x208   :  { %v2481_v41 = vpop.eup %2480  ;;  %v1425_v11 = vmul.f32 0.0051020407, %v1281_v15  ;;  %v3521_v5 = vmul.f32 0.0051020407, %v1069_v61  ;;  %v1531_v61 = vld [vmem:[%s3947_s3 + $0x48] sm:$0xff] }
 0x209   :  { %v1637_v57 = vmul.f32 %v2481_v41, %v1529_v49  ;;  %v2483_v35 = vpop.eup %2482  ;;  %v1742_v49 = vsub.f32 %v1670_v27, %v1706_v54 }
 0x20a   :  { %v1497_v10 = vsub.f32 %v1425_v11, %v1461_v47  ;;  %v1568_v11 = vadd.f32 1e-05, %v1496_v52 }
 0x20b   :  { %v1285_v21 = vpop.xlane.xlu0 %1284  ;;  %v1073_v29 = vpop.xlane.xlu1 %1072  ;;  %1801 = vperm.xlu1 %2467, %v1635_v40   ;;  %v1709_v55 = vmul.f32 %v1637_v57, %v3465_v19  ;;  %v1528_v19 = vld [vmem:[%s3947_s3 + $0x30] sm:$0xff]  ;;  %v1462_v40 = vmul.f32 %v3521_v5, %v3521_v5 }
 0x20c   :  { %v1569_v28 = vadd.f32 1e-05, %v1497_v10  ;;  %v3524_v31 = vmul.f32 0.0051020407, %v1073_v29  ;;  %v1426_v41 = vmul.f32 0.0051020407, %v1285_v21 }
 0x20d   :  { %v1745_v47 = vsub.f32 %v1673_v44, %v1709_v55  ;;  %v1636_v44 = vmul.f32 %v2483_v35, %v1528_v19  ;;  %v1675_v29 = vld [vmem:[%s3948_s4 + $0x48] sm:$0xff] }
 0x20e   :  { %2488 = vrsqrt.f32 %v1569_v28  ;;  %v1463_v15 = vmul.f32 %v3524_v31, %v3524_v31  ;;  %v1498_v55 = vsub.f32 %v1426_v41, %v1462_v40  ;;  %v1533_v40 = vld [vmem:[%s3947_s3 + $0x58] sm:$0xff] }
 0x20f   :  { %v1289_v58 = vpop.xlane.xlu1 %1288  ;;  %v1077_v14 = vpop.xlane.xlu0 %1076  ;;  %2063 = vperm.xlu0 %2466, %v1745_v47   ;;  %2048 = vperm.xlu1 %2467, %v1742_v49   ;;  %2490 = vrsqrt.f32 %v1568_v11  ;;  %v1708_v35 = vmul.f32 %v1636_v44, %v3463_v24 }
 0x210   :  { %v2485_v2 = vpop.eup %2484  ;;  %v1427_v54 = vmul.f32 0.0051020407, %v1289_v58  ;;  %v3540_v49 = vmul.f32 0.0051020407, %v1077_v14  ;;  %v1570_v41 = vadd.f32 1e-05, %v1498_v55 }
 0x211   :  { %v1639_v10 = vmul.f32 %v2485_v2, %v1531_v61 }
 0x212   :  { %v1499_v27 = vsub.f32 %v1427_v54, %v1463_v15  ;;  %v2487_v15 = vpop.eup %2486  ;;  %v1464_v2 = vmul.f32 %v3540_v49, %v3540_v49 }
 0x213   :  { %v1293_v28 = vpop.xlane.xlu0 %1292  ;;  %v1081_v30 = vpop.xlane.xlu1 %1080  ;;  %1821 = vperm.xlu0 %2466, %v1639_v10   ;;  %1806 = vperm.xlu1 %2467, %v1636_v44   ;;  %v1711_v21 = vmul.f32 %v1639_v10, %v3483_v50  ;;  %v1672_v50 = vld [vmem:[%s3948_s4 + $0x30] sm:$0xff] }
 0x214   :  { %v1571_v47 = vadd.f32 1e-05, %v1499_v27  ;;  %v3542_v52 = vmul.f32 0.0051020407, %v1081_v30  ;;  %v1530_v30 = vld [vmem:[%s3947_s3 + $0x40] sm:$0xff]  ;;  %v1744_v44 = vsub.f32 %v1672_v50, %v1708_v35  ;;  %v1535_v50 = vld [vmem:[%s3947_s3 + $0x68] sm:$0xff] }
 0x215   :  { %v1747_v61 = vsub.f32 %v1675_v29, %v1711_v21  ;;  %v1428_v11 = vmul.f32 0.0051020407, %v1293_v28  ;;  %v1638_v27 = vmul.f32 %v2487_v15, %v1530_v30  ;;  %v1677_v21 = vld [vmem:[%s3948_s4 + $0x58] sm:$0xff]  ;;  %v1532_v30 = vld [vmem:[%s3947_s3 + $0x50] sm:$0xff] }
 0x216   :  { %2492 = vrsqrt.f32 %v1571_v47  ;;  %v1465_v19 = vmul.f32 %v3542_v52, %v3542_v52 }
 0x217   :  { %v1297_v58 = vpop.xlane.xlu1 %1296  ;;  %v1085_v24 = vpop.xlane.xlu0 %1084  ;;  %2073 = vperm.xlu0 %2466, %v1747_v61   ;;  %1811 = vperm.xlu1 %2467, %v1637_v57   ;;  %2494 = vrsqrt.f32 %v1570_v41  ;;  %v1500_v61 = vsub.f32 %v1428_v11, %v1464_v2  ;;  %v1710_v15 = vmul.f32 %v1638_v27, %v3481_v60 }
 0x218   :  { %v2489_v14 = vpop.eup %2488  ;;  %v1429_v54 = vmul.f32 0.0051020407, %v1297_v58  ;;  %v3562_v3 = vmul.f32 0.0051020407, %v1085_v24 }
 0x219   :  { %v1641_v10 = vmul.f32 %v2489_v14, %v1533_v40  ;;  %v1572_v60 = vadd.f32 1e-05, %v1500_v61 }
 0x21a   :  { %v1501_v29 = vsub.f32 %v1429_v54, %v1465_v19  ;;  %v2491_v19 = vpop.eup %2490  ;;  %v1466_v24 = vmul.f32 %v3562_v3, %v3562_v3 }
 0x21b   :  { %v1301_v55 = vpop.xlane.xlu0 %1300  ;;  %v1089_v47 = vpop.xlane.xlu1 %1088  ;;  %1831 = vperm.xlu0 %2466, %v1641_v10   ;;  %2058 = vperm.xlu1 %2467, %v1744_v44   ;;  %v1713_v57 = vmul.f32 %v1641_v10, %v3505_v20  ;;  %v1674_v20 = vld [vmem:[%s3948_s4 + $0x40] sm:$0xff]  ;;  %v1640_v10 = vmul.f32 %v2491_v19, %v1532_v30 }
 0x21c   :  { %v1573_v6 = vadd.f32 1e-05, %v1501_v29  ;;  %v3564_v28 = vmul.f32 0.0051020407, %v1089_v47  ;;  %v1430_v14 = vmul.f32 0.0051020407, %v1301_v55  ;;  %v1746_v54 = vsub.f32 %v1674_v20, %v1710_v15 }
 0x21d   :  { %v1749_v35 = vsub.f32 %v1677_v21, %v1713_v57  ;;  %v1679_v29 = vld [vmem:[%s3948_s4 + $0x68] sm:$0xff]  ;;  %v1537_v20 = vld [vmem:[%s3947_s3 + $0x78] sm:$0xff]  ;;  %v1534_v30 = vld [vmem:[%s3947_s3 + $0x60] sm:$0xff] }
 0x21e   :  { %2496 = vrsqrt.f32 %v1573_v6  ;;  %v1467_v40 = vmul.f32 %v3564_v28, %v3564_v28  ;;  %v1502_v61 = vsub.f32 %v1430_v14, %v1466_v24 }
 0x21f   :  { %v1305_v41 = vpop.xlane.xlu1 %1304  ;;  %v1093_v58 = vpop.xlane.xlu0 %1092  ;;  %2083 = vperm.xlu0 %2466, %v1749_v35   ;;  %1816 = vperm.xlu1 %2467, %v1638_v27   ;;  %2498 = vrsqrt.f32 %v1572_v60 }
 0x220   :  { %v2493_v6 = vpop.eup %2492  ;;  %v1431_v2 = vmul.f32 0.0051020407, %v1305_v41  ;;  %v3583_v21 = vmul.f32 0.0051020407, %v1093_v58  ;;  %v1574_v24 = vadd.f32 1e-05, %v1502_v61 }
 0x221   :  { %v1643_v11 = vmul.f32 %v2493_v6, %v1535_v50  ;;  %v2495_v15 = vpop.eup %2494 }
 0x222   :  { %v1503_v44 = vsub.f32 %v1431_v2, %v1467_v40  ;;  %v1712_v40 = vmul.f32 %v1640_v10, %v3503_v39  ;;  %v1468_v41 = vmul.f32 %v3583_v21, %v3583_v21 }
 0x223   :  { %v1309_v47 = vpop.xlane.xlu0 %1308  ;;  %v1097_v57 = vpop.xlane.xlu1 %1096  ;;  %1841 = vperm.xlu0 %2466, %v1643_v11   ;;  %2068 = vperm.xlu1 %2467, %v1746_v54   ;;  %v1715_v27 = vmul.f32 %v1643_v11, %v3524_v31  ;;  %v1676_v31 = vld [vmem:[%s3948_s4 + $0x50] sm:$0xff]  ;;  %v1642_v54 = vmul.f32 %v2495_v15, %v1534_v30 }
 0x224   :  { %v1575_v55 = vadd.f32 1e-05, %v1503_v44  ;;  %v3586_v35 = vmul.f32 0.0051020407, %v1097_v57  ;;  %v1432_v39 = vmul.f32 0.0051020407, %v1309_v47  ;;  %v1748_v11 = vsub.f32 %v1676_v31, %v1712_v40 }
 0x225   :  { %v1751_v19 = vsub.f32 %v1679_v29, %v1715_v27  ;;  %v1681_v29 = vld [vmem:[%s3948_s4 + $0x78] sm:$0xff]  ;;  %v1714_v15 = vmul.f32 %v1642_v54, %v3521_v5  ;;  %v1539_v31 = vld [vmem:[%s3947_s3 + $0x88] sm:$0xff]  ;;  %v1536_v30 = vld [vmem:[%s3947_s3 + $0x70] sm:$0xff] }
 0x226   :  { %2500 = vrsqrt.f32 %v1575_v55  ;;  %v1469_v50 = vmul.f32 %v3586_v35, %v3586_v35  ;;  %v1504_v57 = vsub.f32 %v1432_v39, %v1468_v41 }
 0x227   :  { %v1313_v58 = vpop.xlane.xlu1 %1312  ;;  %v1101_v6 = vpop.xlane.xlu0 %1100  ;;  %2093 = vperm.xlu0 %2466, %v1751_v19   ;;  %1826 = vperm.xlu1 %2467, %v1640_v10   ;;  %2502 = vrsqrt.f32 %v1574_v24 }
 0x228   :  { %v2497_v60 = vpop.eup %2496  ;;  %v1433_v14 = vmul.f32 0.0051020407, %v1313_v58  ;;  %v3606_v19 = vmul.f32 0.0051020407, %v1101_v6  ;;  %v1576_v41 = vadd.f32 1e-05, %v1504_v57 }
 0x229   :  { %v1645_v2 = vmul.f32 %v2497_v60, %v1537_v20 }
 0x22a   :  { %v1505_v44 = vsub.f32 %v1433_v14, %v1469_v50  ;;  %v2499_v50 = vpop.eup %2498  ;;  %v1470_v6 = vmul.f32 %v3606_v19, %v3606_v19 }
 0x22b   :  { %v1317_v27 = vpop.xlane.xlu0 %1316  ;;  %v1105_v55 = vpop.xlane.xlu1 %1104  ;;  %1851 = vperm.xlu0 %2466, %v1645_v2   ;;  %2078 = vperm.xlu1 %2467, %v1748_v11   ;;  %v1717_v47 = vmul.f32 %v1645_v2, %v3542_v52  ;;  %v1678_v52 = vld [vmem:[%s3948_s4 + $0x60] sm:$0xff]  ;;  %v1644_v11 = vmul.f32 %v2499_v50, %v1536_v30 }
 0x22c   :  { %v1577_v10 = vadd.f32 1e-05, %v1505_v44  ;;  %v3608_v61 = vmul.f32 0.0051020407, %v1105_v55  ;;  %v1434_v60 = vmul.f32 0.0051020407, %v1317_v27  ;;  %v1750_v2 = vsub.f32 %v1678_v52, %v1714_v15 }
 0x22d   :  { %v1753_v40 = vsub.f32 %v1681_v29, %v1717_v47  ;;  %v1683_v29 = vld [vmem:[%s3948_s4 + $0x88] sm:$0xff]  ;;  %v1716_v50 = vmul.f32 %v1644_v11, %v3540_v49  ;;  %v1541_v52 = vld [vmem:[%s3947_s3 + $0x98] sm:$0xff]  ;;  %v1538_v30 = vld [vmem:[%s3947_s3 + $0x80] sm:$0xff] }
 0x22e   :  { %2504 = vrsqrt.f32 %v1577_v10  ;;  %v1471_v20 = vmul.f32 %v3608_v61, %v3608_v61  ;;  %v1506_v47 = vsub.f32 %v1434_v60, %v1470_v6 }
 0x22f   :  { %v1321_v39 = vpop.xlane.xlu1 %1320  ;;  %v1109_v5 = vpop.xlane.xlu0 %1108  ;;  %2103 = vperm.xlu0 %2466, %v1753_v40   ;;  %1836 = vperm.xlu1 %2467, %v1642_v54   ;;  %2506 = vrsqrt.f32 %v1576_v41 }
 0x230   :  { %v2501_v58 = vpop.eup %2500  ;;  %v1435_v24 = vmul.f32 0.0051020407, %v1321_v39  ;;  %v3628_v40 = vmul.f32 0.0051020407, %v1109_v5  ;;  %v1578_v5 = vadd.f32 1e-05, %v1506_v47 }
 0x231   :  { %v1647_v14 = vmul.f32 %v2501_v58, %v1539_v31 }
 0x232   :  { %v1507_v44 = vsub.f32 %v1435_v24, %v1471_v20  ;;  %v2503_v20 = vpop.eup %2502  ;;  %v1472_v58 = vmul.f32 %v3628_v40, %v3628_v40 }
 0x233   :  { %v1325_v57 = vpop.xlane.xlu0 %1324  ;;  %v1113_v55 = vpop.xlane.xlu1 %1112  ;;  %1861 = vperm.xlu0 %2466, %v1647_v14   ;;  %2088 = vperm.xlu1 %2467, %v1750_v2   ;;  %v1719_v54 = vmul.f32 %v1647_v14, %v3564_v28  ;;  %v1680_v28 = vld [vmem:[%s3948_s4 + $0x70] sm:$0xff]  ;;  %v1646_v2 = vmul.f32 %v2503_v20, %v1538_v30 }
 0x234   :  { %v1579_v10 = vadd.f32 1e-05, %v1507_v44  ;;  %v3630_v27 = vmul.f32 0.0051020407, %v1113_v55  ;;  %v1436_v6 = vmul.f32 0.0051020407, %v1325_v57  ;;  %v1752_v14 = vsub.f32 %v1680_v28, %v1716_v50 }
 0x235   :  { %v1755_v15 = vsub.f32 %v1683_v29, %v1719_v54  ;;  %v1685_v29 = vld [vmem:[%s3948_s4 + $0x98] sm:$0xff]  ;;  %v1543_v28 = vld [vmem:[%s3947_s3 + $0xa8] sm:$0xff]  ;;  %v1540_v30 = vld [vmem:[%s3947_s3 + $0x90] sm:$0xff] }
 0x236   :  { %2508 = vrsqrt.f32 %v1579_v10  ;;  %v1473_v31 = vmul.f32 %v3630_v27, %v3630_v27  ;;  %v1508_v47 = vsub.f32 %v1436_v6, %v1472_v58 }
 0x237   :  { %v1329_v41 = vpop.xlane.xlu1 %1328  ;;  %v1117_v39 = vpop.xlane.xlu0 %1116  ;;  %2113 = vperm.xlu0 %2466, %v1755_v15   ;;  %1846 = vperm.xlu1 %2467, %v1644_v11   ;;  %2510 = vrsqrt.f32 %v1578_v5 }
 0x238   :  { %v2505_v49 = vpop.eup %2504  ;;  %v1437_v60 = vmul.f32 0.0051020407, %v1329_v41  ;;  %v3649_v55 = vmul.f32 0.0051020407, %v1117_v39  ;;  %v1580_v58 = vadd.f32 1e-05, %v1508_v47 }
 0x239   :  { %v1649_v24 = vmul.f32 %v2505_v49, %v1541_v52  ;;  %v2507_v50 = vpop.eup %2506 }
 0x23a   :  { %v1509_v44 = vsub.f32 %v1437_v60, %v1473_v31  ;;  %v1718_v31 = vmul.f32 %v1646_v2, %v3562_v3  ;;  %v1474_v41 = vmul.f32 %v3649_v55, %v3649_v55 }
 0x23b   :  { %v1333_v54 = vpop.xlane.xlu0 %1332  ;;  %v1121_v10 = vpop.xlane.xlu1 %1120  ;;  %1871 = vperm.xlu0 %2466, %v1649_v24   ;;  %2098 = vperm.xlu1 %2467, %v1752_v14   ;;  %v1721_v11 = vmul.f32 %v1649_v24, %v3586_v35  ;;  %v1682_v35 = vld [vmem:[%s3948_s4 + $0x80] sm:$0xff]  ;;  %v1648_v14 = vmul.f32 %v2507_v50, %v1540_v30 }
 0x23c   :  { %v1581_v57 = vadd.f32 1e-05, %v1509_v44  ;;  %v3652_v15 = vmul.f32 0.0051020407, %v1121_v10  ;;  %v1438_v3 = vmul.f32 0.0051020407, %v1333_v54  ;;  %v1754_v24 = vsub.f32 %v1682_v35, %v1718_v31 }
 0x23d   :  { %v1757_v20 = vsub.f32 %v1685_v29, %v1721_v11  ;;  %v1687_v29 = vld [vmem:[%s3948_s4 + $0xa8] sm:$0xff]  ;;  %v1720_v50 = vmul.f32 %v1648_v14, %v3583_v21  ;;  %v1545_v35 = vld [vmem:[%s3947_s3 + $0xb8] sm:$0xff]  ;;  %v1542_v30 = vld [vmem:[%s3947_s3 + $0xa0] sm:$0xff] }
 0x23e   :  { %2512 = vrsqrt.f32 %v1581_v57  ;;  %v1475_v52 = vmul.f32 %v3652_v15, %v3652_v15  ;;  %v1510_v10 = vsub.f32 %v1438_v3, %v1474_v41 }
 0x23f   :  { %v1337_v39 = vpop.xlane.xlu1 %1336  ;;  %v1125_v49 = vpop.xlane.xlu0 %1124  ;;  %2123 = vperm.xlu0 %2466, %v1757_v20   ;;  %1856 = vperm.xlu1 %2467, %v1646_v2   ;;  %2514 = vrsqrt.f32 %v1580_v58 }
 0x240   :  { %v2509_v5 = vpop.eup %2508  ;;  %v1439_v6 = vmul.f32 0.0051020407, %v1337_v39  ;;  %v3671_v11 = vmul.f32 0.0051020407, %v1125_v49  ;;  %v1582_v41 = vadd.f32 1e-05, %v1510_v10 }
 0x241   :  { %v1651_v60 = vmul.f32 %v2509_v5, %v1543_v28 }
 0x242   :  { %v1511_v44 = vsub.f32 %v1439_v6, %v1475_v52  ;;  %v2511_v52 = vpop.eup %2510  ;;  %v1476_v21 = vmul.f32 %v3671_v11, %v3671_v11 }
 0x243   :  { %v1341_v57 = vpop.xlane.xlu0 %1340  ;;  %v1129_v54 = vpop.xlane.xlu1 %1128  ;;  %1881 = vperm.xlu0 %2466, %v1651_v60   ;;  %2108 = vperm.xlu1 %2467, %v1754_v24   ;;  %v1723_v2 = vmul.f32 %v1651_v60, %v3608_v61  ;;  %v1684_v61 = vld [vmem:[%s3948_s4 + $0x90] sm:$0xff]  ;;  %v1650_v24 = vmul.f32 %v2511_v52, %v1542_v30 }
 0x244   :  { %v1583_v47 = vadd.f32 1e-05, %v1511_v44  ;;  %v3674_v20 = vmul.f32 0.0051020407, %v1129_v54  ;;  %v1440_v3 = vmul.f32 0.0051020407, %v1341_v57  ;;  %v1756_v60 = vsub.f32 %v1684_v61, %v1720_v50 }
 0x245   :  { %v1759_v31 = vsub.f32 %v1687_v29, %v1723_v2  ;;  %v1689_v29 = vld [vmem:[%s3948_s4 + $0xb8] sm:$0xff]  ;;  %v1722_v52 = vmul.f32 %v1650_v24, %v3606_v19  ;;  %v1547_v61 = vld [vmem:[%s3947_s3 + $0xc8] sm:$0xff]  ;;  %v1544_v30 = vld [vmem:[%s3947_s3 + $0xb0] sm:$0xff] }
 0x246   :  { %2516 = vrsqrt.f32 %v1583_v47  ;;  %v1477_v28 = vmul.f32 %v3674_v20, %v3674_v20  ;;  %v1512_v10 = vsub.f32 %v1440_v3, %v1476_v21 }
 0x247   :  { %v1345_v39 = vpop.xlane.xlu1 %1344  ;;  %v1133_v49 = vpop.xlane.xlu0 %1132  ;;  %2133 = vperm.xlu0 %2466, %v1759_v31   ;;  %1866 = vperm.xlu1 %2467, %v1648_v14   ;;  %2518 = vrsqrt.f32 %v1582_v41 }
 0x248   :  { %v2513_v5 = vpop.eup %2512  ;;  %v1441_v58 = vmul.f32 0.0051020407, %v1345_v39  ;;  %v3694_v14 = vmul.f32 0.0051020407, %v1133_v49  ;;  %v1584_v41 = vadd.f32 1e-05, %v1512_v10 }
 0x249   :  { %v1653_v6 = vmul.f32 %v2513_v5, %v1545_v35 }
 0x24a   :  { %v1513_v44 = vsub.f32 %v1441_v58, %v1477_v28  ;;  %v2515_v28 = vpop.eup %2514  ;;  %v1478_v39 = vmul.f32 %v3694_v14, %v3694_v14 }
 0x24b   :  { %v1349_v54 = vpop.xlane.xlu0 %1348  ;;  %v1137_v2 = vpop.xlane.xlu1 %1136  ;;  %1891 = vperm.xlu0 %2466, %v1653_v6   ;;  %2118 = vperm.xlu1 %2467, %v1756_v60   ;;  %v1725_v57 = vmul.f32 %v1653_v6, %v3630_v27  ;;  %v1686_v27 = vld [vmem:[%s3948_s4 + $0xa0] sm:$0xff]  ;;  %v1652_v60 = vmul.f32 %v2515_v28, %v1544_v30  ;;  %v1688_v30 = vld [vmem:[%s3948_s4 + $0xb0] sm:$0xff] }
 0x24c   :  { %v1585_v47 = vadd.f32 1e-05, %v1513_v44  ;;  %v3696_v31 = vmul.f32 0.0051020407, %v1137_v2  ;;  %v1442_v49 = vmul.f32 0.0051020407, %v1349_v54  ;;  %v1758_v6 = vsub.f32 %v1686_v27, %v1722_v52 }
 0x24d   :  { %v1761_v50 = vsub.f32 %v1689_v29, %v1725_v57  ;;  %v1691_v29 = vld [vmem:[%s3948_s4 + $0xc8] sm:$0xff]  ;;  %v1724_v28 = vmul.f32 %v1652_v60, %v3628_v40 }
 0x24e   :  { %2520 = vrsqrt.f32 %v1585_v47  ;;  %v1479_v35 = vmul.f32 %v3696_v31, %v3696_v31  ;;  %v1514_v57 = vsub.f32 %v1442_v49, %v1478_v39 }
 0x24f   :  { %v1353_v21 = vpop.xlane.xlu1 %1352  ;;  %v1141_v19 = vpop.xlane.xlu0 %1140  ;;  %2143 = vperm.xlu0 %2466, %v1761_v50   ;;  %1876 = vperm.xlu1 %2467, %v1650_v24   ;;  %2522 = vrsqrt.f32 %v1584_v41 }
 0x250   :  { %v2517_v3 = vpop.eup %2516  ;;  %v1443_v5 = vmul.f32 0.0051020407, %v1353_v21 }
 0x251   :  { %v1655_v58 = vmul.f32 %v2517_v3, %v1547_v61  ;;  %v2519_v54 = vpop.eup %2518  ;;  %v3718_v61 = vmul.f32 0.0051020407, %v1141_v19  ;;  %v1586_v19 = vadd.f32 1e-05, %v1514_v57 }
 0x252   :  { %v1515_v44 = vsub.f32 %v1443_v5, %v1479_v35  ;;  %v1546_v35 = vld [vmem:[%s3947_s3 + $0xc0] sm:$0xff] }
 0x253   :  { %v1357_v10 = vpop.xlane.xlu0 %1356  ;;  %v1145_v2 = vpop.xlane.xlu1 %1144  ;;  %1901 = vperm.xlu0 %2466, %v1655_v58   ;;  %2128 = vperm.xlu1 %2467, %v1758_v6   ;;  %v1727_v24 = vmul.f32 %v1655_v58, %v3652_v15  ;;  %v1549_v15 = vld [vmem:[%s3947_s3 + $0xd8] sm:$0xff]  ;;  %v1654_v39 = vmul.f32 %v2519_v54, %v1546_v35  ;;  %v1480_v49 = vmul.f32 %v3718_v61, %v3718_v61 }
 0x254   :  { %v1587_v47 = vadd.f32 1e-05, %v1515_v44  ;;  %v3716_v50 = vmul.f32 0.0051020407, %v1145_v2  ;;  %v1444_v5 = vmul.f32 0.0051020407, %v1357_v10  ;;  %v1760_v6 = vsub.f32 %v1688_v30, %v1724_v28 }
 0x255   :  { %v1763_v52 = vsub.f32 %v1691_v29, %v1727_v24  ;;  %v1693_v29 = vld [vmem:[%s3948_s4 + $0xd8] sm:$0xff]  ;;  %v1726_v54 = vmul.f32 %v1654_v39, %v3649_v55  ;;  %v1551_v55 = vld [vmem:[%s3947_s3 + $0xe8] sm:$0xff] }
 0x256   :  { %2524 = vrsqrt.f32 %v1587_v47  ;;  %v1481_v27 = vmul.f32 %v3716_v50, %v3716_v50 }
 0x257   :  { %v1361_v41 = vpop.xlane.xlu1 %1360  ;;  %v1149_v21 = vpop.xlane.xlu0 %1148  ;;  %2153 = vperm.xlu0 %2466, %v1763_v52   ;;  %1886 = vperm.xlu1 %2467, %v1652_v60   ;;  %2526 = vrsqrt.f32 %v1586_v19  ;;  %v1516_v52 = vsub.f32 %v1444_v5, %v1480_v49 }
 0x258   :  { %v2521_v40 = vpop.eup %2520  ;;  %v1445_v3 = vmul.f32 0.0051020407, %v1361_v41  ;;  %v3741_v28 = vmul.f32 0.0051020407, %v1149_v21 }
 0x259   :  { %v1657_v58 = vmul.f32 %v2521_v40, %v1549_v15  ;;  %v2523_v10 = vpop.eup %2522  ;;  %v1548_v15 = vld [vmem:[%s3947_s3 + $0xd0] sm:$0xff]  ;;  %v1588_v49 = vadd.f32 1e-05, %v1516_v52 }
 0x25a   :  { %v1517_v44 = vsub.f32 %v1445_v3, %v1481_v27  ;;  %v1690_v27 = vld [vmem:[%s3948_s4 + $0xc0] sm:$0xff]  ;;  %v1656_v3 = vmul.f32 %v2523_v10, %v1548_v15  ;;  %v1482_v5 = vmul.f32 %v3741_v28, %v3741_v28 }
 0x25b   :  { %v1365_v2 = vpop.xlane.xlu0 %1364  ;;  %v1153_v24 = vpop.xlane.xlu1 %1152  ;;  %1911 = vperm.xlu0 %2466, %v1657_v58   ;;  %2138 = vperm.xlu1 %2467, %v1760_v6   ;;  %v1729_v60 = vmul.f32 %v1657_v58, %v3674_v20  ;;  %v1762_v19 = vsub.f32 %v1690_v27, %v1726_v54 }
 0x25c   :  { %v1589_v57 = vadd.f32 1e-05, %v1517_v44  ;;  %v3738_v47 = vmul.f32 0.0051020407, %v1153_v24  ;;  %v1446_v58 = vmul.f32 0.0051020407, %v1365_v2 }
 0x25d   :  { %v1765_v35 = vsub.f32 %v1693_v29, %v1729_v60  ;;  %v1695_v29 = vld [vmem:[%s3948_s4 + $0xe8] sm:$0xff] }
 0x25e   :  { %2528 = vrsqrt.f32 %v1589_v57  ;;  %v1483_v20 = vmul.f32 %v3738_v47, %v3738_v47  ;;  %v1518_v10 = vsub.f32 %v1446_v58, %v1482_v5 }
 0x25f   :  { %v1369_v30 = vpop.xlane.xlu1 %1368  ;;  %2163 = vperm.xlu0 %2466, %v1765_v35   ;;  %v1157_v41 = vpop.xlane.xlu0 %1156  ;;  %1896 = vperm.xlu1 %2467, %v1654_v39   ;;  %2530 = vrsqrt.f32 %v1588_v49  ;;  %v1728_v35 = vmul.f32 %v1656_v3, %v3671_v11 }
 0x260   :  { %v2525_v21 = vpop.eup %2524  ;;  %v1447_v40 = vmul.f32 0.0051020407, %v1369_v30  ;;  %v3760_v57 = vmul.f32 0.0051020407, %v1157_v41 }
 0x261   :  { %v1659_v6 = vmul.f32 %v2525_v21, %v1551_v55  ;;  %v2527_v27 = vpop.eup %2526  ;;  %v1550_v55 = vld [vmem:[%s3947_s3 + $0xe0] sm:$0xff] }
 0x262   :  { %v1519_v44 = vsub.f32 %v1447_v40, %v1483_v20  ;;  %v1692_v20 = vld [vmem:[%s3948_s4 + $0xd0] sm:$0xff]  ;;  %v1484_v41 = vmul.f32 %v3760_v57, %v3760_v57  ;;  %v1658_v58 = vmul.f32 %v2527_v27, %v1550_v55  ;;  %v1699_v55 = vld [vmem:[%s3948_s4 + $0x108] sm:$0xff] }
 0x263   :  { %1921 = vperm.xlu0 %2466, %v1659_v6   ;;  %2148 = vperm.xlu1 %2467, %v1762_v19   ;;  %v1161_v24 = vpop.xlane.xlu1 %1160  ;;  %v1731_v39 = vmul.f32 %v1659_v6, %v3696_v31  ;;  %v1373_v52 = vpop.xlane.xlu0 %1372  ;;  %v1553_v31 = vld [vmem:[%s3947_s3 + $0xf8] sm:$0xff]  ;;  %v1590_v19 = vadd.f32 1e-05, %v1518_v10  ;;  %v1764_v5 = vsub.f32 %v1692_v20, %v1728_v35  ;;  %v1555_v10 = vld [vmem:[%s3947_s3 + $0x108] sm:$0xff] }
 0x264   :  { %v1591_v60 = vadd.f32 1e-05, %v1519_v44  ;;  %v3762_v54 = vmul.f32 0.0051020407, %v1161_v24  ;;  %v1448_v21 = vmul.f32 0.0051020407, %v1373_v52 }
 0x265   :  { %v1767_v2 = vsub.f32 %v1695_v29, %v1731_v39  ;;  %v1697_v44 = vld [vmem:[%s3948_s4 + $0xf8] sm:$0xff]  ;;  %v1694_v52 = vld [vmem:[%s3948_s4 + $0xe0] sm:$0xff] }
 0x266   :  { %2532 = vrsqrt.f32 %v1591_v60  ;;  %v1485_v15 = vmul.f32 %v3762_v54, %v3762_v54  ;;  %v1520_v29 = vsub.f32 %v1448_v21, %v1484_v41  ;;  %v1730_v60 = vmul.f32 %v1658_v58, %v3694_v14 }
 0x267   :  { %2173 = vperm.xlu0 %2466, %v1767_v2   ;;  %1906 = vperm.xlu1 %2467, %v1656_v3   ;;  %v1377_v11 = vpop.xlane.xlu1 %1376  ;;  %2534 = vrsqrt.f32 %v1590_v19 }
 0x268   :  { %v2529_v30 = vpop.eup %2528  ;;  %v1449_v40 = vmul.f32 0.0051020407, %v1377_v11  ;;  %v1592_v27 = vadd.f32 1e-05, %v1520_v29 }
 0x269   :  { %v1661_v49 = vmul.f32 %v2529_v30, %v1553_v31  ;;  %v2531_v2 = vpop.eup %2530  ;;  %v1766_v31 = vsub.f32 %v1694_v52, %v1730_v60  ;;  %v1701_v52 = vld [vmem:[%s3948_s4 + $0x118] sm:$0xff] }
 0x26a   :  { %v1521_v6 = vsub.f32 %v1449_v40, %v1485_v15 }
 0x26b   :  { %1931 = vperm.xlu0 %2466, %v1661_v49   ;;  %2158 = vperm.xlu1 %2467, %v1764_v5   ;;  %v1733_v3 = vmul.f32 %v1661_v49, %v3716_v50  ;;  %v1552_v50 = vld [vmem:[%s3947_s3 + $0xf0] sm:$0xff] }
 0x26c   :  { %v1593_v24 = vadd.f32 1e-05, %v1521_v6  ;;  %v1660_v11 = vmul.f32 %v2531_v2, %v1552_v50 }
 0x26d   :  { %v1769_v39 = vsub.f32 %v1697_v44, %v1733_v3  ;;  %v1557_v44 = vld [vmem:[%s3947_s3 + $0x118] sm:$0xff] }
 0x26e   :  { %2536 = vrsqrt.f32 %v1593_v24  ;;  %v1732_v6 = vmul.f32 %v1660_v11, %v3718_v61 }
 0x26f   :  { %2183 = vperm.xlu0 %2466, %v1769_v39   ;;  %1916 = vperm.xlu1 %2467, %v1658_v58   ;;  %2538 = vrsqrt.f32 %v1592_v27 }
 0x270   :  { %v2533_v35 = vpop.eup %2532  ;;  %v1782_v15 = vpop.permute.xlu1 %1781 }
 0x271   :  { %v1663_v14 = vmul.f32 %v2533_v35, %v1555_v10  ;;  %v1956_v41 = vmul.f32 %v1782_v15, %v2953_v62  ;;  %v1957_v21 = vmul.f32 %v1782_v15, %v2955_v1  ;;  %v2535_v3 = vpop.eup %2534 }
 0x272   :  { %v1777_v20 = vpop.permute.xlu0 %1776 }
 0x273   :  { %1941 = vperm.xlu0 %2466, %v1663_v14   ;;  %2168 = vperm.xlu1 %2467, %v1766_v31   ;;  %v1735_v30 = vmul.f32 %v1663_v14, %v3738_v47  ;;  %v1954_v40 = vmul.f32 %v1777_v20, %v2949_v56  ;;  %v1955_v19 = vmul.f32 %v1777_v20, %v2951_v59  ;;  %v1696_v56 = vld [vmem:[%s3948_s4 + $0xf0] sm:$0xff]  ;;  %v1554_v59 = vld [vmem:[%s3947_s3 + $0x100] sm:$0xff] }
 0x274   :  { %v1768_v60 = vsub.f32 %v1696_v56, %v1732_v6  ;;  %v1662_v10 = vmul.f32 %v2535_v3, %v1554_v59  ;;  %v1698_v20 = vld [vmem:[%s3948_s4 + $0x100] sm:$0xff] }
 0x275   :  { %v1771_v49 = vsub.f32 %v1699_v55, %v1735_v30  ;;  %v1556_v55 = vld [vmem:[%s3947_s3 + $0x110] sm:$0xff] }
 0x276   :  { %v2034_v5 = vpop.permute.xlu0 %2033  ;;  %v2029_v58 = vpop.permute.xlu1 %2028  ;;  %v1734_v15 = vmul.f32 %v1662_v10, %v3741_v28 }
 0x277   :  { %v2208_v47 = vadd.f32 %v2034_v5, %v1956_v41  ;;  %v2209_v29 = vadd.f32 %v2034_v5, %v1957_v21  ;;  %v2206_v24 = vadd.f32 %v2029_v58, %v1954_v40  ;;  %v2207_v62 = vadd.f32 %v2029_v58, %v1955_v19  ;;  %2193 = vperm.xlu0 %2466, %v1771_v49  }
 0x278   :  { %v2537_v1 = vpop.eup %2536  ;;  %1926 = vperm.xlu1 %2467, %v1660_v11   ;;  %v1770_v21 = vsub.f32 %v1698_v20, %v1734_v15 }
 0x279   :  { %2280 = vst [vmem:[#allocation7 + $0x10] sm:$0xff] %v2208_v47  ;;  %2281 = vst.msk [vmem:[#allocation7 + $0x18] sm:$0xff] %vm1017_vm1, %v2209_v29  ;;  %v1665_v61 = vmul.f32 %v2537_v1, %v1557_v44  ;;  %v2539_v35 = vpop.eup %2538 }
 0x27a   :  { %2278 = vst [vmem:[#allocation7] sm:$0xff] %v2206_v24  ;;  %2279 = vst.msk [vmem:[#allocation7 + $0x8] sm:$0xff] %vm1017_vm1, %v2207_v62  ;;  %v1787_v39 = vpop.permute.xlu1 %1786 }
 0x27b   :  { %1951 = vperm.xlu0 %2466, %v1665_v61   ;;  %v1737_v2 = vmul.f32 %v1665_v61, %v3762_v54  ;;  %v1958_v11 = vmul.f32 %v1787_v39, %v2973_v12  ;;  %v1959_v30 = vmul.f32 %v1787_v39, %v2978_v17  ;;  %v1700_v12 = vld [vmem:[%s3948_s4 + $0x110] sm:$0xff]  ;;  %s2619_s4 = smov [#allocation7]  }
 0x27c   :  { %2178 = vperm.xlu1 %2467, %v1768_v60   ;;  %s2355_s25 = sshll.u32 %s2619_s4, 4  ;;  %s2356_s25 = int_to_ptr.vmem [resolvable:$true] %s2355_s25 }
 0x27d   :  { %v1773_v50 = vsub.f32 %v1701_v52, %v1737_v2  ;;  %s2584_s26 = scalar_lea.vmem %s2356_s25, 9216  ;;  %p2589_p3 = scmp.lt.s32.totalorder %s2356_s25, %s2356_s25 }
 0x27e   :  { %v1792_v27 = vpop.permute.xlu1 %1791  ;;  %v2044_v54 = vpop.permute.xlu0 %2043  ;;  %p2585_p2 = scmp.ne.s32.totalorder %s2356_s25, %s2584_s26  ;;  %p2590_p4 = scmp.lt.s32.totalorder %s2584_s26, %s2584_s26 }
 0x27f   :  { %v1960_v14 = vmul.f32 %v1792_v27, %v2983_v22  ;;  %v1961_v31 = vmul.f32 %v1792_v27, %v2989_v25  ;;  %2203 = vperm.xlu0 %2466, %v1773_v50   ;;  %v1664_v25 = vmul.f32 %v2539_v35, %v1556_v55 }
 0x280   :  { %1936 = vperm.xlu1 %2467, %v1662_v10   ;;  %p2591_p5 = por %p2590_p4, %p2589_p3 }
 0x281   :  { %v2212_v28 = vadd.f32 %v2044_v54, %v1960_v14  ;;  %v2213_v41 = vadd.f32 %v2044_v54, %v1961_v31  ;;  %v1736_v5 = vmul.f32 %v1664_v25, %v3760_v57 }
 0x282   :  { %v2039_v22 = vpop.permute.xlu1 %2038  ;;  %p2592_p6 = pnand %p2591_p5, %p2585_p2 }
 0x283   :  { %2284 = vst [vmem:[#allocation7 + $0x30] sm:$0xff] %v2212_v28  ;;  %2285 = vst.msk [vmem:[#allocation7 + $0x38] sm:$0xff] %vm1017_vm1, %v2213_v41  ;;  %v2210_v40 = vadd.f32 %v2039_v22, %v1958_v11  ;;  %v2211_v19 = vadd.f32 %v2039_v22, %v1959_v30  ;;  %v1772_v6 = vsub.f32 %v1700_v12, %v1736_v5 }
 0x284   :  { %2188 = vperm.xlu1 %2467, %v1770_v21  }
 0x285   :  { %2282 = vst [vmem:[#allocation7 + $0x20] sm:$0xff] %v2210_v40  ;;  %2283 = vst.msk [vmem:[#allocation7 + $0x28] sm:$0xff] %vm1017_vm1, %v2211_v19 }
 0x286   :  { %v1797_v49 = vpop.permute.xlu1 %1796  ;;  %v2054_v17 = vpop.permute.xlu0 %2053 }
 0x287   :  { %v1962_v47 = vmul.f32 %v1797_v49, %v3003_v37  ;;  %v1963_v29 = vmul.f32 %v1797_v49, %v3010_v0 }
 0x288   :  { %1946 = vperm.xlu1 %2467, %v1664_v25  }
 0x28a   :  { %v1802_v58 = vpop.permute.xlu1 %1801 }
 0x28b   :  { %v1964_v44 = vmul.f32 %v1802_v58, %v3015_v45  ;;  %v1965_v3 = vmul.f32 %v1802_v58, %v3019_v48 }
 0x28c   :  { %2198 = vperm.xlu1 %2467, %v1772_v6  }
 0x28d   :  { %v2216_v24 = vadd.f32 %v2054_v17, %v1964_v44  ;;  %v2217_v62 = vadd.f32 %v2054_v17, %v1965_v3 }
 0x28e   :  { %v2064_v57 = vpop.permute.xlu0 %2063  ;;  %v2049_v56 = vpop.permute.xlu1 %2048 }
 0x28f   :  { %2288 = vst [vmem:[#allocation7 + $0x50] sm:$0xff] %v2216_v24  ;;  %2289 = vst.msk [vmem:[#allocation7 + $0x58] sm:$0xff] %vm1017_vm1, %v2217_v62  ;;  %v2214_v59 = vadd.f32 %v2049_v56, %v1962_v47  ;;  %v2215_v1 = vadd.f32 %v2049_v56, %v1963_v29 }
 0x291   :  { %2286 = vst [vmem:[#allocation7 + $0x40] sm:$0xff] %v2214_v59  ;;  %2287 = vst.msk [vmem:[#allocation7 + $0x48] sm:$0xff] %vm1017_vm1, %v2215_v1 }
 0x292   :  { %v1822_v45 = vpop.permute.xlu0 %1821  ;;  %v1807_v61 = vpop.permute.xlu1 %1806 }
 0x293   :  { %v1972_v48 = vmul.f32 %v1822_v45, %v3073_v42  ;;  %v1973_v37 = vmul.f32 %v1822_v45, %v3078_v34  ;;  %v1966_v50 = vmul.f32 %v1807_v61, %v3036_v4  ;;  %v1967_v35 = vmul.f32 %v1807_v61, %v3039_v7  ;;  %v4031_v45 = vld [vmem:[#allocation12_spill] sm:$0xff] }
 0x296   :  { %v2074_v39 = vpop.permute.xlu0 %2073  ;;  %v1812_v0 = vpop.permute.xlu1 %1811 }
 0x297   :  { %v2224_v60 = vadd.f32 %v2074_v39, %v1972_v48  ;;  %v2225_v10 = vadd.f32 %v2074_v39, %v1973_v37  ;;  %v1968_v52 = vmul.f32 %v1812_v0, %v3044_v13  ;;  %v1969_v2 = vmul.f32 %v1812_v0, %v3049_v8  ;;  %v4032_v0 = vld [vmem:[#allocation17_spill] sm:$0xff] }
 0x299   :  { %2296 = vst [vmem:[#allocation7 + $0x90] sm:$0xff] %v2224_v60  ;;  %2297 = vst.msk [vmem:[#allocation7 + $0x98] sm:$0xff] %vm1017_vm1, %v2225_v10  ;;  %v2220_v27 = vadd.f32 %v2064_v57, %v1968_v52  ;;  %v2221_v15 = vadd.f32 %v2064_v57, %v1969_v2  ;;  %v4033_v60 = vld [vmem:[#allocation18_spill] sm:$0xff] }
 0x29a   :  { %v1832_v42 = vpop.permute.xlu0 %1831  ;;  %v2059_v14 = vpop.permute.xlu1 %2058 }
 0x29b   :  { %2292 = vst [vmem:[#allocation7 + $0x70] sm:$0xff] %v2220_v27  ;;  %2293 = vst.msk [vmem:[#allocation7 + $0x78] sm:$0xff] %vm1017_vm1, %v2221_v15  ;;  %v2218_v34 = vadd.f32 %v2059_v14, %v1966_v50  ;;  %v2219_v31 = vadd.f32 %v2059_v14, %v1967_v35  ;;  %v1976_v13 = vmul.f32 %v1832_v42, %v3100_v18  ;;  %v4034_v27 = vld [vmem:[#allocation13_spill] sm:$0xff] }
 0x29c   :  { %v1977_v8 = vmul.f32 %v1832_v42, %v3105_v23  ;;  %v4035_v42 = vld [vmem:[#allocation14_spill] sm:$0xff] }
 0x29d   :  { %2290 = vst [vmem:[#allocation7 + $0x60] sm:$0xff] %v2218_v34  ;;  %2291 = vst.msk [vmem:[#allocation7 + $0x68] sm:$0xff] %vm1017_vm1, %v2219_v31 }
 0x29e   :  { %v2084_v4 = vpop.permute.xlu0 %2083  ;;  %v1817_v7 = vpop.permute.xlu1 %1816 }
 0x29f   :  { %v2228_v20 = vadd.f32 %v2084_v4, %v1976_v13  ;;  %v2229_v55 = vadd.f32 %v2084_v4, %v1977_v8  ;;  %v1970_v54 = vmul.f32 %v1817_v7, %v3065_v32  ;;  %v1971_v11 = vmul.f32 %v1817_v7, %v3068_v38  ;;  %v4036_v4 = vld [vmem:[#allocation21_spill] sm:$0xff] }
 0x2a1   :  { %2300 = vst [vmem:[#allocation7 + $0xb0] sm:$0xff] %v2228_v20  ;;  %2301 = vst.msk [vmem:[#allocation7 + $0xb8] sm:$0xff] %vm1017_vm1, %v2229_v55  ;;  %v4037_v20 = vld [vmem:[#allocation22_spill] sm:$0xff] }
 0x2a2   :  { %v1842_v30 = vpop.permute.xlu0 %1841  ;;  %v2069_v28 = vpop.permute.xlu1 %2068 }
 0x2a3   :  { %v2222_v41 = vadd.f32 %v2069_v28, %v1970_v54  ;;  %v2223_v18 = vadd.f32 %v2069_v28, %v1971_v11  ;;  %v1980_v23 = vmul.f32 %v1842_v30, %v3127_v51  ;;  %v1981_v22 = vmul.f32 %v1842_v30, %v3132_v53 }
 0x2a5   :  { %2294 = vst [vmem:[#allocation7 + $0x80] sm:$0xff] %v2222_v41  ;;  %2295 = vst.msk [vmem:[#allocation7 + $0x88] sm:$0xff] %vm1017_vm1, %v2223_v18  ;;  %v4038_v41 = vld [vmem:[#allocation15_spill] sm:$0xff] }
 0x2a6   :  { %v2094_v21 = vpop.permute.xlu0 %2093  ;;  %v1827_v25 = vpop.permute.xlu1 %1826 }
 0x2a7   :  { %v2232_v40 = vadd.f32 %v2094_v21, %v1980_v23  ;;  %v2233_v19 = vadd.f32 %v2094_v21, %v1981_v22  ;;  %v1974_v32 = vmul.f32 %v1827_v25, %v3094_v63  ;;  %v1975_v38 = vmul.f32 %v1827_v25, %v3096_v9  ;;  %v4039_v23 = vld [vmem:[#allocation16_spill] sm:$0xff] }
 0x2a9   :  { %2304 = vst [vmem:[#allocation7 + $0xd0] sm:$0xff] %v2232_v40  ;;  %2305 = vst.msk [vmem:[#allocation7 + $0xd8] sm:$0xff] %vm1017_vm1, %v2233_v19 }
 0x2aa   :  { %v1852_v49 = vpop.permute.xlu0 %1851  ;;  %v2079_v5 = vpop.permute.xlu1 %2078 }
 0x2ab   :  { %v2226_v12 = vadd.f32 %v2079_v5, %v1974_v32  ;;  %v2227_v51 = vadd.f32 %v2079_v5, %v1975_v38  ;;  %v1984_v53 = vmul.f32 %v1852_v49, %v3154_v26  ;;  %v1985_v17 = vmul.f32 %v1852_v49, %v3159_v46  ;;  %v4040_v32 = vld [vmem:[#allocation25_spill] sm:$0xff]  ;;  %v4041_v49 = vld [vmem:[#allocation26_spill] sm:$0xff] }
 0x2ad   :  { %2298 = vst [vmem:[#allocation7 + $0xa0] sm:$0xff] %v2226_v12  ;;  %2299 = vst.msk [vmem:[#allocation7 + $0xa8] sm:$0xff] %vm1017_vm1, %v2227_v51 }
 0x2ae   :  { %v2104_v58 = vpop.permute.xlu0 %2103  ;;  %v1837_v6 = vpop.permute.xlu1 %1836 }
 0x2af   :  { %v2236_v44 = vadd.f32 %v2104_v58, %v1984_v53  ;;  %v2237_v3 = vadd.f32 %v2104_v58, %v1985_v17  ;;  %v1978_v63 = vmul.f32 %v1837_v6, %v3121_v43  ;;  %v1979_v9 = vmul.f32 %v1837_v6, %v3123_v36  ;;  %v4030_v43 = vld [vmem:[#allocation11_spill] sm:$0xff] }
 0x2b0   :  { %v4042_v58 = vld [vmem:[#allocation19_spill] sm:$0xff] }
 0x2b1   :  { %2308 = vst [vmem:[#allocation7 + $0xf0] sm:$0xff] %v2236_v44  ;;  %2309 = vst.msk [vmem:[#allocation7 + $0xf8] sm:$0xff] %vm1017_vm1, %v2237_v3  ;;  %v4043_v44 = vld [vmem:[#allocation20_spill] sm:$0xff] }
 0x2b2   :  { %v1862_v47 = vpop.permute.xlu0 %1861  ;;  %v2089_v29 = vpop.permute.xlu1 %2088 }
 0x2b3   :  { %v2230_v24 = vadd.f32 %v2089_v29, %v1978_v63  ;;  %v2231_v26 = vadd.f32 %v2089_v29, %v1979_v9  ;;  %v1988_v46 = vmul.f32 %v1862_v47, %v3181_v16  ;;  %v1989_v62 = vmul.f32 %v1862_v47, %v3186_v33 }
 0x2b5   :  { %2302 = vst [vmem:[#allocation7 + $0xc0] sm:$0xff] %v2230_v24  ;;  %2303 = vst.msk [vmem:[#allocation7 + $0xc8] sm:$0xff] %vm1017_vm1, %v2231_v26  ;;  %v4044_v24 = vld [vmem:[#allocation29_spill] sm:$0xff] }
 0x2b6   :  { %v2114_v57 = vpop.permute.xlu0 %2113  ;;  %v1847_v56 = vpop.permute.xlu1 %1846 }
 0x2b7   :  { %v2240_v59 = vadd.f32 %v2114_v57, %v1988_v46  ;;  %v2241_v1 = vadd.f32 %v2114_v57, %v1989_v62  ;;  %v1982_v36 = vmul.f32 %v1847_v56, %v4030_v43  ;;  %v1983_v61 = vmul.f32 %v1847_v56, %v4031_v45  ;;  %v4045_v46 = vld [vmem:[#allocation30_spill] sm:$0xff]  ;;  %v4046_v43 = vld [vmem:[#allocation23_spill] sm:$0xff]  ;;  %v4047_v45 = vld [vmem:[#allocation24_spill] sm:$0xff] }
 0x2b9   :  { %2312 = vst [vmem:[#allocation7 + $0x110] sm:$0xff] %v2240_v59  ;;  %2313 = vst.msk [vmem:[#allocation7 + $0x118] sm:$0xff] %vm1017_vm1, %v2241_v1 }
 0x2ba   :  { %v1872_v48 = vpop.permute.xlu0 %1871  ;;  %v2099_v37 = vpop.permute.xlu1 %2098 }
 0x2bb   :  { %v2234_v39 = vadd.f32 %v2099_v37, %v1982_v36  ;;  %v2235_v16 = vadd.f32 %v2099_v37, %v1983_v61  ;;  %v1992_v33 = vmul.f32 %v1872_v48, %v4032_v0  ;;  %v1993_v10 = vmul.f32 %v1872_v48, %v4033_v60  ;;  %v4048_v0 = vld [vmem:[#allocation33_spill] sm:$0xff]  ;;  %v4049_v60 = vld [vmem:[#allocation34_spill] sm:$0xff] }
 0x2bd   :  { %2306 = vst [vmem:[#allocation7 + $0xe0] sm:$0xff] %v2234_v39  ;;  %2307 = vst.msk [vmem:[#allocation7 + $0xe8] sm:$0xff] %vm1017_vm1, %v2235_v16 }
 0x2be   :  { %v2124_v52 = vpop.permute.xlu0 %2123  ;;  %v1857_v2 = vpop.permute.xlu1 %1856 }
 0x2bf   :  { %v2244_v50 = vadd.f32 %v2124_v52, %v1992_v33  ;;  %v2245_v35 = vadd.f32 %v2124_v52, %v1993_v10  ;;  %v1986_v15 = vmul.f32 %v1857_v2, %v4034_v27  ;;  %v1987_v14 = vmul.f32 %v1857_v2, %v4035_v42  ;;  %v4050_v27 = vld [vmem:[#allocation27_spill] sm:$0xff]  ;;  %v4051_v42 = vld [vmem:[#allocation28_spill] sm:$0xff] }
 0x2c1   :  { %2316 = vst [vmem:[#allocation7 + $0x130] sm:$0xff] %v2244_v50  ;;  %2317 = vst.msk [vmem:[#allocation7 + $0x138] sm:$0xff] %vm1017_vm1, %v2245_v35 }
 0x2c2   :  { %v1882_v34 = vpop.permute.xlu0 %1881  ;;  %v2109_v31 = vpop.permute.xlu1 %2108 }
 0x2c3   :  { %v2238_v13 = vadd.f32 %v2109_v31, %v1986_v15  ;;  %v2239_v8 = vadd.f32 %v2109_v31, %v1987_v14  ;;  %v1996_v7 = vmul.f32 %v1882_v34, %v4036_v4  ;;  %v1997_v55 = vmul.f32 %v1882_v34, %v4037_v20  ;;  %v4052_v4 = vld [vmem:[#allocation37_spill] sm:$0xff]  ;;  %v4053_v20 = vld [vmem:[#allocation38_spill] sm:$0xff] }
 0x2c5   :  { %2310 = vst [vmem:[#allocation7 + $0x100] sm:$0xff] %v2238_v13  ;;  %2311 = vst.msk [vmem:[#allocation7 + $0x108] sm:$0xff] %vm1017_vm1, %v2239_v8 }
 0x2c6   :  { %v2134_v54 = vpop.permute.xlu0 %2133  ;;  %v1867_v11 = vpop.permute.xlu1 %1866 }
 0x2c7   :  { %v2248_v30 = vadd.f32 %v2134_v54, %v1996_v7  ;;  %v2249_v28 = vadd.f32 %v2134_v54, %v1997_v55  ;;  %v1990_v18 = vmul.f32 %v1867_v11, %v4038_v41  ;;  %v1991_v22 = vmul.f32 %v1867_v11, %v4039_v23  ;;  %v4054_v41 = vld [vmem:[#allocation31_spill] sm:$0xff]  ;;  %v4055_v23 = vld [vmem:[#allocation32_spill] sm:$0xff] }
 0x2c9   :  { %2320 = vst [vmem:[#allocation7 + $0x150] sm:$0xff] %v2248_v30  ;;  %2321 = vst.msk [vmem:[#allocation7 + $0x158] sm:$0xff] %vm1017_vm1, %v2249_v28 }
 0x2ca   :  { %v1892_v21 = vpop.permute.xlu0 %1891  ;;  %v2119_v25 = vpop.permute.xlu1 %2118 }
 0x2cb   :  { %v2242_v40 = vadd.f32 %v2119_v25, %v1990_v18  ;;  %v2243_v19 = vadd.f32 %v2119_v25, %v1991_v22  ;;  %v2000_v38 = vmul.f32 %v1892_v21, %v4040_v32  ;;  %v2001_v5 = vmul.f32 %v1892_v21, %v4041_v49  ;;  %v4056_v32 = vld [vmem:[#allocation41_spill] sm:$0xff]  ;;  %v4057_v49 = vld [vmem:[#allocation42_spill] sm:$0xff] }
 0x2cd   :  { %2314 = vst [vmem:[#allocation7 + $0x120] sm:$0xff] %v2242_v40  ;;  %2315 = vst.msk [vmem:[#allocation7 + $0x128] sm:$0xff] %vm1017_vm1, %v2243_v19 }
 0x2ce   :  { %v2144_v12 = vpop.permute.xlu0 %2143  ;;  %v1877_v51 = vpop.permute.xlu1 %1876 }
 0x2cf   :  { %v2252_v53 = vadd.f32 %v2144_v12, %v2000_v38  ;;  %v2253_v17 = vadd.f32 %v2144_v12, %v2001_v5  ;;  %v1994_v6 = vmul.f32 %v1877_v51, %v4042_v58  ;;  %v1995_v3 = vmul.f32 %v1877_v51, %v4043_v44  ;;  %v4058_v58 = vld [vmem:[#allocation35_spill] sm:$0xff]  ;;  %v4059_v44 = vld [vmem:[#allocation36_spill] sm:$0xff] }
 0x2d1   :  { %2324 = vst [vmem:[#allocation7 + $0x170] sm:$0xff] %v2252_v53  ;;  %2325 = vst.msk [vmem:[#allocation7 + $0x178] sm:$0xff] %vm1017_vm1, %v2253_v17 }
 0x2d2   :  { %v1902_v63 = vpop.permute.xlu0 %1901  ;;  %v2129_v9 = vpop.permute.xlu1 %2128 }
 0x2d3   :  { %v2246_v47 = vadd.f32 %v2129_v9, %v1994_v6  ;;  %v2247_v29 = vadd.f32 %v2129_v9, %v1995_v3  ;;  %v2004_v26 = vmul.f32 %v1902_v63, %v4044_v24  ;;  %v2005_v62 = vmul.f32 %v1902_v63, %v4045_v46  ;;  %v4060_v24 = vld [vmem:[#allocation45_spill] sm:$0xff]  ;;  %v4061_v46 = vld [vmem:[#allocation46_spill] sm:$0xff] }
 0x2d5   :  { %2318 = vst [vmem:[#allocation7 + $0x140] sm:$0xff] %v2246_v47  ;;  %2319 = vst.msk [vmem:[#allocation7 + $0x148] sm:$0xff] %vm1017_vm1, %v2247_v29 }
 0x2d6   :  { %v2154_v57 = vpop.permute.xlu0 %2153  ;;  %v1887_v56 = vpop.permute.xlu1 %1886 }
 0x2d7   :  { %v2256_v59 = vadd.f32 %v2154_v57, %v2004_v26  ;;  %v2257_v1 = vadd.f32 %v2154_v57, %v2005_v62  ;;  %v1998_v36 = vmul.f32 %v1887_v56, %v4046_v43  ;;  %v1999_v61 = vmul.f32 %v1887_v56, %v4047_v45  ;;  %v4062_v43 = vld [vmem:[#allocation39_spill] sm:$0xff]  ;;  %v4063_v45 = vld [vmem:[#allocation40_spill] sm:$0xff] }
 0x2d9   :  { %2328 = vst [vmem:[#allocation7 + $0x190] sm:$0xff] %v2256_v59  ;;  %2329 = vst.msk [vmem:[#allocation7 + $0x198] sm:$0xff] %vm1017_vm1, %v2257_v1 }
 0x2da   :  { %v1912_v48 = vpop.permute.xlu0 %1911  ;;  %v2139_v37 = vpop.permute.xlu1 %2138 }
 0x2db   :  { %v2250_v39 = vadd.f32 %v2139_v37, %v1998_v36  ;;  %v2251_v16 = vadd.f32 %v2139_v37, %v1999_v61  ;;  %v2008_v33 = vmul.f32 %v1912_v48, %v4048_v0  ;;  %v2009_v10 = vmul.f32 %v1912_v48, %v4049_v60  ;;  %v4064_v0 = vld [vmem:[#allocation49_spill] sm:$0xff]  ;;  %v4065_v60 = vld [vmem:[#allocation50_spill] sm:$0xff] }
 0x2dd   :  { %2322 = vst [vmem:[#allocation7 + $0x160] sm:$0xff] %v2250_v39  ;;  %2323 = vst.msk [vmem:[#allocation7 + $0x168] sm:$0xff] %vm1017_vm1, %v2251_v16 }
 0x2de   :  { %v2164_v52 = vpop.permute.xlu0 %2163  ;;  %v1897_v2 = vpop.permute.xlu1 %1896 }
 0x2df   :  { %v2260_v50 = vadd.f32 %v2164_v52, %v2008_v33  ;;  %v2261_v35 = vadd.f32 %v2164_v52, %v2009_v10  ;;  %v2002_v15 = vmul.f32 %v1897_v2, %v4050_v27  ;;  %v2003_v14 = vmul.f32 %v1897_v2, %v4051_v42  ;;  %v4066_v27 = vld [vmem:[#allocation43_spill] sm:$0xff]  ;;  %v4067_v42 = vld [vmem:[#allocation44_spill] sm:$0xff] }
 0x2e1   :  { %2332 = vst [vmem:[#allocation7 + $0x1b0] sm:$0xff] %v2260_v50  ;;  %2333 = vst.msk [vmem:[#allocation7 + $0x1b8] sm:$0xff] %vm1017_vm1, %v2261_v35 }
 0x2e2   :  { %v1922_v34 = vpop.permute.xlu0 %1921  ;;  %v2149_v31 = vpop.permute.xlu1 %2148 }
 0x2e3   :  { %v2254_v13 = vadd.f32 %v2149_v31, %v2002_v15  ;;  %v2255_v8 = vadd.f32 %v2149_v31, %v2003_v14  ;;  %v2012_v7 = vmul.f32 %v1922_v34, %v4052_v4  ;;  %v2013_v55 = vmul.f32 %v1922_v34, %v4053_v20  ;;  %v4068_v4 = vld [vmem:[#allocation47_spill] sm:$0xff]  ;;  %v4069_v20 = vld [vmem:[#allocation48_spill] sm:$0xff] }
 0x2e5   :  { %2326 = vst [vmem:[#allocation7 + $0x180] sm:$0xff] %v2254_v13  ;;  %2327 = vst.msk [vmem:[#allocation7 + $0x188] sm:$0xff] %vm1017_vm1, %v2255_v8 }
 0x2e6   :  { %v2174_v54 = vpop.permute.xlu0 %2173  ;;  %v1907_v11 = vpop.permute.xlu1 %1906 }
 0x2e7   :  { %v2264_v30 = vadd.f32 %v2174_v54, %v2012_v7  ;;  %v2265_v28 = vadd.f32 %v2174_v54, %v2013_v55  ;;  %v2006_v18 = vmul.f32 %v1907_v11, %v4054_v41  ;;  %v2007_v22 = vmul.f32 %v1907_v11, %v4055_v23 }
 0x2e9   :  { %2336 = vst [vmem:[#allocation7 + $0x1d0] sm:$0xff] %v2264_v30  ;;  %2337 = vst.msk [vmem:[#allocation7 + $0x1d8] sm:$0xff] %vm1017_vm1, %v2265_v28 }
 0x2ea   :  { %v1932_v21 = vpop.permute.xlu0 %1931  ;;  %v2159_v25 = vpop.permute.xlu1 %2158 }
 0x2eb   :  { %v2258_v40 = vadd.f32 %v2159_v25, %v2006_v18  ;;  %v2259_v19 = vadd.f32 %v2159_v25, %v2007_v22  ;;  %v2016_v38 = vmul.f32 %v1932_v21, %v4056_v32  ;;  %v2017_v5 = vmul.f32 %v1932_v21, %v4057_v49 }
 0x2ed   :  { %2330 = vst [vmem:[#allocation7 + $0x1a0] sm:$0xff] %v2258_v40  ;;  %2331 = vst.msk [vmem:[#allocation7 + $0x1a8] sm:$0xff] %vm1017_vm1, %v2259_v19 }
 0x2ee   :  { %v2184_v12 = vpop.permute.xlu0 %2183  ;;  %v1917_v51 = vpop.permute.xlu1 %1916 }
 0x2ef   :  { %v2268_v53 = vadd.f32 %v2184_v12, %v2016_v38  ;;  %v2269_v17 = vadd.f32 %v2184_v12, %v2017_v5  ;;  %v2010_v6 = vmul.f32 %v1917_v51, %v4058_v58  ;;  %v2011_v3 = vmul.f32 %v1917_v51, %v4059_v44 }
 0x2f1   :  { %2340 = vst [vmem:[#allocation7 + $0x1f0] sm:$0xff] %v2268_v53  ;;  %2341 = vst.msk [vmem:[#allocation7 + $0x1f8] sm:$0xff] %vm1017_vm1, %v2269_v17 }
 0x2f2   :  { %v1942_v63 = vpop.permute.xlu0 %1941  ;;  %v2169_v9 = vpop.permute.xlu1 %2168 }
 0x2f3   :  { %v2262_v47 = vadd.f32 %v2169_v9, %v2010_v6  ;;  %v2263_v29 = vadd.f32 %v2169_v9, %v2011_v3  ;;  %v2020_v26 = vmul.f32 %v1942_v63, %v4060_v24  ;;  %v2021_v62 = vmul.f32 %v1942_v63, %v4061_v46 }
 0x2f5   :  { %2334 = vst [vmem:[#allocation7 + $0x1c0] sm:$0xff] %v2262_v47  ;;  %2335 = vst.msk [vmem:[#allocation7 + $0x1c8] sm:$0xff] %vm1017_vm1, %v2263_v29 }
 0x2f6   :  { %v2194_v57 = vpop.permute.xlu0 %2193 }
 0x2f7   :  { %v2272_v56 = vadd.f32 %v2194_v57, %v2020_v26  ;;  %v2273_v59 = vadd.f32 %v2194_v57, %v2021_v62  ;;  %v1927_v1 = vpop.permute.xlu1 %1926 }
 0x2f8   :  { %v2014_v36 = vmul.f32 %v1927_v1, %v4062_v43  ;;  %v2015_v61 = vmul.f32 %v1927_v1, %v4063_v45 }
 0x2f9   :  { %2344 = vst [vmem:[#allocation7 + $0x210] sm:$0xff] %v2272_v56  ;;  %2345 = vst.msk [vmem:[#allocation7 + $0x218] sm:$0xff] %vm1017_vm1, %v2273_v59 }
 0x2fa   :  { %v1952_v48 = vpop.permute.xlu0 %1951 }
 0x2fb   :  { %v2179_v37 = vpop.permute.xlu1 %2178  ;;  %v2024_v33 = vmul.f32 %v1952_v48, %v4064_v0  ;;  %v2025_v10 = vmul.f32 %v1952_v48, %v4065_v60 }
 0x2fc   :  { %v2266_v39 = vadd.f32 %v2179_v37, %v2014_v36  ;;  %v2267_v16 = vadd.f32 %v2179_v37, %v2015_v61 }
 0x2fe   :  { %2338 = vst [vmem:[#allocation7 + $0x1e0] sm:$0xff] %v2266_v39  ;;  %2339 = vst.msk [vmem:[#allocation7 + $0x1e8] sm:$0xff] %vm1017_vm1, %v2267_v16  ;;  %v2204_v52 = vpop.permute.xlu0 %2203 }
 0x2ff   :  { %v2276_v2 = vadd.f32 %v2204_v52, %v2024_v33  ;;  %v2277_v50 = vadd.f32 %v2204_v52, %v2025_v10  ;;  %v1937_v35 = vpop.permute.xlu1 %1936 }
 0x300   :  { %v2018_v15 = vmul.f32 %v1937_v35, %v4066_v27  ;;  %v2019_v14 = vmul.f32 %v1937_v35, %v4067_v42 }
 0x301   :  { %2348 = vst [vmem:[#allocation7 + $0x230] sm:$0xff] %v2276_v2  ;;  %2349 = vst.msk [vmem:[#allocation7 + $0x238] sm:$0xff] %vm1017_vm1, %v2277_v50 }
 0x303   :  { %v2189_v34 = vpop.permute.xlu1 %2188 }
 0x304   :  { %v2270_v31 = vadd.f32 %v2189_v34, %v2018_v15  ;;  %v2271_v13 = vadd.f32 %v2189_v34, %v2019_v14 }
 0x306   :  { %2342 = vst [vmem:[#allocation7 + $0x200] sm:$0xff] %v2270_v31  ;;  %2343 = vst.msk [vmem:[#allocation7 + $0x208] sm:$0xff] %vm1017_vm1, %v2271_v13 }
 0x307   :  { %v1947_v8 = vpop.permute.xlu1 %1946 }
 0x308   :  { %v2022_v7 = vmul.f32 %v1947_v8, %v4068_v4  ;;  %v2023_v55 = vmul.f32 %v1947_v8, %v4069_v20 }
 0x30b   :  { %v2199_v54 = vpop.permute.xlu1 %2198 }
 0x30c   :  { %v2274_v11 = vadd.f32 %v2199_v54, %v2022_v7  ;;  %v2275_v30 = vadd.f32 %v2199_v54, %v2023_v55 }
 0x30e   :  { %2346 = vst [vmem:[#allocation7 + $0x220] sm:$0xff] %v2274_v11  ;;  %2347 = vst.msk [vmem:[#allocation7 + $0x228] sm:$0xff] %vm1017_vm1, %v2275_v30 }
 0x30f   :  { %2595 = shalt.err (!%p2592_p6)
}
 0x310   :  { %s2596_s6 = scalar_lea.hbm %s3949_s5, 9216 }
 0x311   :  { %p2597_p7 = scmp.ne.s32.totalorder %s3949_s5, %s2596_s6  ;;  %p2600_p8 = scmp.lt.u32.totalorder %s2596_s6, %s3949_s5 }
 0x313   :  { %p2602_p9 = pnand %p2600_p8, %p2597_p7 }
 0x315   :  { %2605 = shalt.err (!%p2602_p9)
}
 0x316   :  { %2361 = dma.vmem_to_hbm [thread:$0]  %s2356_s25, 9216, %s3949_s5, [#allocation4], %s2613_s28, %s2613_s28, %s2614_s29  }
 0x317   :  { %2610 = dma.done.wait [#allocation4], 9216  }
 0x318   :  { %2611 = vsyncadd [#allocation4], 4294958080 }
 0x319   :  { %2365 = vsyncpa [#allocation3], 1 }
 0x31a   :  { %2366 = vsyncpa [#allocation6], 1 }
 0x31b   :  { %2367 = vsyncpa [#allocation4], 1 }

</bundles_post_ra>
